<compile_context>
chip_gen: v7x
topology: tpu7x:2x2x1
jax: 0.10.0
libtpu: 0.0.40
codegen_flags: <defaults>
</compile_context>

<pallas_src>
import functools

import jax
import jax.numpy as jnp
from jax.experimental import pallas as pl
from jax.experimental.pallas import tpu as pltpu

LANE = 128


def _up(n, m):
  return ((n + m - 1) // m) * m


def _bias_layout(H, L, D, Hfp, n_steps):
  """Lane-aligned layout of the packed (1, NB) f32 bias/row-vector slab."""
  offs = {}
  cur = 0
  for name, width in (("eb1", H), ("eb2", H), ("ebh", 2 * L), ("db1", H),
                      ("db2", H), ("dbh", 2 * D), ("cb2", D), ("m", Hfp)):
    offs[name] = cur
    cur += _up(width, LANE)
  offs["bt"] = cur                      # n_steps segments of width Hfp each
  cur += n_steps * Hfp
  return offs, cur


# ----------------------------------------------------------------------------
# Fused kernel
# ----------------------------------------------------------------------------
def vae_ode_fused_kernel(
    xe_ref, bias_ref, ew1_ref, sw_ref, dw1_ref, dwh_ref, cw1_ref, cw2_ref,
    out_ref, *, n_steps, H, L, D, Hfp, offs):
  """grid point 0: encoder->reparam->decoder heads; grid point 1: CNF."""
  f32 = jnp.float32
  bf16 = jnp.bfloat16
  B = xe_ref.shape[0]
  pid = pl.program_id(0)

  def bias(name, width):
    o = offs[name]
    return bias_ref[:, o:o + width]          # (1, width), static aligned slice

  x = xe_ref[:, :D]                          # (B, D) f32, used by both paths

  # -------- grid point 0: encoder -> reparameterize -> decoder heads --------
  @pl.when(pid == 0)
  def _vae_path():
    eps = xe_ref[:, D:D + L]
    xb = x.astype(bf16)
    h1 = jnp.maximum(
        jnp.dot(xb, ew1_ref[...], preferred_element_type=f32)
        + bias("eb1", H), 0.0)
    h2 = jnp.maximum(
        jnp.dot(h1.astype(bf16), sw_ref[:, 0:H], preferred_element_type=f32)
        + bias("eb2", H), 0.0)
    enc = (jnp.dot(h2.astype(bf16), sw_ref[:, 2 * LANE:2 * LANE + 2 * L],
                   preferred_element_type=f32) + bias("ebh", 2 * L))
    mu = enc[:, :L]
    logvar = enc[:, L:]
    z = mu + jnp.exp(0.5 * logvar) * eps     # reparameterize_continuous
    d1 = jnp.maximum(
        jnp.dot(z.astype(bf16), dw1_ref[...], preferred_element_type=f32)
        + bias("db1", H), 0.0)
    d2 = jnp.maximum(
        jnp.dot(d1.astype(bf16), sw_ref[:, LANE:LANE + H],
                preferred_element_type=f32) + bias("db2", H), 0.0)
    dec = (jnp.dot(d2.astype(bf16), dwh_ref[...], preferred_element_type=f32)
           + bias("dbh", 2 * D))
    # one lane-dense output block: [mu_x | logvar_x | enc | pad | z | pad]
    out_ref[:, :2 * D] = dec
    out_ref[:, 2 * D:2 * D + 2 * L] = enc
    out_ref[:, 2 * D + LANE:2 * D + LANE + L] = z

  # -------- grid point 1: CNF density pass (fixed-step Euler, exact trace) --
  @pl.when(pid == 1)
  def _cnf_path():
    w1 = cw1_ref[...]                        # (D, Hfp) f32
    w2 = cw2_ref[...]                        # (Hfp, D) f32, pre-scaled by dt
    b2 = bias("cb2", D)                      # (1, D)   pre-scaled by dt
    m = bias("m", Hfp)                       # (1, Hfp) pre-scaled by dt
    xs = x
    lp = jnp.zeros((B, 1), f32)
    for i in range(n_steps):                 # static unroll; t folded into bt
      bt = bias_ref[:, offs["bt"] + i * Hfp:offs["bt"] + (i + 1) * Hfp]
      a = jnp.tanh(jnp.dot(xs, w1, preferred_element_type=f32) + bt)
      xs = xs + jnp.dot(a, w2, preferred_element_type=f32) + b2
      lp = lp - jnp.sum((1.0 - a * a) * m, axis=-1, keepdims=True)
    out_ref[:, :D] = xs
    out_ref[:, D:D + 1] = lp


# ----------------------------------------------------------------------------
# Wrapper
# ----------------------------------------------------------------------------
def _bf16(a):
  return a.astype(jnp.bfloat16)


def _pad_cols(a, n):
  return jnp.pad(a, ((0, 0), (0, n - a.shape[1])))


def _pad_rows(a, n):
  return jnp.pad(a, ((0, n - a.shape[0]), (0, 0)))


def vae_ode_forward(x_nchw, params, eps, *, n_cnf_steps=8):
  """Mirrors VAE_ODE.forward(x, sample=False)."""
  B = x_nchw.shape[0]
  D = int(x_nchw.shape[1] * x_nchw.shape[2] * x_nchw.shape[3])
  H = params["enc_w1"].shape[1]
  L = params["enc_wmu"].shape[1]
  Hf = params["cnf_w1"].shape[1]
  Hfp = _up(Hf, LANE)                 # CNF hidden width padded to a lane group
  BP = _up(max(B, 1), 8)              # batch padded to a full sublane group
  assert H <= LANE and 2 * L <= LANE and 3 * L <= LANE

  f32 = jnp.float32
  dt = 1.0 / n_cnf_steps

  # ---- packed batch slab: [x | eps | pad], rows padded to BP ---------------
  x_flat = x_nchw.reshape(B, D).astype(f32)
  xe = jnp.zeros((BP, D + LANE), f32)
  xe = xe.at[:B, :D].set(x_flat)
  xe = xe.at[:B, D:D + L].set(eps.astype(f32))

  # ---- packed bias / row-vector slab (all segments 128-lane aligned) -------
  offs, NB = _bias_layout(H, L, D, Hfp, n_cnf_steps)
  m_diag = jnp.sum(params["cnf_w1"] * params["cnf_w2"].T, axis=0,
                   keepdims=True)                                   # (1, Hf)
  ts = (jnp.arange(n_cnf_steps, dtype=f32) * dt)[:, None]           # (S, 1)
  bt = params["cnf_b1"] + ts * params["cnf_wt"]                     # (S, Hf)
  segs = {
      "eb1": params["enc_b1"],
      "eb2": params["enc_b2"],
      "ebh": jnp.concatenate([params["enc_bmu"], params["enc_blv"]], axis=1),
      "db1": params["dec_b1"],
      "db2": params["dec_b2"],
      "dbh": jnp.concatenate([params["dec_bxm"], params["dec_bxl"]], axis=1),
      "cb2": dt * params["cnf_b2"],
      "m": _pad_cols(dt * m_diag, Hfp),
      "bt": _pad_cols(bt, Hfp).reshape(1, n_cnf_steps * Hfp),
  }
  bias_slab = jnp.zeros((1, NB), f32)
  for name, vec in segs.items():
    o = offs[name]
    bias_slab = bias_slab.at[:, o:o + vec.shape[1]].set(vec.astype(f32))

  # ---- weights (enc/dec bf16 w/ f32 accumulate; CNF f32) -------------------
  ew1 = _bf16(params["enc_w1"])                                     # (D, H)
  sw = _bf16(jnp.concatenate(
      [_pad_cols(params["enc_w2"], LANE),
       _pad_cols(params["dec_w2"], LANE),
       _pad_cols(jnp.concatenate([params["enc_wmu"], params["enc_wlv"]],
                                 axis=1), LANE)], axis=1))          # (H, 384)
  dw1 = _bf16(params["dec_w1"])                                     # (L, H)
  dwh = _bf16(jnp.concatenate([params["dec_wxm"], params["dec_wxl"]],
                              axis=1))                              # (H, 2D)
  cw1 = _pad_cols(params["cnf_w1"], Hfp).astype(f32)                # (D, Hfp)
  cw2 = _pad_rows(dt * params["cnf_w2"], Hfp).astype(f32)           # (Hfp, D)

  inputs = [xe, bias_slab, ew1, sw, dw1, dwh, cw1, cw2]

  def full_spec(a):
    return pl.BlockSpec(a.shape, lambda i, _nd=a.ndim: (0,) * _nd)

  WOUT = 2 * D + 2 * LANE
  out = pl.pallas_call(
      functools.partial(vae_ode_fused_kernel, n_steps=n_cnf_steps,
                        H=H, L=L, D=D, Hfp=Hfp, offs=offs),
      grid=(2,),
      in_specs=[full_spec(a) for a in inputs],
      out_specs=pl.BlockSpec((None, BP, WOUT), lambda i: (i, 0, 0)),
      out_shape=jax.ShapeDtypeStruct((2, BP, WOUT), f32),
      compiler_params=pltpu.CompilerParams(
          dimension_semantics=("parallel",),
          vmem_limit_bytes=32 * 1024 * 1024),
  )(*inputs)

  vae_blk = out[0, :B]                    # (B, 2D + 256)
  cnf_blk = out[1, :B]
  x_mu = vae_blk[:, :D]
  x_logvar = vae_blk[:, D:2 * D]
  enc = vae_blk[:, 2 * D:2 * D + 2 * L]
  mu, logvar = enc[:, :L], enc[:, L:2 * L]
  z = vae_blk[:, 2 * D + LANE:2 * D + LANE + L]
  x_0 = cnf_blk[:, :D]
  delta_logp = cnf_blk[:, D:D + 1]

  x_stats = {"mu": x_mu, "logvar": x_logvar}
  latent_stats = {"continuous": (mu, logvar)}
  flow_output = {"log_det_jacobian": delta_logp, "x_flow": x_0}
  return x_stats, z, latent_stats, flow_output


# ----------------------------------------------------------------------------
# Deterministic parameter construction
# ----------------------------------------------------------------------------
def init_params(key, input_dim, hidden_dim, latent_dim, cnf_hidden):
  D = int(input_dim[0] * input_dim[1] * input_dim[2])
  H, L, Hf = hidden_dim, latent_dim, cnf_hidden
  keys = jax.random.split(key, 16)

  def lin(k, fan_in, fan_out):
    scale = 1.0 / jnp.sqrt(jnp.float32(fan_in))
    return jax.random.normal(k, (fan_in, fan_out), jnp.float32) * scale

  return {
      # encoder
      "enc_w1": lin(keys[0], D, H), "enc_b1": jnp.zeros((1, H), jnp.float32),
      "enc_w2": lin(keys[1], H, H), "enc_b2": jnp.zeros((1, H), jnp.float32),
      "enc_wmu": lin(keys[2], H, L), "enc_bmu": jnp.zeros((1, L), jnp.float32),
      "enc_wlv": lin(keys[3], H, L), "enc_blv": jnp.zeros((1, L), jnp.float32),
      # decoder
      "dec_w1": lin(keys[4], L, H), "dec_b1": jnp.zeros((1, H), jnp.float32),
      "dec_w2": lin(keys[5], H, H), "dec_b2": jnp.zeros((1, H), jnp.float32),
      "dec_wxm": lin(keys[6], H, D), "dec_bxm": jnp.zeros((1, D), jnp.float32),
      "dec_wxl": lin(keys[7], H, D), "dec_bxl": jnp.zeros((1, D), jnp.float32),
      # CNF dynamics network
      "cnf_w1": lin(keys[8], D, Hf), "cnf_b1": jnp.zeros((1, Hf), jnp.float32),
      "cnf_wt": jax.random.normal(keys[9], (1, Hf), jnp.float32) * 0.1,
      "cnf_w2": lin(keys[10], Hf, D), "cnf_b2": jnp.zeros((1, D), jnp.float32),
  }


# ----------------------------------------------------------------------------
if __name__ == "__main__":
  # Small shapes consistent with the module:
  #   input_dim = (4, 16, 16) -> output_dim = 1024
  #   hidden_dim = 32, latent_spec = {'continuous': 8}
  B, C, Hs, Ws = 2, 4, 16, 16
  HIDDEN, LATENT, CNF_HIDDEN = 32, 8, 64

  key = jax.random.PRNGKey(0)
  k_x, k_eps, k_p = jax.random.split(key, 3)

  x = jax.random.normal(k_x, (B, C, Hs, Ws), jnp.float32)   # NCHW like PyTorch
  eps = jax.random.normal(k_eps, (B, LATENT), jnp.float32)  # reparam noise
  params = init_params(k_p, (C, Hs, Ws), HIDDEN, LATENT, CNF_HIDDEN)

  x_stats, latent_sample, latent_stats, flow_output = jax.jit(
      functools.partial(vae_ode_forward, n_cnf_steps=8))(x, params, eps)

  jax.block_until_ready((x_stats, latent_sample, latent_stats, flow_output))

  # sanity: shapes of every forward output
  assert x_stats["mu"].shape == (B, C * Hs * Ws)
  assert x_stats["logvar"].shape == (B, C * Hs * Ws)
  assert latent_sample.shape == (B, LATENT)
  assert latent_stats["continuous"][0].shape == (B, LATENT)
  assert latent_stats["continuous"][1].shape == (B, LATENT)
  assert flow_output["x_flow"].shape == (B, C * Hs * Ws)
  assert flow_output["log_det_jacobian"].shape == (B, 1)

  print("KERNEL_OK")
</pallas_src>

<mosaic_0001>
module attributes {stable_mosaic.version = 11 : i64} {
  func.func @vae_ode_fused_kernel(%arg0: i32, %arg1: memref<8x1152xf32, #tpu.memory_space<vmem>>, %arg2: memref<1x4864xf32, #tpu.memory_space<vmem>>, %arg3: memref<1024x32xbf16, #tpu.memory_space<vmem>>, %arg4: memref<32x384xbf16, #tpu.memory_space<vmem>>, %arg5: memref<8x32xbf16, #tpu.memory_space<vmem>>, %arg6: memref<32x2048xbf16, #tpu.memory_space<vmem>>, %arg7: memref<1024x128xf32, #tpu.memory_space<vmem>>, %arg8: memref<128x1024xf32, #tpu.memory_space<vmem>>, %arg9: memref<1x8x2304xf32, #tpu.memory_space<vmem>>) attributes {dimension_semantics = [#tpu.dimension_semantics<parallel>], iteration_bounds = array<i64: 2>, scalar_prefetch = 0 : i64, scratch_operands = 0 : i64, tpu.core_type = #tpu.core_type<tc>, window_params = [{pipeline_mode = #tpu.pipeline_mode<synchronous>, transform_indices = @transform_0, window_bounds = array<i64: 8, 1152>}, {pipeline_mode = #tpu.pipeline_mode<synchronous>, transform_indices = @transform_1, window_bounds = array<i64: 1, 4864>}, {pipeline_mode = #tpu.pipeline_mode<synchronous>, transform_indices = @transform_2, window_bounds = array<i64: 1024, 32>}, {pipeline_mode = #tpu.pipeline_mode<synchronous>, transform_indices = @transform_3, window_bounds = array<i64: 32, 384>}, {pipeline_mode = #tpu.pipeline_mode<synchronous>, transform_indices = @transform_4, window_bounds = array<i64: 8, 32>}, {pipeline_mode = #tpu.pipeline_mode<synchronous>, transform_indices = @transform_5, window_bounds = array<i64: 32, 2048>}, {pipeline_mode = #tpu.pipeline_mode<synchronous>, transform_indices = @transform_6, window_bounds = array<i64: 1024, 128>}, {pipeline_mode = #tpu.pipeline_mode<synchronous>, transform_indices = @transform_7, window_bounds = array<i64: 128, 1024>}, {transform_indices = @transform_8, window_bounds = array<i64: 1, 8, 2304>}]} {
    %c0 = arith.constant 0 : index
    %c0_0 = arith.constant 0 : index
    %0 = vector.load %arg1[%c0, %c0_0] : memref<8x1152xf32, #tpu.memory_space<vmem>>, vector<8x1024xf32>
    %c0_i32 = arith.constant 0 : i32
    %1 = arith.cmpi eq, %arg0, %c0_i32 : i32
    %2 = arith.extui %1 : i1 to i32
    %c0_i32_1 = arith.constant 0 : i32
    %3 = arith.cmpi ne, %2, %c0_i32_1 : i32
    scf.if %3 {
      %c0_3 = arith.constant 0 : index
      %c1024 = arith.constant 1024 : index
      %7 = vector.load %arg1[%c0_3, %c1024] : memref<8x1152xf32, #tpu.memory_space<vmem>>, vector<8x8xf32>
      %8 = arith.truncf %0 : vector<8x1024xf32> to vector<8x1024xbf16>
      %c0_4 = arith.constant 0 : index
      %c0_5 = arith.constant 0 : index
      %9 = vector.load %arg3[%c0_4, %c0_5] : memref<1024x32xbf16, #tpu.memory_space<vmem>>, vector<1024x32xbf16>
      %cst = arith.constant dense<0.000000e+00> : vector<8x32xf32>
      %10 = tpu.matmul %8, %9, %cst {dimension_numbers = #tpu.dot_dimension_numbers<[1], [0], [0], [1], [0, 0, 1, 1], [], []>} : vector<8x1024xbf16>, vector<1024x32xbf16>, vector<8x32xf32> -> vector<8x32xf32>
      %c0_6 = arith.constant 0 : index
      %c0_7 = arith.constant 0 : index
      %11 = vector.load %arg2[%c0_6, %c0_7] : memref<1x4864xf32, #tpu.memory_space<vmem>>, vector<1x32xf32>
      %12 = vector.broadcast %11 : vector<1x32xf32> to vector<8x32xf32>
      %13 = arith.addf %10, %12 : vector<8x32xf32>
      %cst_8 = arith.constant 0.000000e+00 : f32
      %14 = vector.broadcast %cst_8 : f32 to vector<8x32xf32>
      %15 = arith.maximumf %13, %14 : vector<8x32xf32>
      %16 = arith.truncf %15 : vector<8x32xf32> to vector<8x32xbf16>
      %c0_9 = arith.constant 0 : index
      %c0_10 = arith.constant 0 : index
      %17 = vector.load %arg4[%c0_9, %c0_10] : memref<32x384xbf16, #tpu.memory_space<vmem>>, vector<32x32xbf16>
      %cst_11 = arith.constant dense<0.000000e+00> : vector<8x32xf32>
      %18 = tpu.matmul %16, %17, %cst_11 {dimension_numbers = #tpu.dot_dimension_numbers<[1], [0], [0], [1], [0, 0, 1, 1], [], []>} : vector<8x32xbf16>, vector<32x32xbf16>, vector<8x32xf32> -> vector<8x32xf32>
      %c0_12 = arith.constant 0 : index
      %c128 = arith.constant 128 : index
      %19 = vector.load %arg2[%c0_12, %c128] : memref<1x4864xf32, #tpu.memory_space<vmem>>, vector<1x32xf32>
      %20 = vector.broadcast %19 : vector<1x32xf32> to vector<8x32xf32>
      %21 = arith.addf %18, %20 : vector<8x32xf32>
      %cst_13 = arith.constant 0.000000e+00 : f32
      %22 = vector.broadcast %cst_13 : f32 to vector<8x32xf32>
      %23 = arith.maximumf %21, %22 : vector<8x32xf32>
      %24 = arith.truncf %23 : vector<8x32xf32> to vector<8x32xbf16>
      %c0_14 = arith.constant 0 : index
      %c256 = arith.constant 256 : index
      %25 = vector.load %arg4[%c0_14, %c256] : memref<32x384xbf16, #tpu.memory_space<vmem>>, vector<32x16xbf16>
      %cst_15 = arith.constant dense<0.000000e+00> : vector<8x16xf32>
      %26 = tpu.matmul %24, %25, %cst_15 {dimension_numbers = #tpu.dot_dimension_numbers<[1], [0], [0], [1], [0, 0, 1, 1], [], []>} : vector<8x32xbf16>, vector<32x16xbf16>, vector<8x16xf32> -> vector<8x16xf32>
      %c0_16 = arith.constant 0 : index
      %c256_17 = arith.constant 256 : index
      %27 = vector.load %arg2[%c0_16, %c256_17] : memref<1x4864xf32, #tpu.memory_space<vmem>>, vector<1x16xf32>
      %28 = vector.broadcast %27 : vector<1x16xf32> to vector<8x16xf32>
      %29 = arith.addf %26, %28 : vector<8x16xf32>
      %30 = vector.extract_strided_slice %29 {offsets = [0, 0], sizes = [8, 8], strides = [1, 1]} : vector<8x16xf32> to vector<8x8xf32>
      %31 = vector.extract_strided_slice %29 {offsets = [0, 8], sizes = [8, 8], strides = [1, 1]} : vector<8x16xf32> to vector<8x8xf32>
      %cst_18 = arith.constant 5.000000e-01 : f32
      %32 = vector.broadcast %cst_18 : f32 to vector<8x8xf32>
      %33 = arith.mulf %32, %31 : vector<8x8xf32>
      %34 = math.exp %33 : vector<8x8xf32>
      %35 = arith.mulf %34, %7 : vector<8x8xf32>
      %36 = arith.addf %30, %35 : vector<8x8xf32>
      %37 = arith.truncf %36 : vector<8x8xf32> to vector<8x8xbf16>
      %c0_19 = arith.constant 0 : index
      %c0_20 = arith.constant 0 : index
      %38 = vector.load %arg5[%c0_19, %c0_20] : memref<8x32xbf16, #tpu.memory_space<vmem>>, vector<8x32xbf16>
      %cst_21 = arith.constant dense<0.000000e+00> : vector<8x32xf32>
      %39 = tpu.matmul %37, %38, %cst_21 {dimension_numbers = #tpu.dot_dimension_numbers<[1], [0], [0], [1], [0, 0, 1, 1], [], []>} : vector<8x8xbf16>, vector<8x32xbf16>, vector<8x32xf32> -> vector<8x32xf32>
      %c0_22 = arith.constant 0 : index
      %c384 = arith.constant 384 : index
      %40 = vector.load %arg2[%c0_22, %c384] : memref<1x4864xf32, #tpu.memory_space<vmem>>, vector<1x32xf32>
      %41 = vector.broadcast %40 : vector<1x32xf32> to vector<8x32xf32>
      %42 = arith.addf %39, %41 : vector<8x32xf32>
      %cst_23 = arith.constant 0.000000e+00 : f32
      %43 = vector.broadcast %cst_23 : f32 to vector<8x32xf32>
      %44 = arith.maximumf %42, %43 : vector<8x32xf32>
      %45 = arith.truncf %44 : vector<8x32xf32> to vector<8x32xbf16>
      %c0_24 = arith.constant 0 : index
      %c128_25 = arith.constant 128 : index
      %46 = vector.load %arg4[%c0_24, %c128_25] : memref<32x384xbf16, #tpu.memory_space<vmem>>, vector<32x32xbf16>
      %cst_26 = arith.constant dense<0.000000e+00> : vector<8x32xf32>
      %47 = tpu.matmul %45, %46, %cst_26 {dimension_numbers = #tpu.dot_dimension_numbers<[1], [0], [0], [1], [0, 0, 1, 1], [], []>} : vector<8x32xbf16>, vector<32x32xbf16>, vector<8x32xf32> -> vector<8x32xf32>
      %c0_27 = arith.constant 0 : index
      %c512 = arith.constant 512 : index
      %48 = vector.load %arg2[%c0_27, %c512] : memref<1x4864xf32, #tpu.memory_space<vmem>>, vector<1x32xf32>
      %49 = vector.broadcast %48 : vector<1x32xf32> to vector<8x32xf32>
      %50 = arith.addf %47, %49 : vector<8x32xf32>
      %cst_28 = arith.constant 0.000000e+00 : f32
      %51 = vector.broadcast %cst_28 : f32 to vector<8x32xf32>
      %52 = arith.maximumf %50, %51 : vector<8x32xf32>
      %53 = arith.truncf %52 : vector<8x32xf32> to vector<8x32xbf16>
      %c0_29 = arith.constant 0 : index
      %c0_30 = arith.constant 0 : index
      %54 = vector.load %arg6[%c0_29, %c0_30] : memref<32x2048xbf16, #tpu.memory_space<vmem>>, vector<32x2048xbf16>
      %cst_31 = arith.constant dense<0.000000e+00> : vector<8x2048xf32>
      %55 = tpu.matmul %53, %54, %cst_31 {dimension_numbers = #tpu.dot_dimension_numbers<[1], [0], [0], [1], [0, 0, 1, 1], [], []>} : vector<8x32xbf16>, vector<32x2048xbf16>, vector<8x2048xf32> -> vector<8x2048xf32>
      %c0_32 = arith.constant 0 : index
      %c640 = arith.constant 640 : index
      %56 = vector.load %arg2[%c0_32, %c640] : memref<1x4864xf32, #tpu.memory_space<vmem>>, vector<1x2048xf32>
      %57 = vector.broadcast %56 : vector<1x2048xf32> to vector<8x2048xf32>
      %58 = arith.addf %55, %57 : vector<8x2048xf32>
      %c0_33 = arith.constant 0 : index
      %c0_34 = arith.constant 0 : index
      %c0_35 = arith.constant 0 : index
      %59 = vector.load %arg9[%c0_33, %c0_34, %c0_35] : memref<1x8x2304xf32, #tpu.memory_space<vmem>>, vector<1x8x2048xf32>
      %60 = vector.shape_cast %59 : vector<1x8x2048xf32> to vector<8x2048xf32>
      %61 = vector.shape_cast %58 : vector<8x2048xf32> to vector<1x8x2048xf32>
      tpu.vector_store %arg9[%c0_33, %c0_34, %c0_35], %61 {strides = array<i32>} : memref<1x8x2304xf32, #tpu.memory_space<vmem>>, vector<1x8x2048xf32>,
      %c0_36 = arith.constant 0 : index
      %c0_37 = arith.constant 0 : index
      %c2048 = arith.constant 2048 : index
      %62 = vector.load %arg9[%c0_36, %c0_37, %c2048] : memref<1x8x2304xf32, #tpu.memory_space<vmem>>, vector<1x8x16xf32>
      %63 = vector.shape_cast %62 : vector<1x8x16xf32> to vector<8x16xf32>
      %64 = vector.shape_cast %29 : vector<8x16xf32> to vector<1x8x16xf32>
      tpu.vector_store %arg9[%c0_36, %c0_37, %c2048], %64 {strides = array<i32>} : memref<1x8x2304xf32, #tpu.memory_space<vmem>>, vector<1x8x16xf32>,
      %c0_38 = arith.constant 0 : index
      %c0_39 = arith.constant 0 : index
      %c2176 = arith.constant 2176 : index
      %65 = vector.load %arg9[%c0_38, %c0_39, %c2176] : memref<1x8x2304xf32, #tpu.memory_space<vmem>>, vector<1x8x8xf32>
      %66 = vector.shape_cast %65 : vector<1x8x8xf32> to vector<8x8xf32>
      %67 = vector.shape_cast %36 : vector<8x8xf32> to vector<1x8x8xf32>
      tpu.vector_store %arg9[%c0_38, %c0_39, %c2176], %67 {strides = array<i32>} : memref<1x8x2304xf32, #tpu.memory_space<vmem>>, vector<1x8x8xf32>,
    } else {
    }
    %c1_i32 = arith.constant 1 : i32
    %4 = arith.cmpi eq, %arg0, %c1_i32 : i32
    %5 = arith.extui %4 : i1 to i32
    %c0_i32_2 = arith.constant 0 : i32
    %6 = arith.cmpi ne, %5, %c0_i32_2 : i32
    scf.if %6 {
      %c0_3 = arith.constant 0 : index
      %c0_4 = arith.constant 0 : index
      %7 = vector.load %arg7[%c0_3, %c0_4] : memref<1024x128xf32, #tpu.memory_space<vmem>>, vector<1024x128xf32>
      %c0_5 = arith.constant 0 : index
      %c0_6 = arith.constant 0 : index
      %8 = vector.load %arg8[%c0_5, %c0_6] : memref<128x1024xf32, #tpu.memory_space<vmem>>, vector<128x1024xf32>
      %c0_7 = arith.constant 0 : index
      %c2688 = arith.constant 2688 : index
      %9 = vector.load %arg2[%c0_7, %c2688] : memref<1x4864xf32, #tpu.memory_space<vmem>>, vector<1x1024xf32>
      %c0_8 = arith.constant 0 : index
      %c3712 = arith.constant 3712 : index
      %10 = vector.load %arg2[%c0_8, %c3712] : memref<1x4864xf32, #tpu.memory_space<vmem>>, vector<1x128xf32>
      %cst = arith.constant 0.000000e+00 : f32
      %11 = vector.broadcast %cst : f32 to vector<8x1xf32>
      %c0_9 = arith.constant 0 : index
      %c3840 = arith.constant 3840 : index
      %12 = vector.load %arg2[%c0_9, %c3840] : memref<1x4864xf32, #tpu.memory_space<vmem>>, vector<1x128xf32>
      %cst_10 = arith.constant dense<0.000000e+00> : vector<8x128xf32>
      %13 = tpu.matmul %0, %7, %cst_10 {dimension_numbers = #tpu.dot_dimension_numbers<[1], [0], [0], [1], [0, 0, 1, 1], [], []>} : vector<8x1024xf32>, vector<1024x128xf32>, vector<8x128xf32> -> vector<8x128xf32>
      %14 = vector.broadcast %12 : vector<1x128xf32> to vector<8x128xf32>
      %15 = arith.addf %13, %14 : vector<8x128xf32>
      %16 = math.tanh %15 : vector<8x128xf32>
      %cst_11 = arith.constant dense<0.000000e+00> : vector<8x1024xf32>
      %17 = tpu.matmul %16, %8, %cst_11 {dimension_numbers = #tpu.dot_dimension_numbers<[1], [0], [0], [1], [0, 0, 1, 1], [], []>} : vector<8x128xf32>, vector<128x1024xf32>, vector<8x1024xf32> -> vector<8x1024xf32>
      %18 = arith.addf %0, %17 : vector<8x1024xf32>
      %19 = vector.broadcast %9 : vector<1x1024xf32> to vector<8x1024xf32>
      %20 = arith.addf %18, %19 : vector<8x1024xf32>
      %21 = arith.mulf %16, %16 : vector<8x128xf32>
      %cst_12 = arith.constant 1.000000e+00 : f32
      %22 = vector.broadcast %cst_12 : f32 to vector<8x128xf32>
      %23 = arith.subf %22, %21 : vector<8x128xf32>
      %24 = vector.broadcast %10 : vector<1x128xf32> to vector<8x128xf32>
      %25 = arith.mulf %23, %24 : vector<8x128xf32>
      %cst_13 = arith.constant dense<0.000000e+00> : vector<8xf32>
      %26 = vector.multi_reduction <add>, %25, %cst_13 [1] : vector<8x128xf32> to vector<8xf32>
      %27 = vector.shape_cast %26 : vector<8xf32> to vector<8x1xf32>
      %28 = arith.subf %11, %27 : vector<8x1xf32>
      %c0_14 = arith.constant 0 : index
      %c3968 = arith.constant 3968 : index
      %29 = vector.load %arg2[%c0_14, %c3968] : memref<1x4864xf32, #tpu.memory_space<vmem>>, vector<1x128xf32>
      %cst_15 = arith.constant dense<0.000000e+00> : vector<8x128xf32>
      %30 = tpu.matmul %20, %7, %cst_15 {dimension_numbers = #tpu.dot_dimension_numbers<[1], [0], [0], [1], [0, 0, 1, 1], [], []>} : vector<8x1024xf32>, vector<1024x128xf32>, vector<8x128xf32> -> vector<8x128xf32>
      %31 = vector.broadcast %29 : vector<1x128xf32> to vector<8x128xf32>
      %32 = arith.addf %30, %31 : vector<8x128xf32>
      %33 = math.tanh %32 : vector<8x128xf32>
      %cst_16 = arith.constant dense<0.000000e+00> : vector<8x1024xf32>
      %34 = tpu.matmul %33, %8, %cst_16 {dimension_numbers = #tpu.dot_dimension_numbers<[1], [0], [0], [1], [0, 0, 1, 1], [], []>} : vector<8x128xf32>, vector<128x1024xf32>, vector<8x1024xf32> -> vector<8x1024xf32>
      %35 = arith.addf %20, %34 : vector<8x1024xf32>
      %36 = vector.broadcast %9 : vector<1x1024xf32> to vector<8x1024xf32>
      %37 = arith.addf %35, %36 : vector<8x1024xf32>
      %38 = arith.mulf %33, %33 : vector<8x128xf32>
      %cst_17 = arith.constant 1.000000e+00 : f32
      %39 = vector.broadcast %cst_17 : f32 to vector<8x128xf32>
      %40 = arith.subf %39, %38 : vector<8x128xf32>
      %41 = vector.broadcast %10 : vector<1x128xf32> to vector<8x128xf32>
      %42 = arith.mulf %40, %41 : vector<8x128xf32>
      %cst_18 = arith.constant dense<0.000000e+00> : vector<8xf32>
      %43 = vector.multi_reduction <add>, %42, %cst_18 [1] : vector<8x128xf32> to vector<8xf32>
      %44 = vector.shape_cast %43 : vector<8xf32> to vector<8x1xf32>
      %45 = arith.subf %28, %44 : vector<8x1xf32>
      %c0_19 = arith.constant 0 : index
      %c4096 = arith.constant 4096 : index
      %46 = vector.load %arg2[%c0_19, %c4096] : memref<1x4864xf32, #tpu.memory_space<vmem>>, vector<1x128xf32>
      %cst_20 = arith.constant dense<0.000000e+00> : vector<8x128xf32>
      %47 = tpu.matmul %37, %7, %cst_20 {dimension_numbers = #tpu.dot_dimension_numbers<[1], [0], [0], [1], [0, 0, 1, 1], [], []>} : vector<8x1024xf32>, vector<1024x128xf32>, vector<8x128xf32> -> vector<8x128xf32>
      %48 = vector.broadcast %46 : vector<1x128xf32> to vector<8x128xf32>
      %49 = arith.addf %47, %48 : vector<8x128xf32>
      %50 = math.tanh %49 : vector<8x128xf32>
      %cst_21 = arith.constant dense<0.000000e+00> : vector<8x1024xf32>
      %51 = tpu.matmul %50, %8, %cst_21 {dimension_numbers = #tpu.dot_dimension_numbers<[1], [0], [0], [1], [0, 0, 1, 1], [], []>} : vector<8x128xf32>, vector<128x1024xf32>, vector<8x1024xf32> -> vector<8x1024xf32>
      %52 = arith.addf %37, %51 : vector<8x1024xf32>
      %53 = vector.broadcast %9 : vector<1x1024xf32> to vector<8x1024xf32>
      %54 = arith.addf %52, %53 : vector<8x1024xf32>
      %55 = arith.mulf %50, %50 : vector<8x128xf32>
      %cst_22 = arith.constant 1.000000e+00 : f32
      %56 = vector.broadcast %cst_22 : f32 to vector<8x128xf32>
      %57 = arith.subf %56, %55 : vector<8x128xf32>
      %58 = vector.broadcast %10 : vector<1x128xf32> to vector<8x128xf32>
      %59 = arith.mulf %57, %58 : vector<8x128xf32>
      %cst_23 = arith.constant dense<0.000000e+00> : vector<8xf32>
      %60 = vector.multi_reduction <add>, %59, %cst_23 [1] : vector<8x128xf32> to vector<8xf32>
      %61 = vector.shape_cast %60 : vector<8xf32> to vector<8x1xf32>
      %62 = arith.subf %45, %61 : vector<8x1xf32>
      %c0_24 = arith.constant 0 : index
      %c4224 = arith.constant 4224 : index
      %63 = vector.load %arg2[%c0_24, %c4224] : memref<1x4864xf32, #tpu.memory_space<vmem>>, vector<1x128xf32>
      %cst_25 = arith.constant dense<0.000000e+00> : vector<8x128xf32>
      %64 = tpu.matmul %54, %7, %cst_25 {dimension_numbers = #tpu.dot_dimension_numbers<[1], [0], [0], [1], [0, 0, 1, 1], [], []>} : vector<8x1024xf32>, vector<1024x128xf32>, vector<8x128xf32> -> vector<8x128xf32>
      %65 = vector.broadcast %63 : vector<1x128xf32> to vector<8x128xf32>
      %66 = arith.addf %64, %65 : vector<8x128xf32>
      %67 = math.tanh %66 : vector<8x128xf32>
      %cst_26 = arith.constant dense<0.000000e+00> : vector<8x1024xf32>
      %68 = tpu.matmul %67, %8, %cst_26 {dimension_numbers = #tpu.dot_dimension_numbers<[1], [0], [0], [1], [0, 0, 1, 1], [], []>} : vector<8x128xf32>, vector<128x1024xf32>, vector<8x1024xf32> -> vector<8x1024xf32>
      %69 = arith.addf %54, %68 : vector<8x1024xf32>
      %70 = vector.broadcast %9 : vector<1x1024xf32> to vector<8x1024xf32>
      %71 = arith.addf %69, %70 : vector<8x1024xf32>
      %72 = arith.mulf %67, %67 : vector<8x128xf32>
      %cst_27 = arith.constant 1.000000e+00 : f32
      %73 = vector.broadcast %cst_27 : f32 to vector<8x128xf32>
      %74 = arith.subf %73, %72 : vector<8x128xf32>
      %75 = vector.broadcast %10 : vector<1x128xf32> to vector<8x128xf32>
      %76 = arith.mulf %74, %75 : vector<8x128xf32>
      %cst_28 = arith.constant dense<0.000000e+00> : vector<8xf32>
      %77 = vector.multi_reduction <add>, %76, %cst_28 [1] : vector<8x128xf32> to vector<8xf32>
      %78 = vector.shape_cast %77 : vector<8xf32> to vector<8x1xf32>
      %79 = arith.subf %62, %78 : vector<8x1xf32>
      %c0_29 = arith.constant 0 : index
      %c4352 = arith.constant 4352 : index
      %80 = vector.load %arg2[%c0_29, %c4352] : memref<1x4864xf32, #tpu.memory_space<vmem>>, vector<1x128xf32>
      %cst_30 = arith.constant dense<0.000000e+00> : vector<8x128xf32>
      %81 = tpu.matmul %71, %7, %cst_30 {dimension_numbers = #tpu.dot_dimension_numbers<[1], [0], [0], [1], [0, 0, 1, 1], [], []>} : vector<8x1024xf32>, vector<1024x128xf32>, vector<8x128xf32> -> vector<8x128xf32>
      %82 = vector.broadcast %80 : vector<1x128xf32> to vector<8x128xf32>
      %83 = arith.addf %81, %82 : vector<8x128xf32>
      %84 = math.tanh %83 : vector<8x128xf32>
      %cst_31 = arith.constant dense<0.000000e+00> : vector<8x1024xf32>
      %85 = tpu.matmul %84, %8, %cst_31 {dimension_numbers = #tpu.dot_dimension_numbers<[1], [0], [0], [1], [0, 0, 1, 1], [], []>} : vector<8x128xf32>, vector<128x1024xf32>, vector<8x1024xf32> -> vector<8x1024xf32>
      %86 = arith.addf %71, %85 : vector<8x1024xf32>
      %87 = vector.broadcast %9 : vector<1x1024xf32> to vector<8x1024xf32>
      %88 = arith.addf %86, %87 : vector<8x1024xf32>
      %89 = arith.mulf %84, %84 : vector<8x128xf32>
      %cst_32 = arith.constant 1.000000e+00 : f32
      %90 = vector.broadcast %cst_32 : f32 to vector<8x128xf32>
      %91 = arith.subf %90, %89 : vector<8x128xf32>
      %92 = vector.broadcast %10 : vector<1x128xf32> to vector<8x128xf32>
      %93 = arith.mulf %91, %92 : vector<8x128xf32>
      %cst_33 = arith.constant dense<0.000000e+00> : vector<8xf32>
      %94 = vector.multi_reduction <add>, %93, %cst_33 [1] : vector<8x128xf32> to vector<8xf32>
      %95 = vector.shape_cast %94 : vector<8xf32> to vector<8x1xf32>
      %96 = arith.subf %79, %95 : vector<8x1xf32>
      %c0_34 = arith.constant 0 : index
      %c4480 = arith.constant 4480 : index
      %97 = vector.load %arg2[%c0_34, %c4480] : memref<1x4864xf32, #tpu.memory_space<vmem>>, vector<1x128xf32>
      %cst_35 = arith.constant dense<0.000000e+00> : vector<8x128xf32>
      %98 = tpu.matmul %88, %7, %cst_35 {dimension_numbers = #tpu.dot_dimension_numbers<[1], [0], [0], [1], [0, 0, 1, 1], [], []>} : vector<8x1024xf32>, vector<1024x128xf32>, vector<8x128xf32> -> vector<8x128xf32>
      %99 = vector.broadcast %97 : vector<1x128xf32> to vector<8x128xf32>
      %100 = arith.addf %98, %99 : vector<8x128xf32>
      %101 = math.tanh %100 : vector<8x128xf32>
      %cst_36 = arith.constant dense<0.000000e+00> : vector<8x1024xf32>
      %102 = tpu.matmul %101, %8, %cst_36 {dimension_numbers = #tpu.dot_dimension_numbers<[1], [0], [0], [1], [0, 0, 1, 1], [], []>} : vector<8x128xf32>, vector<128x1024xf32>, vector<8x1024xf32> -> vector<8x1024xf32>
      %103 = arith.addf %88, %102 : vector<8x1024xf32>
      %104 = vector.broadcast %9 : vector<1x1024xf32> to vector<8x1024xf32>
      %105 = arith.addf %103, %104 : vector<8x1024xf32>
      %106 = arith.mulf %101, %101 : vector<8x128xf32>
      %cst_37 = arith.constant 1.000000e+00 : f32
      %107 = vector.broadcast %cst_37 : f32 to vector<8x128xf32>
      %108 = arith.subf %107, %106 : vector<8x128xf32>
      %109 = vector.broadcast %10 : vector<1x128xf32> to vector<8x128xf32>
      %110 = arith.mulf %108, %109 : vector<8x128xf32>
      %cst_38 = arith.constant dense<0.000000e+00> : vector<8xf32>
      %111 = vector.multi_reduction <add>, %110, %cst_38 [1] : vector<8x128xf32> to vector<8xf32>
      %112 = vector.shape_cast %111 : vector<8xf32> to vector<8x1xf32>
      %113 = arith.subf %96, %112 : vector<8x1xf32>
      %c0_39 = arith.constant 0 : index
      %c4608 = arith.constant 4608 : index
      %114 = vector.load %arg2[%c0_39, %c4608] : memref<1x4864xf32, #tpu.memory_space<vmem>>, vector<1x128xf32>
      %cst_40 = arith.constant dense<0.000000e+00> : vector<8x128xf32>
      %115 = tpu.matmul %105, %7, %cst_40 {dimension_numbers = #tpu.dot_dimension_numbers<[1], [0], [0], [1], [0, 0, 1, 1], [], []>} : vector<8x1024xf32>, vector<1024x128xf32>, vector<8x128xf32> -> vector<8x128xf32>
      %116 = vector.broadcast %114 : vector<1x128xf32> to vector<8x128xf32>
      %117 = arith.addf %115, %116 : vector<8x128xf32>
      %118 = math.tanh %117 : vector<8x128xf32>
      %cst_41 = arith.constant dense<0.000000e+00> : vector<8x1024xf32>
      %119 = tpu.matmul %118, %8, %cst_41 {dimension_numbers = #tpu.dot_dimension_numbers<[1], [0], [0], [1], [0, 0, 1, 1], [], []>} : vector<8x128xf32>, vector<128x1024xf32>, vector<8x1024xf32> -> vector<8x1024xf32>
      %120 = arith.addf %105, %119 : vector<8x1024xf32>
      %121 = vector.broadcast %9 : vector<1x1024xf32> to vector<8x1024xf32>
      %122 = arith.addf %120, %121 : vector<8x1024xf32>
      %123 = arith.mulf %118, %118 : vector<8x128xf32>
      %cst_42 = arith.constant 1.000000e+00 : f32
      %124 = vector.broadcast %cst_42 : f32 to vector<8x128xf32>
      %125 = arith.subf %124, %123 : vector<8x128xf32>
      %126 = vector.broadcast %10 : vector<1x128xf32> to vector<8x128xf32>
      %127 = arith.mulf %125, %126 : vector<8x128xf32>
      %cst_43 = arith.constant dense<0.000000e+00> : vector<8xf32>
      %128 = vector.multi_reduction <add>, %127, %cst_43 [1] : vector<8x128xf32> to vector<8xf32>
      %129 = vector.shape_cast %128 : vector<8xf32> to vector<8x1xf32>
      %130 = arith.subf %113, %129 : vector<8x1xf32>
      %c0_44 = arith.constant 0 : index
      %c4736 = arith.constant 4736 : index
      %131 = vector.load %arg2[%c0_44, %c4736] : memref<1x4864xf32, #tpu.memory_space<vmem>>, vector<1x128xf32>
      %cst_45 = arith.constant dense<0.000000e+00> : vector<8x128xf32>
      %132 = tpu.matmul %122, %7, %cst_45 {dimension_numbers = #tpu.dot_dimension_numbers<[1], [0], [0], [1], [0, 0, 1, 1], [], []>} : vector<8x1024xf32>, vector<1024x128xf32>, vector<8x128xf32> -> vector<8x128xf32>
      %133 = vector.broadcast %131 : vector<1x128xf32> to vector<8x128xf32>
      %134 = arith.addf %132, %133 : vector<8x128xf32>
      %135 = math.tanh %134 : vector<8x128xf32>
      %cst_46 = arith.constant dense<0.000000e+00> : vector<8x1024xf32>
      %136 = tpu.matmul %135, %8, %cst_46 {dimension_numbers = #tpu.dot_dimension_numbers<[1], [0], [0], [1], [0, 0, 1, 1], [], []>} : vector<8x128xf32>, vector<128x1024xf32>, vector<8x1024xf32> -> vector<8x1024xf32>
      %137 = arith.addf %122, %136 : vector<8x1024xf32>
      %138 = vector.broadcast %9 : vector<1x1024xf32> to vector<8x1024xf32>
      %139 = arith.addf %137, %138 : vector<8x1024xf32>
      %140 = arith.mulf %135, %135 : vector<8x128xf32>
      %cst_47 = arith.constant 1.000000e+00 : f32
      %141 = vector.broadcast %cst_47 : f32 to vector<8x128xf32>
      %142 = arith.subf %141, %140 : vector<8x128xf32>
      %143 = vector.broadcast %10 : vector<1x128xf32> to vector<8x128xf32>
      %144 = arith.mulf %142, %143 : vector<8x128xf32>
      %cst_48 = arith.constant dense<0.000000e+00> : vector<8xf32>
      %145 = vector.multi_reduction <add>, %144, %cst_48 [1] : vector<8x128xf32> to vector<8xf32>
      %146 = vector.shape_cast %145 : vector<8xf32> to vector<8x1xf32>
      %147 = arith.subf %130, %146 : vector<8x1xf32>
      %c0_49 = arith.constant 0 : index
      %c0_50 = arith.constant 0 : index
      %c0_51 = arith.constant 0 : index
      %148 = vector.load %arg9[%c0_49, %c0_50, %c0_51] : memref<1x8x2304xf32, #tpu.memory_space<vmem>>, vector<1x8x1024xf32>
      %149 = vector.shape_cast %148 : vector<1x8x1024xf32> to vector<8x1024xf32>
      %150 = vector.shape_cast %139 : vector<8x1024xf32> to vector<1x8x1024xf32>
      tpu.vector_store %arg9[%c0_49, %c0_50, %c0_51], %150 {strides = array<i32>} : memref<1x8x2304xf32, #tpu.memory_space<vmem>>, vector<1x8x1024xf32>,
      %c0_52 = arith.constant 0 : index
      %c0_53 = arith.constant 0 : index
      %c1024 = arith.constant 1024 : index
      %151 = vector.load %arg9[%c0_52, %c0_53, %c1024] : memref<1x8x2304xf32, #tpu.memory_space<vmem>>, vector<1x8x1xf32>
      %152 = vector.shape_cast %151 : vector<1x8x1xf32> to vector<8x1xf32>
      %153 = vector.shape_cast %147 : vector<8x1xf32> to vector<1x8x1xf32>
      tpu.vector_store %arg9[%c0_52, %c0_53, %c1024], %153 {strides = array<i32>} : memref<1x8x2304xf32, #tpu.memory_space<vmem>>, vector<1x8x1xf32>,
    } else {
    }
    return
  }
  func.func @transform_0(%arg0: i32) -> (i32, i32) {
    %c0_i32 = arith.constant 0 : i32
    %c0_i32_0 = arith.constant 0 : i32
    %c0_i32_1 = arith.constant 0 : i32
    return %c0_i32, %c0_i32_0 : i32, i32
  }
  func.func @transform_1(%arg0: i32) -> (i32, i32) {
    %c0_i32 = arith.constant 0 : i32
    %c0_i32_0 = arith.constant 0 : i32
    %c0_i32_1 = arith.constant 0 : i32
    return %c0_i32, %c0_i32_0 : i32, i32
  }
  func.func @transform_2(%arg0: i32) -> (i32, i32) {
    %c0_i32 = arith.constant 0 : i32
    %c0_i32_0 = arith.constant 0 : i32
    %c0_i32_1 = arith.constant 0 : i32
    return %c0_i32, %c0_i32_0 : i32, i32
  }
  func.func @transform_3(%arg0: i32) -> (i32, i32) {
    %c0_i32 = arith.constant 0 : i32
    %c0_i32_0 = arith.constant 0 : i32
    %c0_i32_1 = arith.constant 0 : i32
    return %c0_i32, %c0_i32_0 : i32, i32
  }
  func.func @transform_4(%arg0: i32) -> (i32, i32) {
    %c0_i32 = arith.constant 0 : i32
    %c0_i32_0 = arith.constant 0 : i32
    %c0_i32_1 = arith.constant 0 : i32
    return %c0_i32, %c0_i32_0 : i32, i32
  }
  func.func @transform_5(%arg0: i32) -> (i32, i32) {
    %c0_i32 = arith.constant 0 : i32
    %c0_i32_0 = arith.constant 0 : i32
    %c0_i32_1 = arith.constant 0 : i32
    return %c0_i32, %c0_i32_0 : i32, i32
  }
  func.func @transform_6(%arg0: i32) -> (i32, i32) {
    %c0_i32 = arith.constant 0 : i32
    %c0_i32_0 = arith.constant 0 : i32
    %c0_i32_1 = arith.constant 0 : i32
    return %c0_i32, %c0_i32_0 : i32, i32
  }
  func.func @transform_7(%arg0: i32) -> (i32, i32) {
    %c0_i32 = arith.constant 0 : i32
    %c0_i32_0 = arith.constant 0 : i32
    %c0_i32_1 = arith.constant 0 : i32
    return %c0_i32, %c0_i32_0 : i32, i32
  }
  func.func @transform_8(%arg0: i32) -> (i32, i32, i32) {
    %c0_i32 = arith.constant 0 : i32
    %c0_i32_0 = arith.constant 0 : i32
    %c0_i32_1 = arith.constant 0 : i32
    return %arg0, %c0_i32, %c0_i32_0 : i32, i32, i32
  }
}

</mosaic_0001>

<bundles_post_ra>
// kernel: vae_ode_forward.1
= control target key start
LH: loop header
LB: loop body
LE: loop exit
PB: predicated region body
PF: predicated region fallthrough
CT: control target
= control target key end

     0   :  { %s10602_s27 = smov 0   ;;  %s13562_s0 = inlined_call_operand.vmem [shape: f32[8,1152], index: 0, kind: input, shape index: {}]   ;;  %s13563_s1 = inlined_call_operand.vmem [shape: f32[1,4864], index: 1, kind: input, shape index: {}]   ;;  %s13564_s2 = inlined_call_operand.vmem [shape: bf16[1024,32], index: 2, kind: input, shape index: {}]   ;;  %s13565_s3 = inlined_call_operand.vmem [shape: bf16[32,384], index: 3, kind: input, shape index: {}]   ;;  %s13566_s4 = inlined_call_operand.vmem [shape: bf16[8,32], index: 4, kind: input, shape index: {}]   ;;  %s13567_s5 = inlined_call_operand.vmem [shape: bf16[32,2048], index: 5, kind: input, shape index: {}]   ;;  %s13568_s6 = inlined_call_operand.vmem [shape: f32[1024,128], index: 6, kind: input, shape index: {}]   ;;  %s13569_s7 = inlined_call_operand.vmem [shape: f32[128,1024], index: 7, kind: input, shape index: {}]   ;;  %s13570_s8 = inlined_call_operand.vmem [shape: f32[2,8,2304], index: 8, kind: output, shape index: {}]  }
   0x1 LB: > { %s10608_s28 = sadd.s32 4294967295, %s10549_s27   ;;  %p7007_p0 = scmp.ge.s32.totalorder %s10549_s27, 1  ;;  %s10549_s27 = sphi %s10602_s27, %s18_s27  }
   0x2   : > { %p252_p1 = scmp.lt.s32.totalorder %s10549_s27, 3 }
   0x4   : > { %p253_p2 = pnand %p7007_p0, %p252_p1 }
   0x6   : > { %256 = sbr.rel (%p253_p2) target bundleno = 5465 (0x1559), region = 52 }
   0xd   : > { %p281_p3 = scmp.lt.s32.totalorder %s10608_s28, 1  ;;  %v10616_v0 = vld [vmem:[%s13562_s0] sm:$0xff]  ;;  %v10621_v1 = vld [vmem:[%s13562_s0 + $0x8] sm:$0xff]  ;;  %v10626_v2 = vld [vmem:[%s13562_s0 + $0x10] sm:$0xff]  ;;  %p7009_p4 = scmp.ne.s32.totalorder %s10608_s28, 0 }
   0xe   : > { %v10631_v3 = vld [vmem:[%s13562_s0 + $0x18] sm:$0xff]  ;;  %v10636_v4 = vld [vmem:[%s13562_s0 + $0x20] sm:$0xff]  ;;  %v10641_v5 = vld [vmem:[%s13562_s0 + $0x28] sm:$0xff]  ;;  %v301_v9 = vpack.c.bf16 (!%p7009_p4), %v10621_v1, %v10621_v1  ;;  %v300_v42 = vpack.c.bf16 (!%p7009_p4), %v10616_v0, %v10616_v0  ;;  %v302_v43 = vpack.c.bf16 (!%p7009_p4), %v10626_v2, %v10626_v2  ;;  %vm10552_vm0 = vmmov (!%p7009_p4), 0   ;;  %s10553_s15 = smov (!%p7009_p4), 8  }
   0xf   : > { %13845 = vst [vmem:[#allocation2_spill] sm:$0xff] %v10636_v4  ;;  %13846 = vst [vmem:[#allocation3_spill] sm:$0xff] %v10641_v5  ;;  %s282_s19 = scalar_select %p281_p3, %s10608_s28, 1  ;;  %v10647_v6 = vld [vmem:[%s13562_s0 + $0x30] sm:$0xff]  ;;  %v10652_v7 = vld [vmem:[%s13562_s0 + $0x38] sm:$0xff] }
  0x10   : > { %13847 = vst [vmem:[#allocation4_spill] sm:$0xff] %v10647_v6  ;;  %13848 = vst [vmem:[#allocation5_spill] sm:$0xff] %v10652_v7  ;;  %298 = sbr.rel (%p7009_p4) target bundleno = 1549 (0x60d), region = 56  ;;  %v10453_v8 = vld [vmem:[%s13564_s2 + $0x40] sm:$0xff] (!%p7009_p4)   ;;  %v303_v10 = vpack.c.bf16 (!%p7009_p4), %v10631_v3, %v10631_v3  ;;  %859 = vmatprep.mubr.bf16.mxu0 (!%p7009_p4), %v301_v9  ;;  %v10457_v14 = vld [vmem:[%s13564_s2 + $0x48] sm:$0xff] (!%p7009_p4)   ;;  %v305_v46 = vpack.c.bf16 (!%p7009_p4), %v10641_v5, %v10641_v5  ;;  %v307_v48 = vpack.c.bf16 (!%p7009_p4), %v10652_v7, %v10652_v7  ;;  %vm1012_vm1 = vcmask (!%p7009_p4), 261120  }
  0x11   : > { %s10438_s24 = smul.u32 144, %s282_s19  ;;  %v10454_v11 = vld [vmem:[%s13564_s2 + $0xc0] sm:$0xff] (!%p7009_p4)   ;;  %7141 = vmatprep.subr.bf16.mxu0 (!%p7009_p4), %v10453_v8  ;;  %v10458_v15 = vld [vmem:[%s13564_s2 + $0xc8] sm:$0xff] (!%p7009_p4)   ;;  %v10461_v18 = vld [vmem:[%s13564_s2 + $0x50] sm:$0xff] (!%p7009_p4)   ;;  %vm1150_vm2 = vcmask (!%p7009_p4), 1043456   ;;  %vm1887_vm3 = vcmask (!%p7009_p4), 130048  }
  0x12   : > { %v10455_v12 = vld [vmem:[%s13564_s2] sm:$0xff] (!%p7009_p4)   ;;  %7163 = vmatprep.subr.bf16.mxu1 (!%p7009_p4), %v10454_v11  ;;  %899 = vmatprep.mubr.bf16.mxu1 (!%p7009_p4), %v303_v10  ;;  %v10459_v16 = vld [vmem:[%s13564_s2 + $0x8] sm:$0xff] (!%p7009_p4)   ;;  %v10462_v19 = vld [vmem:[%s13564_s2 + $0xd0] sm:$0xff] (!%p7009_p4)   ;;  %vm1146_vm4 = vcmask (!%p7009_p4), 64512  }
  0x13   : > { %s10657_s29 = scalar_lea.vmem %s13570_s8, %s10438_s24  ;;  %v10456_v13 = vld [vmem:[%s13564_s2 + $0x80] sm:$0xff] (!%p7009_p4)   ;;  %7142 = vmatpush3.bf16.msra.mxu0 (!%p7009_p4), %v10455_v12  ;;  %v10460_v17 = vld [vmem:[%s13564_s2 + $0x88] sm:$0xff] (!%p7009_p4)   ;;  %v10463_v20 = vld [vmem:[%s13564_s2 + $0x10] sm:$0xff] (!%p7009_p4)   ;;  %s10554_s24 = smov (!%p7009_p4), 120  }
  0x14   : > { %7164 = vmatpush3.bf16.msra.mxu1 (!%p7009_p4), %v10456_v13  ;;  %7143 = vmatprep.subr.bf16.mxu0 (!%p7009_p4), %v10457_v14  ;;  %v10464_v21 = vld [vmem:[%s13564_s2 + $0x90] sm:$0xff] (!%p7009_p4)   ;;  %v10465_v22 = vld [vmem:[%s13564_s2 + $0x58] sm:$0xff] (!%p7009_p4)   ;;  %v10469_v26 = vld [vmem:[%s13564_s2 + $0x60] sm:$0xff] (!%p7009_p4)  }
  0x15   : > { %7165 = vmatprep.subr.bf16.mxu1 (!%p7009_p4), %v10458_v15  ;;  %v10466_v23 = vld [vmem:[%s13564_s2 + $0xd8] sm:$0xff] (!%p7009_p4)   ;;  %v10470_v27 = vld [vmem:[%s13564_s2 + $0xe0] sm:$0xff] (!%p7009_p4)   ;;  %v10473_v30 = vld [vmem:[%s13564_s2 + $0x68] sm:$0xff] (!%p7009_p4)  }
  0x16   : > { %v10467_v24 = vld [vmem:[%s13564_s2 + $0x18] sm:$0xff] (!%p7009_p4)   ;;  %v10471_v28 = vld [vmem:[%s13564_s2 + $0x20] sm:$0xff] (!%p7009_p4)   ;;  %v10474_v31 = vld [vmem:[%s13564_s2 + $0xe8] sm:$0xff] (!%p7009_p4)  }
  0x17   : > { %7144 = vmatpush3.bf16.msra.mxu0 %v10459_v16  ;;  %v10468_v25 = vld [vmem:[%s13564_s2 + $0x98] sm:$0xff]   ;;  %v10472_v29 = vld [vmem:[%s13564_s2 + $0xa0] sm:$0xff]   ;;  %v10475_v32 = vld [vmem:[%s13564_s2 + $0x28] sm:$0xff]  }
  0x18   : > { %7166 = vmatpush3.bf16.msra.mxu1 %v10460_v17  ;;  %7145 = vmatprep.subr.bf16.mxu0 %v10461_v18  ;;  %v10476_v33 = vld [vmem:[%s13564_s2 + $0xa8] sm:$0xff]   ;;  %v10477_v34 = vld [vmem:[%s13564_s2 + $0x70] sm:$0xff]   ;;  %v10481_v38 = vld [vmem:[%s13564_s2 + $0x78] sm:$0xff]  }
  0x19   : > { %7167 = vmatprep.subr.bf16.mxu1 %v10462_v19  ;;  %v10478_v35 = vld [vmem:[%s13564_s2 + $0xf0] sm:$0xff]   ;;  %v10482_v39 = vld [vmem:[%s13564_s2 + $0xf8] sm:$0xff]   ;;  %v10485_v44 = vld [vmem:[%s13564_s2 + $0x140] sm:$0xff]  }
  0x1a   : > { %v10479_v36 = vld [vmem:[%s13564_s2 + $0x30] sm:$0xff]   ;;  %v10483_v40 = vld [vmem:[%s13564_s2 + $0x38] sm:$0xff]   ;;  %v10486_v45 = vld [vmem:[%s13564_s2 + $0x1c0] sm:$0xff]  }
  0x1b   : > { %7146 = vmatpush3.bf16.msra.mxu0 %v10463_v20  ;;  %v10480_v37 = vld [vmem:[%s13564_s2 + $0xb0] sm:$0xff]   ;;  %v10484_v41 = vld [vmem:[%s13564_s2 + $0xb8] sm:$0xff]   ;;  %v10487_v47 = vld [vmem:[%s13564_s2 + $0x100] sm:$0xff]  }
  0x1c   : > { %7168 = vmatpush3.bf16.msra.mxu1 %v10464_v21  ;;  %7147 = vmatprep.subr.bf16.mxu0 %v10465_v22  ;;  %v10488_v49 = vld [vmem:[%s13564_s2 + $0x180] sm:$0xff]   ;;  %v10489_v50 = vld [vmem:[%s13564_s2 + $0x148] sm:$0xff]   ;;  %v10493_v54 = vld [vmem:[%s13564_s2 + $0x150] sm:$0xff]   ;;  %v304_v22 = vpack.c.bf16 %v10636_v4, %v10636_v4 }
  0x1d   : > { %7169 = vmatprep.subr.bf16.mxu1 %v10466_v23  ;;  %v10490_v51 = vld [vmem:[%s13564_s2 + $0x1c8] sm:$0xff]   ;;  %v10494_v55 = vld [vmem:[%s13564_s2 + $0x1d0] sm:$0xff]   ;;  %v10497_v58 = vld [vmem:[%s13564_s2 + $0x158] sm:$0xff]   ;;  %v306_v23 = vpack.c.bf16 %v10647_v6, %v10647_v6 }
  0x1e   : > { %v10491_v52 = vld [vmem:[%s13564_s2 + $0x108] sm:$0xff]   ;;  %v10495_v56 = vld [vmem:[%s13564_s2 + $0x110] sm:$0xff]   ;;  %v10498_v59 = vld [vmem:[%s13564_s2 + $0x1d8] sm:$0xff]  }
  0x1f   : > { %7148 = vmatpush3.bf16.msra.mxu0 %v10467_v24  ;;  %v10492_v53 = vld [vmem:[%s13564_s2 + $0x188] sm:$0xff]   ;;  %v10496_v57 = vld [vmem:[%s13564_s2 + $0x190] sm:$0xff]   ;;  %v10499_v60 = vld [vmem:[%s13564_s2 + $0x118] sm:$0xff]  }
  0x20   : > { %7170 = vmatpush3.bf16.msra.mxu1 %v10468_v25  ;;  %7149 = vmatprep.subr.bf16.mxu0 %v10469_v26  ;;  %v10500_v61 = vld [vmem:[%s13564_s2 + $0x198] sm:$0xff]   ;;  %v10501_v62 = vld [vmem:[%s13564_s2 + $0x160] sm:$0xff]   ;;  %v10505_v10 = vld [vmem:[%s13564_s2 + $0x168] sm:$0xff]   ;;  %v10551_v25 = vmov 0.0  }
  0x21   : > { %7171 = vmatprep.subr.bf16.mxu1 %v10470_v27  ;;  %v10502_v63 = vld [vmem:[%s13564_s2 + $0x1e0] sm:$0xff]   ;;  %v10506_v11 = vld [vmem:[%s13564_s2 + $0x1e8] sm:$0xff]   ;;  %v10509_v14 = vld [vmem:[%s13564_s2 + $0x170] sm:$0xff]  }
  0x22   : > { %v10503_v8 = vld [vmem:[%s13564_s2 + $0x120] sm:$0xff]   ;;  %v10507_v12 = vld [vmem:[%s13564_s2 + $0x128] sm:$0xff]   ;;  %v10510_v15 = vld [vmem:[%s13564_s2 + $0x1f0] sm:$0xff]  }
  0x23   : > { %7150 = vmatpush3.bf16.msra.mxu0 %v10471_v28  ;;  %v10504_v9 = vld [vmem:[%s13564_s2 + $0x1a0] sm:$0xff]   ;;  %v10508_v13 = vld [vmem:[%s13564_s2 + $0x1a8] sm:$0xff]   ;;  %v10511_v16 = vld [vmem:[%s13564_s2 + $0x130] sm:$0xff]  }
  0x24   : > { %7172 = vmatpush3.bf16.msra.mxu1 %v10472_v29  ;;  %7151 = vmatprep.subr.bf16.mxu0 %v10473_v30  ;;  %v10512_v17 = vld [vmem:[%s13564_s2 + $0x1b0] sm:$0xff]   ;;  %v10513_v18 = vld [vmem:[%s13564_s2 + $0x178] sm:$0xff]   ;;  %v10517_v24 = vld [vmem:[%s13565_s3] ss:$12 sps:$4 sm:$0xff]  }
  0x25   : > { %7173 = vmatprep.subr.bf16.mxu1 %v10474_v31  ;;  %v10514_v19 = vld [vmem:[%s13564_s2 + $0x1f8] sm:$0xff]   ;;  %v10519_v27 = vld [vmem:[%s13565_s3 + $0x8] ss:$12 sps:$4 sm:$0xff]   ;;  %v7010_v30 = vld [vmem:[%s13563_s1] ss:$0 sm:$0xff] }
  0x26   : > { %v10515_v20 = vld [vmem:[%s13564_s2 + $0x138] sm:$0xff]  }
  0x27   : > { %7152 = vmatpush3.bf16.msra.mxu0 %v10475_v32  ;;  %v10516_v21 = vld [vmem:[%s13564_s2 + $0x1b8] sm:$0xff]  }
  0x28   : > { %7174 = vmatpush3.bf16.msra.mxu1 %v10476_v33  ;;  %7153 = vmatprep.subr.bf16.mxu0 %v10477_v34  ;;  %v10518_v26 = vld [vmem:[%s13565_s3 + $0x18] ss:$12 sps:$4 sm:$0xff]  }
  0x29   : > { %7175 = vmatprep.subr.bf16.mxu1 %v10478_v35 }
  0x2b   : > { %7154 = vmatpush3.bf16.msra.mxu0 %v10479_v36 }
  0x2c   : > { %7176 = vmatpush3.bf16.msra.mxu1 %v10480_v37  ;;  %7155 = vmatprep.subr.bf16.mxu0 %v10481_v38 }
  0x2d   : > { %7177 = vmatprep.subr.bf16.mxu1 %v10482_v39 }
  0x2f   : > { %7156 = vmatpush3.bf16.msra.mxu0 %v10483_v40 }
  0x30   : > { %7178 = vmatpush3.bf16.msra.mxu1 %v10484_v41  ;;  %7185 = vmatprep.subr.bf16.mxu0 %v10485_v44 }
  0x31   : > { %7207 = vmatprep.subr.bf16.mxu1 %v10486_v45 }
  0x32   : > { %860 = vmatmul.mubr.bf16.vlgmr.msra.gmra.mrb[0].mxu0 %v300_v42 }
  0x33   : > { %900 = vmatmul.mubr.bf16.vlgmr.msra.gmra.mrb[0].mxu1 %v302_v43  ;;  %7186 = vmatpush3.bf16.msra.mxu0 %v10487_v47 }
  0x34   : > { %7208 = vmatpush3.bf16.msra.mxu1 %v10488_v49  ;;  %939 = vmatprep.mubr.bf16.mxu0 %v305_v46 }
  0x35   : > { %7187 = vmatprep.subr.bf16.mxu0 %v10489_v50  ;;  %979 = vmatprep.mubr.bf16.mxu1 %v307_v48 }
  0x36   : > { %7209 = vmatprep.subr.bf16.mxu1 %v10490_v51 }
  0x37   : > { %7188 = vmatpush3.bf16.msra.mxu0 %v10491_v52 }
  0x38   : > { %7210 = vmatpush3.bf16.msra.mxu1 %v10492_v53  ;;  %7189 = vmatprep.subr.bf16.mxu0 %v10493_v54 }
  0x39   : > { %7211 = vmatprep.subr.bf16.mxu1 %v10494_v55  ;;  %v10520_v55 = vld [vmem:[%s13565_s3 + $0x20] ss:$12 sps:$4 sm:$0xff]  }
  0x3b   : > { %7190 = vmatpush3.bf16.msra.mxu0 %v10495_v56  ;;  %v299_v56 = vld [vmem:[%s13562_s0 + $0x40] sm:$0xff] }
  0x3c   : > { %7212 = vmatpush3.bf16.msra.mxu1 %v10496_v57  ;;  %7191 = vmatprep.subr.bf16.mxu0 %v10497_v58  ;;  %v7075_v57 = vld [vmem:[%s13563_s1 + $0x1] ss:$0 sm:$0xff] }
  0x3d   : > { %7213 = vmatprep.subr.bf16.mxu1 %v10498_v59  ;;  %1128 = vrot.lane.b32.xlu0 %v299_v56, %s10553_s15 }
  0x3f   : > { %7192 = vmatpush3.bf16.msra.mxu0 %v10499_v60 }
  0x40   : > { %7214 = vmatpush3.bf16.msra.mxu1 %v10500_v61  ;;  %7193 = vmatprep.subr.bf16.mxu0 %v10501_v62 }
  0x41   : > { %7215 = vmatprep.subr.bf16.mxu1 %v10502_v63 }
  0x43   : > { %7194 = vmatpush3.bf16.msra.mxu0 %v10503_v8 }
  0x44   : > { %7216 = vmatpush3.bf16.msra.mxu1 %v10504_v9  ;;  %7195 = vmatprep.subr.bf16.mxu0 %v10505_v10  ;;  %v1138_v9 = vld [vmem:[%s13566_s4] sm:$0xf] }
  0x45   : > { %7217 = vmatprep.subr.bf16.mxu1 %v10506_v11  ;;  %v1152_v10 = vsel %vm1150_vm2, %v1138_v9, 0  ;;  %v7079_v11 = vld [vmem:[%s13563_s1 + $0x2] ss:$0 sm:$0xff] }
  0x47   : > { %7196 = vmatpush3.bf16.msra.mxu0 %v10507_v12 }
  0x48   : > { %7218 = vmatpush3.bf16.msra.mxu1 %v10508_v13  ;;  %7197 = vmatprep.subr.bf16.mxu0 %v10509_v14 }
  0x49   : > { %7219 = vmatprep.subr.bf16.mxu1 %v10510_v15 }
  0x4b   : > { %7198 = vmatpush3.bf16.msra.mxu0 %v10511_v16 }
  0x4c   : > { %7220 = vmatpush3.bf16.msra.mxu1 %v10512_v17  ;;  %7199 = vmatprep.subr.bf16.mxu0 %v10513_v18 }
  0x4d   : > { %7221 = vmatprep.subr.bf16.mxu1 %v10514_v19  ;;  %v10521_v19 = vld [vmem:[%s13565_s3 + $0x4] ss:$12 sps:$4 sm:$0xff]  }
  0x4f   : > { %7200 = vmatpush3.bf16.msra.mxu0 %v10515_v20 }
  0x50   : > { %7222 = vmatpush3.bf16.msra.mxu1 %v10516_v21  ;;  %8360 = vmatprep.subr.bf16.mxu0 %v10551_v25 }
  0x51   : > { %8368 = vmatprep.subr.bf16.mxu1 %v10551_v25 }
  0x52   : > { %940 = vmatmul.mubr.bf16.vlgmr.msra.gmra.mrb[4].mxu0 %v304_v22 }
  0x53   : > { %980 = vmatmul.mubr.bf16.vlgmr.msra.gmra.mrb[4].mxu1 %v306_v23  ;;  %8361 = vmatpush3.bf16.msra.mxu0 %v10517_v24 }
  0x54   : > { %8362 = vmatprep.subr.bf16.mxu0 %v10551_v25  ;;  %8364 = vmatprep.mubr.msk.bf16.mxu0 %vm10552_vm0, %v10551_v25 }
  0x55   : > { %8372 = vmatprep.mubr.msk.bf16.mxu1 %vm10552_vm0, %v10551_v25  ;;  %8369 = vmatpush3.bf16.msra.mxu1 %v10519_v27  ;;  %v10522_v27 = vld [vmem:[%s13565_s3 + $0x1c] ss:$12 sps:$4 sm:$0xff]  }
  0x56   : > { %8370 = vmatprep.subr.bf16.mxu1 %v10551_v25 }
  0x57   : > { %8363 = vmatpush3.bf16.msra.mxu0 %v10518_v26 }
  0x58   : > { %8376 = vmatprep.subr.bf16.mxu0 %v10551_v25 }
  0x59   : > { %8371 = vmatpush3.bf16.msra.mxu1 %v10520_v55 }
  0x5a   : > { %8382 = vmatprep.subr.bf16.mxu1 %v10551_v25 }
  0xaf   : > { %v1129_v20 = vpop.permute.xlu0 %1128 }
 0x105   : > { %v7157_v28 = vpop.f32.mrb[0].mxu0 }
 0x106   : > { %v7179_v29 = vpop.f32.mrb[0].mxu1  ;;  %v7158_v31 = vpop.f32.mrb[1].mxu0 }
 0x107   : > { %v7159_v32 = vadd.f32 %v7158_v31, %v7157_v28  ;;  %v7180_v33 = vpop.f32.mrb[1].mxu1  ;;  %v7160_v34 = vpop.f32.mrb[2].mxu0  ;;  %v1272_v28 = vld [vmem:[%s13567_s5 + $0x40] sm:$0xff] }
 0x108   : > { %v7181_v35 = vadd.f32 %v7180_v33, %v7179_v29  ;;  %v7182_v36 = vpop.f32.mrb[2].mxu1  ;;  %v7161_v37 = vpop.f32.mrb[3].mxu0  ;;  %v1265_v29 = vld [vmem:[%s13567_s5 + $0x8] sm:$0xff] }
 0x109   : > { %v862_v38 = vadd.f32 %v7159_v32, %v7010_v30  ;;  %v7183_v39 = vpop.f32.mrb[3].mxu1  ;;  %v1273_v32 = vld [vmem:[%s13567_s5 + $0x48] sm:$0xff] }
 0x10a   : > { %v7091_v33 = vcombine.low %v1265_v29, %v1273_v32  ;;  %v7092_v34 = vcombine.high %v1265_v29, %v1273_v32  ;;  %v1293_v29 = vld [vmem:[%s13567_s5 + $0xe8] sm:$0xff] }
 0x10b   : > { %v902_v40 = vadd.f32 %v7181_v35, %v862_v38  ;;  %v7083_v35 = vld [vmem:[%s13563_s1 + $0x3] ss:$0 sm:$0xff] }
 0x125   : > { %v7201_v41 = vpop.f32.mrb[4].mxu0 }
 0x126   : > { %v7223_v42 = vpop.f32.mrb[4].mxu1  ;;  %v7202_v43 = vpop.f32.mrb[5].mxu0 }
 0x127   : > { %v7203_v44 = vadd.f32 %v7202_v43, %v7201_v41  ;;  %v7224_v45 = vpop.f32.mrb[5].mxu1  ;;  %v7204_v46 = vpop.f32.mrb[6].mxu0  ;;  %v1280_v43 = vld [vmem:[%s13567_s5 + $0x80] sm:$0xff] }
 0x128   : > { %v7225_v47 = vadd.f32 %v7224_v45, %v7223_v42  ;;  %v7226_v48 = vpop.f32.mrb[6].mxu1  ;;  %v7205_v49 = vpop.f32.mrb[7].mxu0  ;;  %v1281_v45 = vld [vmem:[%s13567_s5 + $0x88] sm:$0xff] }
 0x129   : > { %v942_v50 = vadd.f32 %v7203_v44, %v902_v40  ;;  %v7227_v51 = vpop.f32.mrb[7].mxu1  ;;  %v1288_v44 = vld [vmem:[%s13567_s5 + $0xc0] sm:$0xff] }
 0x12a   : > { %v7106_v46 = vcombine.high %v1280_v43, %v1288_v44  ;;  %v7105_v48 = vcombine.low %v1280_v43, %v1288_v44  ;;  %v1266_v51 = vld [vmem:[%s13567_s5 + $0x10] sm:$0xff]  ;;  %v1287_v44 = vld [vmem:[%s13567_s5 + $0xb8] sm:$0xff] }
 0x12b   : > { %v982_v52 = vadd.f32 %v7225_v47, %v942_v50  ;;  %v1289_v47 = vld [vmem:[%s13567_s5 + $0xc8] sm:$0xff]  ;;  %v1294_v43 = vld [vmem:[%s13567_s5 + $0xf0] sm:$0xff] }
 0x12c   : > { %v7107_v49 = vcombine.low %v1281_v45, %v1289_v47  ;;  %v7108_v50 = vcombine.high %v1281_v45, %v1289_v47  ;;  %v1295_v45 = vld [vmem:[%s13567_s5 + $0xf8] sm:$0xff] }
 0x12d   : > { %v987_v53 = vmax.f32 %v982_v52, 0.0  ;;  %v1274_v52 = vld [vmem:[%s13567_s5 + $0x50] sm:$0xff] }
 0x12e   : > { %v7093_v55 = vcombine.low %v1266_v51, %v1274_v52  ;;  %v7094_v56 = vcombine.high %v1266_v51, %v1274_v52  ;;  %v7119_v51 = vcombine.low %v1287_v44, %v1295_v45  ;;  %v1300_v52 = vlaneseq }
 0x12f   : > { %v988_v54 = vpack.c.bf16 %v987_v53, %v987_v53  ;;  %v1267_v53 = vld [vmem:[%s13567_s5 + $0x18] sm:$0xff] }
 0x131   : > { %8365 = vmatmul.mubr.msk.bf16.vlgmr.msra.gmra.mrb[8].mxu0 %vm1012_vm1, %v988_v54  ;;  %v10555_v54 = vmov 0  }
 0x132   : > { %8378 = vmatprep.mubr.msk.bf16.mxu0 %vm10552_vm0, %v10551_v25  ;;  %8377 = vmatpush3.bf16.msra.mxu0 %v1152_v10  ;;  %v1290_v10 = vld [vmem:[%s13567_s5 + $0xd0] sm:$0xff] }
 0x204   : > { %v1050_v58 = vpop.f32.mrb[8].mxu0 }
 0x205   : > { %v1051_v59 = vadd.f32 %v7075_v57, %v1050_v58  ;;  %v8366_v60 = vpop.f32.mrb[9].mxu0  ;;  %v1275_v57 = vld [vmem:[%s13567_s5 + $0x58] sm:$0xff] }
 0x206   : > { %v1053_v61 = vpop.f32.mrb[10].mxu0  ;;  %v7095_v58 = vcombine.low %v1267_v53, %v1275_v57  ;;  %v7085_v60 = vld [vmem:[%s13563_s1 + $0x4] ss:$0 sm:$0xff] }
 0x207   : > { %v1056_v62 = vmax.f32 %v1051_v59, 0.0  ;;  %v8367_v63 = vpop.f32.mrb[11].mxu0  ;;  %v7096_v59 = vcombine.high %v1267_v53, %v1275_v57  ;;  %v11049_v53 = vshrl.u32 %v1300_v52, 7  ;;  %v1296_v57 = vld [vmem:[%s13563_s1 + $0x5] sm:$0xff] }
 0x209   : > { %v1057_v8 = vpack.c.bf16 %v1056_v62, %v1056_v62 }
 0x20b   : > { %8373 = vmatmul.mubr.msk.bf16.vlgmr.msra.gmra.mrb[8].mxu1 %vm1012_vm1, %v1057_v8  ;;  %v1282_v8 = vld [vmem:[%s13567_s5 + $0x90] sm:$0xff] }
 0x20c   : > { %8386 = vmatprep.mubr.msk.bf16.mxu1 %vm10552_vm0, %v10551_v25  ;;  %8383 = vmatpush3.bf16.msra.mxu1 %v10521_v19  ;;  %v1276_v19 = vld [vmem:[%s13567_s5 + $0x60] sm:$0xff] }
 0x20d   : > { %8384 = vmatprep.subr.bf16.mxu1 %v10551_v25  ;;  %v1264_v25 = vld [vmem:[%s13567_s5] sm:$0xff] }
 0x20e   : > { %v7089_v30 = vcombine.low %v1264_v25, %v1272_v28  ;;  %v7090_v31 = vcombine.high %v1264_v25, %v1272_v28  ;;  %v1292_v25 = vld [vmem:[%s13567_s5 + $0xe0] sm:$0xff]  ;;  %v1285_v28 = vld [vmem:[%s13567_s5 + $0xa8] sm:$0xff] }
 0x210   : > { %8385 = vmatpush3.bf16.msra.mxu1 %v10522_v27  ;;  %1543 = vmatprep.subr.bf16.mxu0 %v7090_v31  ;;  %v1284_v27 = vld [vmem:[%s13567_s5 + $0xa0] sm:$0xff] }
 0x211   : > { %1584 = vmatprep.subr.bf16.mxu1 %v7092_v34  ;;  %v7114_v32 = vcombine.high %v1284_v27, %v1292_v25  ;;  %v1270_v34 = vld [vmem:[%s13567_s5 + $0x30] sm:$0xff] }
 0x2de   : > { %v1118_v12 = vpop.f32.mrb[8].mxu1 }
 0x2df   : > { %v1119_v13 = vadd.f32 %v7079_v11, %v1118_v12  ;;  %v8374_v14 = vpop.f32.mrb[9].mxu1  ;;  %v1283_v11 = vld [vmem:[%s13567_s5 + $0x98] sm:$0xff] }
 0x2e0   : > { %v1121_v15 = vpop.f32.mrb[10].mxu1  ;;  %v1291_v12 = vld [vmem:[%s13567_s5 + $0xd8] sm:$0xff] }
 0x2e1   : > { %v1124_v16 = vmul.f32 0.5, %v1119_v13  ;;  %1888 = vst.msk [vmem:[%s10657_s29 + $0x80] sm:$0xff] %vm1887_vm3, %v1119_v13  ;;  %v8375_v17 = vpop.f32.mrb[11].mxu1 }
 0x2e2   : > { %v7112_v17 = vcombine.high %v1283_v11, %v1291_v12 }
 0x2e3   : > { %v1125_v18 = vmul.f32 1.442695, %v1124_v16  ;;  %v7110_v16 = vcombine.high %v1282_v8, %v1290_v10 }
 0x2e5   : > { %10523 = vpow2.f32 %v1125_v18  ;;  %v1268_v18 = vld [vmem:[%s13567_s5 + $0x20] sm:$0xff] }
 0x2ef   : > { %v10524_v21 = vpop.eup %10523 }
 0x2f0   : > { %v1131_v22 = vmul.f32 %v10524_v21, %v1129_v20  ;;  %v1269_v20 = vld [vmem:[%s13567_s5 + $0x28] sm:$0xff] }
 0x2f1   : > { %v1277_v21 = vld [vmem:[%s13567_s5 + $0x68] sm:$0xff] }
 0x2f2   : > { %1133 = vrot.lane.b32.xlu0 %v1131_v22, %s10554_s24  ;;  %v7109_v22 = vcombine.low %v1282_v8, %v1290_v10  ;;  %v7099_v31 = vcombine.low %v1269_v20, %v1277_v21 }
 0x364   : > { %v1134_v23 = vpop.permute.xlu0 %1133 }
 0x365   : > { %v1136_v24 = vadd.f32 %v1134_v23, %v1119_v13  ;;  %v7111_v23 = vcombine.low %v1283_v11, %v1291_v12 }
 0x367   : > { %v1137_v26 = vpack.c.bf16 %v1136_v24, %v1136_v24  ;;  %1889 = vst.msk [vmem:[%s10657_s29 + $0x88] sm:$0xff] %vm1146_vm4, %v1136_v24  ;;  %v7098_v24 = vcombine.high %v1268_v18, %v1276_v19 }
 0x369   : > { %8379 = vmatmul.mubr.msk.bf16.vlgmr.msra.gmra.mrb[12].mxu0 %vm1146_vm4, %v1137_v26  ;;  %v7100_v26 = vcombine.high %v1269_v20, %v1277_v21  ;;  %v1330_v20 = vsub.s32 7, %v11049_v53 }
 0x36a   : > { %1544 = vmatpush1.bf16.msra.mxu0 %v7089_v30  ;;  %1575 = vmatprep.mubr.bf16.mxu0 %v10555_v54  ;;  %v7097_v30 = vcombine.low %v1268_v18, %v1276_v19  ;;  %v1322_v19 = vsub.s32 5, %v11049_v53 }
 0x36b   : > { %1545 = vmatprep.subr.bf16.mxu0 %v7106_v46 }
 0x36e   : > { %1546 = vmatpush1.bf16.msra.mxu0 %v7105_v48 }
 0x36f   : > { %1625 = vmatprep.subr.bf16.mxu0 %v7094_v56  ;;  %v1310_v56 = vsub.s32 2, %v11049_v53 }
 0x43c   : > { %v1188_v36 = vpop.f32.mrb[12].mxu0 }
 0x43d   : > { %v1189_v37 = vadd.f32 %v7083_v35, %v1188_v36  ;;  %v8380_v38 = vpop.f32.mrb[13].mxu0  ;;  %v1278_v35 = vld [vmem:[%s13567_s5 + $0x70] sm:$0xff]  ;;  %v1271_v36 = vld [vmem:[%s13567_s5 + $0x38] sm:$0xff] }
 0x43e   : > { %v1191_v39 = vpop.f32.mrb[14].mxu0  ;;  %v7113_v38 = vcombine.low %v1284_v27, %v1292_v25  ;;  %v7101_v46 = vcombine.low %v1270_v34, %v1278_v35  ;;  %v1331_v27 = vrot.slane %v1296_v57, %v1330_v20 }
 0x43f   : > { %v1194_v40 = vmax.f32 %v1189_v37, 0.0  ;;  %v8381_v41 = vpop.f32.mrb[15].mxu0  ;;  %v1279_v37 = vld [vmem:[%s13567_s5 + $0x78] sm:$0xff]  ;;  %v7115_v39 = vcombine.low %v1285_v28, %v1293_v29 }
 0x440   : > { %v7104_v41 = vcombine.high %v1271_v36, %v1279_v37  ;;  %v7103_v47 = vcombine.low %v1271_v36, %v1279_v37  ;;  %v1297_v37 = vld [vmem:[%s13563_s1 + $0xd] sm:$0xff] }
 0x441   : > { %v1195_v42 = vpack.c.bf16 %v1194_v40, %v1194_v40  ;;  %v7102_v40 = vcombine.high %v1270_v34, %v1278_v35 }
 0x443   : > { %8387 = vmatmul.mubr.msk.bf16.vlgmr.msra.gmra.mrb[12].mxu1 %vm1012_vm1, %v1195_v42  ;;  %v1286_v42 = vld [vmem:[%s13567_s5 + $0xb0] sm:$0xff] }
 0x444   : > { %1585 = vmatpush1.bf16.msra.mxu1 %v7091_v33  ;;  %1616 = vmatprep.mubr.bf16.mxu1 %v10555_v54  ;;  %v7116_v33 = vcombine.high %v1285_v28, %v1293_v29  ;;  %v7118_v48 = vcombine.high %v1286_v42, %v1294_v43 }
 0x445   : > { %1586 = vmatprep.subr.bf16.mxu1 %v7108_v50  ;;  %v7117_v50 = vcombine.low %v1286_v42, %v1294_v43 }
 0x448   : > { %1587 = vmatpush1.bf16.msra.mxu1 %v7107_v49  ;;  %v7120_v49 = vcombine.high %v1287_v44, %v1295_v45 }
 0x449   : > { %1666 = vmatprep.subr.bf16.mxu1 %v7096_v59 }
 0x516   : > { %v1256_v61 = vpop.f32.mrb[12].mxu1 }
 0x517   : > { %v1257_v62 = vadd.f32 %v7085_v60, %v1256_v61  ;;  %v8388_v63 = vpop.f32.mrb[13].mxu1  ;;  %v1311_v60 = vrot.slane %v1296_v57, %v1310_v56 }
 0x518   : > { %v1259_v9 = vpop.f32.mrb[14].mxu1 }
 0x519   : > { %v1262_v13 = vmax.f32 %v1257_v62, 0.0  ;;  %v8389_v14 = vpop.f32.mrb[15].mxu1 }
 0x51a   : > { %v1326_v14 = vsub.s32 6, %v11049_v53 }
 0x51b   : > { %v10977_v15 = vpack.c.bf16 %v1262_v13, %v1262_v13  ;;  %v1318_v13 = vsub.s32 4, %v11049_v53 }
 0x51d   : > { %7121 = vmatmul.mubr.msk.bf16.vlgmr.msra.gmra.mrb[16].mxu0 %vm1012_vm1, %v10977_v15  ;;  %7122 = vmatmul.mubr.msk.bf16.vlgmr.msra.gmra.mrb[16].mxu1 %vm1012_vm1, %v10977_v15 }
 0x51e   : > { %1626 = vmatpush1.bf16.msra.mxu0 %v7093_v55  ;;  %1667 = vmatpush1.bf16.msra.mxu1 %v7095_v58  ;;  %v1302_v55 = vsub.s32 0, %v11049_v53  ;;  %v1314_v58 = vsub.s32 3, %v11049_v53 }
 0x51f   : > { %1627 = vmatprep.subr.bf16.mxu0 %v7110_v16  ;;  %1668 = vmatprep.subr.bf16.mxu1 %v7112_v17 }
 0x520   : > { %1657 = vmatprep.mubr.bf16.mxu0 %v10555_v54  ;;  %1698 = vmatprep.mubr.bf16.mxu1 %v10555_v54  ;;  %v1303_v59 = vrot.slane %v1296_v57, %v1302_v55  ;;  %v1315_v62 = vrot.slane %v1296_v57, %v1314_v58  ;;  %v1347_v43 = vrot.slane %v1297_v37, %v1314_v58 }
 0x521   : > { %v1363_v58 = vrot.slane %v1297_v37, %v1330_v20 }
 0x522   : > { %1628 = vmatpush1.bf16.msra.mxu0 %v7109_v22  ;;  %1669 = vmatpush1.bf16.msra.mxu1 %v7111_v23  ;;  %v1319_v23 = vrot.slane %v1296_v57, %v1318_v13 }
 0x523   : > { %1707 = vmatprep.subr.bf16.mxu0 %v7098_v24  ;;  %1748 = vmatprep.subr.bf16.mxu1 %v7100_v26  ;;  %v1327_v24 = vrot.slane %v1296_v57, %v1326_v14  ;;  %v1323_v26 = vrot.slane %v1296_v57, %v1322_v19 }
 0x525   : > { %7123 = vmatmul.mubr.msk.bf16.vlgmr.msra.gmra.mrb[20].mxu0 %vm1012_vm1, %v10977_v15  ;;  %7124 = vmatmul.mubr.msk.bf16.vlgmr.msra.gmra.mrb[20].mxu1 %vm1012_vm1, %v10977_v15 }
 0x526   : > { %1708 = vmatpush1.bf16.msra.mxu0 %v7097_v30  ;;  %1749 = vmatpush1.bf16.msra.mxu1 %v7099_v31 }
 0x527   : > { %1709 = vmatprep.subr.bf16.mxu0 %v7114_v32  ;;  %1750 = vmatprep.subr.bf16.mxu1 %v7116_v33 }
 0x528   : > { %1739 = vmatprep.mubr.bf16.mxu0 %v10555_v54  ;;  %1780 = vmatprep.mubr.bf16.mxu1 %v10555_v54 }
 0x52a   : > { %1710 = vmatpush1.bf16.msra.mxu0 %v7113_v38  ;;  %1751 = vmatpush1.bf16.msra.mxu1 %v7115_v39 }
 0x52b   : > { %1789 = vmatprep.subr.bf16.mxu0 %v7102_v40  ;;  %1830 = vmatprep.subr.bf16.mxu1 %v7104_v41  ;;  %v1335_v40 = vrot.slane %v1297_v37, %v1302_v55  ;;  %v1343_v41 = vrot.slane %v1297_v37, %v1310_v56  ;;  %v1351_v55 = vrot.slane %v1297_v37, %v1318_v13 }
 0x52c   : > { %v1359_v56 = vrot.slane %v1297_v37, %v1326_v14 }
 0x52d   : > { %7125 = vmatmul.mubr.msk.bf16.vlgmr.msra.gmra.mrb[24].mxu0 %vm1012_vm1, %v10977_v15  ;;  %7126 = vmatmul.mubr.msk.bf16.vlgmr.msra.gmra.mrb[24].mxu1 %vm1012_vm1, %v10977_v15 }
 0x52e   : > { %1790 = vmatpush1.bf16.msra.mxu0 %v7101_v46  ;;  %1831 = vmatpush1.bf16.msra.mxu1 %v7103_v47 }
 0x52f   : > { %1791 = vmatprep.subr.bf16.mxu0 %v7118_v48  ;;  %1832 = vmatprep.subr.bf16.mxu1 %v7120_v49 }
 0x530   : > { %1821 = vmatprep.mubr.bf16.mxu0 %v10555_v54  ;;  %1862 = vmatprep.mubr.bf16.mxu1 %v10555_v54  ;;  %v1306_v54 = vsub.s32 1, %v11049_v53 }
 0x532   : > { %1792 = vmatpush1.bf16.msra.mxu0 %v7117_v50  ;;  %1833 = vmatpush1.bf16.msra.mxu1 %v7119_v51  ;;  %v1307_v61 = vrot.slane %v1296_v57, %v1306_v54  ;;  %v1339_v42 = vrot.slane %v1297_v37, %v1306_v54  ;;  %v1355_v54 = vrot.slane %v1297_v37, %v1322_v19 }
 0x535   : > { %7127 = vmatmul.mubr.msk.bf16.vlgmr.msra.gmra.mrb[28].mxu0 %vm1012_vm1, %v10977_v15  ;;  %7128 = vmatmul.mubr.msk.bf16.vlgmr.msra.gmra.mrb[28].mxu1 %vm1012_vm1, %v10977_v15 }
 0x5f0   : > { %v1577_v63 = vpop.f32.mrb[16].mxu0  ;;  %v1618_v8 = vpop.f32.mrb[16].mxu1 }
 0x5f1   : > { %v1578_v9 = vadd.f32 %v1577_v63, %v1303_v59  ;;  %v1619_v10 = vadd.f32 %v1618_v8, %v1311_v60  ;;  %v1579_v11 = vpop.f32.mrb[17].mxu0  ;;  %v1620_v12 = vpop.f32.mrb[17].mxu1 }
 0x5f2   : > { %v1580_v15 = vadd.f32 %v1579_v11, %v1307_v61  ;;  %v1621_v16 = vadd.f32 %v1620_v12, %v1315_v62  ;;  %v1581_v17 = vpop.f32.mrb[18].mxu0  ;;  %v1622_v18 = vpop.f32.mrb[18].mxu1 }
 0x5f3   : > { %1871 = vst [vmem:[%s10657_s29] sm:$0xff] %v1578_v9  ;;  %1873 = vst [vmem:[%s10657_s29 + $0x10] sm:$0xff] %v1619_v10  ;;  %v1582_v21 = vpop.f32.mrb[19].mxu0  ;;  %v1623_v22 = vpop.f32.mrb[19].mxu1 }
 0x5f4   : > { %1872 = vst [vmem:[%s10657_s29 + $0x8] sm:$0xff] %v1580_v15  ;;  %1874 = vst [vmem:[%s10657_s29 + $0x18] sm:$0xff] %v1621_v16 }
 0x5f8   : > { %v1659_v25 = vpop.f32.mrb[20].mxu0  ;;  %v1700_v28 = vpop.f32.mrb[20].mxu1 }
 0x5f9   : > { %v1660_v29 = vadd.f32 %v1659_v25, %v1319_v23  ;;  %v1701_v30 = vadd.f32 %v1700_v28, %v1327_v24  ;;  %v1661_v31 = vpop.f32.mrb[21].mxu0  ;;  %v1702_v32 = vpop.f32.mrb[21].mxu1 }
 0x5fa   : > { %v1662_v33 = vadd.f32 %v1661_v31, %v1323_v26  ;;  %v1703_v34 = vadd.f32 %v1702_v32, %v1331_v27  ;;  %v1663_v35 = vpop.f32.mrb[22].mxu0  ;;  %v1704_v36 = vpop.f32.mrb[22].mxu1 }
 0x5fb   : > { %1875 = vst [vmem:[%s10657_s29 + $0x20] sm:$0xff] %v1660_v29  ;;  %1877 = vst [vmem:[%s10657_s29 + $0x30] sm:$0xff] %v1701_v30  ;;  %v1664_v38 = vpop.f32.mrb[23].mxu0  ;;  %v1705_v39 = vpop.f32.mrb[23].mxu1 }
 0x5fc   : > { %1876 = vst [vmem:[%s10657_s29 + $0x28] sm:$0xff] %v1662_v33  ;;  %1878 = vst [vmem:[%s10657_s29 + $0x38] sm:$0xff] %v1703_v34 }
 0x600   : > { %v1741_v44 = vpop.f32.mrb[24].mxu0  ;;  %v1782_v45 = vpop.f32.mrb[24].mxu1 }
 0x601   : > { %v1742_v46 = vadd.f32 %v1741_v44, %v1335_v40  ;;  %v1783_v47 = vadd.f32 %v1782_v45, %v1343_v41  ;;  %v1743_v48 = vpop.f32.mrb[25].mxu0  ;;  %v1784_v49 = vpop.f32.mrb[25].mxu1 }
 0x602   : > { %v1744_v50 = vadd.f32 %v1743_v48, %v1339_v42  ;;  %v1785_v51 = vadd.f32 %v1784_v49, %v1347_v43  ;;  %v1745_v52 = vpop.f32.mrb[26].mxu0  ;;  %v1786_v53 = vpop.f32.mrb[26].mxu1 }
 0x603   : > { %1879 = vst [vmem:[%s10657_s29 + $0x40] sm:$0xff] %v1742_v46  ;;  %1881 = vst [vmem:[%s10657_s29 + $0x50] sm:$0xff] %v1783_v47  ;;  %v1746_v57 = vpop.f32.mrb[27].mxu0  ;;  %v1787_v59 = vpop.f32.mrb[27].mxu1 }
 0x604   : > { %1880 = vst [vmem:[%s10657_s29 + $0x48] sm:$0xff] %v1744_v50  ;;  %1882 = vst [vmem:[%s10657_s29 + $0x58] sm:$0xff] %v1785_v51 }
 0x608   : > { %v1823_v60 = vpop.f32.mrb[28].mxu0  ;;  %v1864_v61 = vpop.f32.mrb[28].mxu1 }
 0x609   : > { %v1824_v62 = vadd.f32 %v1823_v60, %v1351_v55  ;;  %v1865_v63 = vadd.f32 %v1864_v61, %v1359_v56  ;;  %v1825_v8 = vpop.f32.mrb[29].mxu0  ;;  %v1866_v9 = vpop.f32.mrb[29].mxu1 }
 0x60a   : > { %v1826_v10 = vadd.f32 %v1825_v8, %v1355_v54  ;;  %v1867_v11 = vadd.f32 %v1866_v9, %v1363_v58  ;;  %v1827_v12 = vpop.f32.mrb[30].mxu0  ;;  %v1868_v15 = vpop.f32.mrb[30].mxu1 }
 0x60b   : > { %1883 = vst [vmem:[%s10657_s29 + $0x60] sm:$0xff] %v1824_v62  ;;  %1885 = vst [vmem:[%s10657_s29 + $0x70] sm:$0xff] %v1865_v63  ;;  %v1828_v16 = vpop.f32.mrb[31].mxu0  ;;  %v1869_v17 = vpop.f32.mrb[31].mxu1 }
 0x60c   : > { %1884 = vst [vmem:[%s10657_s29 + $0x68] sm:$0xff] %v1826_v10  ;;  %1886 = vst [vmem:[%s10657_s29 + $0x78] sm:$0xff] %v1867_v11 }
 0x60d PF: > { %p7129_p5 = scmp.ne.s32.totalorder %s10608_s28, 1 }
 0x60f   : > { %1893 = sbr.rel (%p7129_p5) target bundleno = 5465 (0x1559), region = 60 }
 0x616   : > { %v1910_v13 = vld [vmem:[%s13568_s6 + $0x80] sm:$0xff]  ;;  %v1911_v14 = vld [vmem:[%s13568_s6 + $0x88] sm:$0xff]  ;;  %2223 = vmatprep.mubr.f32.mxu0 %v10621_v1  ;;  %2293 = vmatprep.mubr.f32.mxu1 %v10631_v3  ;;  %v1912_v25 = vld [vmem:[%s13568_s6 + $0x90] sm:$0xff]  ;;  %vm6959_vm5 = vcmask 7168  }
 0x617   : > { %v1894_v18 = vld [vmem:[%s13568_s6] sm:$0xff]  ;;  %v11093_v19 = vpack.c.bf16 %v1911_v14, %v1910_v13  ;;  %v1895_v20 = vld [vmem:[%s13568_s6 + $0x8] sm:$0xff]  ;;  %v1913_v29 = vld [vmem:[%s13568_s6 + $0x98] sm:$0xff] }
 0x618   : > { %v1942_v21 = vld [vmem:[%s13568_s6 + $0x180] sm:$0xff]  ;;  %v1943_v22 = vld [vmem:[%s13568_s6 + $0x188] sm:$0xff]  ;;  %v11104_v23 = vpack.c.bf16 %v1895_v20, %v1894_v18  ;;  %v1896_v30 = vld [vmem:[%s13568_s6 + $0x10] sm:$0xff]  ;;  %v11131_v32 = vpack.c.bf16 %v1913_v29, %v1912_v25 }
 0x619   : > { %v11106_v24 = vpack.c.bf16 %v1943_v22, %v1942_v21  ;;  %v1926_v26 = vld [vmem:[%s13568_s6 + $0x100] sm:$0xff]  ;;  %v1927_v27 = vld [vmem:[%s13568_s6 + $0x108] sm:$0xff]  ;;  %8391 = vmatprep.subr.bf16.mxu0 %v11093_v19  ;;  %v1897_v31 = vld [vmem:[%s13568_s6 + $0x18] sm:$0xff] }
 0x61a   : > { %v11118_v28 = vpack.c.bf16 %v1927_v27, %v1926_v26  ;;  %8393 = vmatpush3.bf16.msra.mxu0 %v11104_v23  ;;  %v11133_v33 = vpack.c.bf16 %v1897_v31, %v1896_v30  ;;  %v1944_v34 = vld [vmem:[%s13568_s6 + $0x190] sm:$0xff]  ;;  %v1945_v35 = vld [vmem:[%s13568_s6 + $0x198] sm:$0xff]  ;;  %v1914_v39 = vld [vmem:[%s13568_s6 + $0xa0] sm:$0xff] }
 0x61b   : > { %8423 = vmatprep.subr.bf16.mxu1 %v11106_v24  ;;  %v1928_v36 = vld [vmem:[%s13568_s6 + $0x110] sm:$0xff]  ;;  %v11145_v37 = vpack.c.bf16 %v1945_v35, %v1944_v34  ;;  %v1929_v38 = vld [vmem:[%s13568_s6 + $0x118] sm:$0xff]  ;;  %v1915_v40 = vld [vmem:[%s13568_s6 + $0xa8] sm:$0xff]  ;;  %8395 = vmatprep.subr.bf16.mxu0 %v11131_v32 }
 0x61c   : > { %8425 = vmatpush3.bf16.msra.mxu1 %v11118_v28  ;;  %v11157_v41 = vpack.c.bf16 %v1929_v38, %v1928_v36  ;;  %v11159_v42 = vpack.c.bf16 %v1915_v40, %v1914_v39  ;;  %v1898_v43 = vld [vmem:[%s13568_s6 + $0x20] sm:$0xff]  ;;  %v1899_v44 = vld [vmem:[%s13568_s6 + $0x28] sm:$0xff]  ;;  %v1916_v51 = vld [vmem:[%s13568_s6 + $0xb0] sm:$0xff] }
 0x61d   : > { %v1946_v45 = vld [vmem:[%s13568_s6 + $0x1a0] sm:$0xff]  ;;  %8427 = vmatprep.subr.bf16.mxu1 %v11145_v37  ;;  %v1947_v46 = vld [vmem:[%s13568_s6 + $0x1a8] sm:$0xff]  ;;  %v11181_v49 = vpack.c.bf16 %v1899_v44, %v1898_v43  ;;  %v1917_v52 = vld [vmem:[%s13568_s6 + $0xb8] sm:$0xff] }
 0x61e   : > { %v1930_v47 = vld [vmem:[%s13568_s6 + $0x120] sm:$0xff]  ;;  %v1931_v48 = vld [vmem:[%s13568_s6 + $0x128] sm:$0xff]  ;;  %8397 = vmatpush3.bf16.msra.mxu0 %v11133_v33  ;;  %v11183_v50 = vpack.c.bf16 %v1947_v46, %v1946_v45  ;;  %v1900_v53 = vld [vmem:[%s13568_s6 + $0x30] sm:$0xff]  ;;  %v11198_v59 = vpack.c.bf16 %v1917_v52, %v1916_v51 }
 0x61f   : > { %8399 = vmatprep.subr.bf16.mxu0 %v11159_v42  ;;  %v11196_v57 = vpack.c.bf16 %v1931_v48, %v1930_v47  ;;  %v1901_v55 = vld [vmem:[%s13568_s6 + $0x38] sm:$0xff]  ;;  %v1948_v56 = vld [vmem:[%s13568_s6 + $0x1b0] sm:$0xff]  ;;  %v1918_v62 = vld [vmem:[%s13568_s6 + $0xc0] sm:$0xff] }
 0x620   : > { %8429 = vmatpush3.bf16.msra.mxu1 %v11157_v41  ;;  %13850 = vst [vmem:[#allocation7_spill] sm:$0xff] %v11198_v59  ;;  %v1949_v54 = vld [vmem:[%s13568_s6 + $0x1b8] sm:$0xff]  ;;  %v1932_v60 = vld [vmem:[%s13568_s6 + $0x130] sm:$0xff]  ;;  %v1919_v63 = vld [vmem:[%s13568_s6 + $0xc8] sm:$0xff]  ;;  %v11225_v8 = vpack.c.bf16 %v1901_v55, %v1900_v53 }
 0x621   : > { %13849 = vst [vmem:[#allocation6_spill] sm:$0xff] %v11196_v57  ;;  %8431 = vmatprep.subr.bf16.mxu1 %v11183_v50  ;;  %v11210_v58 = vpack.c.bf16 %v1949_v54, %v1948_v56  ;;  %v1933_v61 = vld [vmem:[%s13568_s6 + $0x138] sm:$0xff]  ;;  %v1950_v9 = vld [vmem:[%s13568_s6 + $0x1c0] sm:$0xff]  ;;  %v1951_v10 = vld [vmem:[%s13568_s6 + $0x1c8] sm:$0xff]  ;;  %v11237_v12 = vpack.c.bf16 %v1919_v63, %v1918_v62 }
 0x622   : > { %8401 = vmatpush3.bf16.msra.mxu0 %v11181_v49  ;;  %13852 = vst [vmem:[#allocation9_spill] sm:$0xff] %v11225_v8  ;;  %v11235_v11 = vpack.c.bf16 %v1933_v61, %v1932_v60  ;;  %v1902_v15 = vld [vmem:[%s13568_s6 + $0x40] sm:$0xff]  ;;  %v1903_v16 = vld [vmem:[%s13568_s6 + $0x48] sm:$0xff]  ;;  %v11249_v13 = vpack.c.bf16 %v1951_v10, %v1950_v9  ;;  %v1920_v18 = vld [vmem:[%s13568_s6 + $0xd0] sm:$0xff] }
 0x623   : > { %13851 = vst [vmem:[#allocation8_spill] sm:$0xff] %v11210_v58  ;;  %8403 = vmatprep.subr.bf16.mxu0 %v11198_v59  ;;  %13854 = vst [vmem:[#allocation11_spill] sm:$0xff] %v11237_v12  ;;  %v1934_v17 = vld [vmem:[%s13568_s6 + $0x140] sm:$0xff]  ;;  %v1935_v14 = vld [vmem:[%s13568_s6 + $0x148] sm:$0xff]  ;;  %v11267_v26 = vpack.c.bf16 %v1903_v16, %v1902_v15 }
 0x624   : > { %8433 = vmatpush3.bf16.msra.mxu1 %v11196_v57  ;;  %13853 = vst [vmem:[#allocation10_spill] sm:$0xff] %v11235_v11  ;;  %13855 = vst [vmem:[#allocation12_spill] sm:$0xff] %v11249_v13  ;;  %v1921_v20 = vld [vmem:[%s13568_s6 + $0xd8] sm:$0xff]  ;;  %v1952_v21 = vld [vmem:[%s13568_s6 + $0x1d0] sm:$0xff]  ;;  %v11271_v27 = vpack.c.bf16 %v1935_v14, %v1934_v17 }
 0x625   : > { %8435 = vmatprep.subr.bf16.mxu1 %v11210_v58  ;;  %v1953_v22 = vld [vmem:[%s13568_s6 + $0x1d8] sm:$0xff]  ;;  %13856 = vst [vmem:[#allocation13_spill] sm:$0xff] %v11267_v26  ;;  %v11273_v25 = vpack.c.bf16 %v1921_v20, %v1920_v18  ;;  %v1904_v29 = vld [vmem:[%s13568_s6 + $0x50] sm:$0xff]  ;;  %v1922_v36 = vld [vmem:[%s13568_s6 + $0xe0] sm:$0xff] }
 0x626   : > { %8405 = vmatpush3.bf16.msra.mxu0 %v11225_v8  ;;  %13857 = vst [vmem:[#allocation14_spill] sm:$0xff] %v11271_v27  ;;  %v1905_v30 = vld [vmem:[%s13568_s6 + $0x58] sm:$0xff]  ;;  %v1936_v31 = vld [vmem:[%s13568_s6 + $0x150] sm:$0xff]  ;;  %v11285_v34 = vpack.c.bf16 %v1953_v22, %v1952_v21  ;;  %v1923_v38 = vld [vmem:[%s13568_s6 + $0xe8] sm:$0xff] }
 0x627   : > { %8407 = vmatprep.subr.bf16.mxu0 %v11237_v12  ;;  %13858 = vst [vmem:[#allocation15_spill] sm:$0xff] %v11273_v25  ;;  %v1937_v35 = vld [vmem:[%s13568_s6 + $0x158] sm:$0xff]  ;;  %v1954_v39 = vld [vmem:[%s13568_s6 + $0x1e0] sm:$0xff]  ;;  %v1955_v40 = vld [vmem:[%s13568_s6 + $0x1e8] sm:$0xff]  ;;  %v11303_v43 = vpack.c.bf16 %v1905_v30, %v1904_v29  ;;  %v11309_v45 = vpack.c.bf16 %v1923_v38, %v1922_v36 }
 0x628   : > { %8437 = vmatpush3.bf16.msra.mxu1 %v11235_v11  ;;  %13859 = vst [vmem:[#allocation16_spill] sm:$0xff] %v11285_v34  ;;  %v11307_v44 = vpack.c.bf16 %v1937_v35, %v1936_v31  ;;  %v1906_v46 = vld [vmem:[%s13568_s6 + $0x60] sm:$0xff]  ;;  %v1907_v47 = vld [vmem:[%s13568_s6 + $0x68] sm:$0xff]  ;;  %v11321_v51 = vpack.c.bf16 %v1955_v40, %v1954_v39  ;;  %v1924_v53 = vld [vmem:[%s13568_s6 + $0xf0] sm:$0xff] }
 0x629   : > { %8439 = vmatprep.subr.bf16.mxu1 %v11249_v13  ;;  %13860 = vst [vmem:[#allocation17_spill] sm:$0xff] %v11303_v43  ;;  %13862 = vst [vmem:[#allocation19_spill] sm:$0xff] %v11309_v45  ;;  %v1938_v48 = vld [vmem:[%s13568_s6 + $0x160] sm:$0xff]  ;;  %v1939_v52 = vld [vmem:[%s13568_s6 + $0x168] sm:$0xff]  ;;  %v11339_v60 = vpack.c.bf16 %v1907_v47, %v1906_v46 }
 0x62a   : > { %8409 = vmatpush3.bf16.msra.mxu0 %v11267_v26  ;;  %13861 = vst [vmem:[#allocation18_spill] sm:$0xff] %v11307_v44  ;;  %13863 = vst [vmem:[#allocation20_spill] sm:$0xff] %v11321_v51  ;;  %v1925_v55 = vld [vmem:[%s13568_s6 + $0xf8] sm:$0xff]  ;;  %v1956_v56 = vld [vmem:[%s13568_s6 + $0x1f0] sm:$0xff]  ;;  %v11343_v61 = vpack.c.bf16 %v1939_v52, %v1938_v48 }
 0x62b   : > { %8411 = vmatprep.subr.bf16.mxu0 %v11273_v25  ;;  %v1957_v54 = vld [vmem:[%s13568_s6 + $0x1f8] sm:$0xff]  ;;  %13864 = vst [vmem:[#allocation21_spill] sm:$0xff] %v11339_v60  ;;  %v11345_v62 = vpack.c.bf16 %v1925_v55, %v1924_v53  ;;  %v1908_v63 = vld [vmem:[%s13568_s6 + $0x70] sm:$0xff]  ;;  %v1974_v17 = vld [vmem:[%s13568_s6 + $0x280] sm:$0xff] }
 0x62c   : > { %8441 = vmatpush3.bf16.msra.mxu1 %v11271_v27  ;;  %13865 = vst [vmem:[#allocation22_spill] sm:$0xff] %v11343_v61  ;;  %v1909_v9 = vld [vmem:[%s13568_s6 + $0x78] sm:$0xff]  ;;  %v1940_v10 = vld [vmem:[%s13568_s6 + $0x170] sm:$0xff]  ;;  %v11357_v15 = vpack.c.bf16 %v1957_v54, %v1956_v56  ;;  %v1975_v14 = vld [vmem:[%s13568_s6 + $0x288] sm:$0xff] }
 0x62d   : > { %8443 = vmatprep.subr.bf16.mxu1 %v11285_v34  ;;  %13866 = vst [vmem:[#allocation23_spill] sm:$0xff] %v11345_v62  ;;  %v1941_v16 = vld [vmem:[%s13568_s6 + $0x178] sm:$0xff]  ;;  %v2006_v18 = vld [vmem:[%s13568_s6 + $0x380] sm:$0xff]  ;;  %v2007_v20 = vld [vmem:[%s13568_s6 + $0x388] sm:$0xff]  ;;  %v11375_v21 = vpack.c.bf16 %v1909_v9, %v1908_v63  ;;  %v11381_v29 = vpack.c.bf16 %v1975_v14, %v1974_v17 }
 0x62e   : > { %8413 = vmatpush3.bf16.msra.mxu0 %v11303_v43  ;;  %13867 = vst [vmem:[#allocation24_spill] sm:$0xff] %v11357_v15  ;;  %v11379_v22 = vpack.c.bf16 %v1941_v16, %v1940_v10  ;;  %v1958_v30 = vld [vmem:[%s13568_s6 + $0x200] sm:$0xff]  ;;  %v1959_v31 = vld [vmem:[%s13568_s6 + $0x208] sm:$0xff]  ;;  %v11393_v36 = vpack.c.bf16 %v2007_v20, %v2006_v18  ;;  %v1976_v39 = vld [vmem:[%s13568_s6 + $0x290] sm:$0xff] }
 0x62f   : > { %8415 = vmatprep.subr.bf16.mxu0 %v11309_v45  ;;  %13868 = vst [vmem:[#allocation25_spill] sm:$0xff] %v11375_v21  ;;  %13870 = vst [vmem:[#allocation27_spill] sm:$0xff] %v11381_v29  ;;  %v1990_v35 = vld [vmem:[%s13568_s6 + $0x300] sm:$0xff]  ;;  %v1991_v38 = vld [vmem:[%s13568_s6 + $0x308] sm:$0xff]  ;;  %v11411_v48 = vpack.c.bf16 %v1959_v31, %v1958_v30 }
 0x630   : > { %8445 = vmatpush3.bf16.msra.mxu1 %v11307_v44  ;;  %13869 = vst [vmem:[#allocation26_spill] sm:$0xff] %v11379_v22  ;;  %13871 = vst [vmem:[#allocation28_spill] sm:$0xff] %v11393_v36  ;;  %v1977_v40 = vld [vmem:[%s13568_s6 + $0x298] sm:$0xff]  ;;  %v2008_v46 = vld [vmem:[%s13568_s6 + $0x390] sm:$0xff]  ;;  %v11415_v52 = vpack.c.bf16 %v1991_v38, %v1990_v35 }
 0x631   : > { %8447 = vmatprep.subr.bf16.mxu1 %v11321_v51  ;;  %v2009_v47 = vld [vmem:[%s13568_s6 + $0x398] sm:$0xff]  ;;  %13872 = vst [vmem:[#allocation29_spill] sm:$0xff] %v11411_v48  ;;  %v11417_v53 = vpack.c.bf16 %v1977_v40, %v1976_v39  ;;  %v1960_v55 = vld [vmem:[%s13568_s6 + $0x210] sm:$0xff]  ;;  %v1978_v10 = vld [vmem:[%s13568_s6 + $0x2a0] sm:$0xff] }
 0x632   : > { %8417 = vmatpush3.bf16.msra.mxu0 %v11339_v60  ;;  %13873 = vst [vmem:[#allocation30_spill] sm:$0xff] %v11415_v52  ;;  %v1961_v56 = vld [vmem:[%s13568_s6 + $0x218] sm:$0xff]  ;;  %v1992_v54 = vld [vmem:[%s13568_s6 + $0x310] sm:$0xff]  ;;  %v11429_v63 = vpack.c.bf16 %v2009_v47, %v2008_v46  ;;  %v1979_v16 = vld [vmem:[%s13568_s6 + $0x2a8] sm:$0xff] }
 0x633   : > { %8419 = vmatprep.subr.bf16.mxu0 %v11345_v62  ;;  %13874 = vst [vmem:[#allocation31_spill] sm:$0xff] %v11417_v53  ;;  %v1993_v9 = vld [vmem:[%s13568_s6 + $0x318] sm:$0xff]  ;;  %v2010_v17 = vld [vmem:[%s13568_s6 + $0x3a0] sm:$0xff]  ;;  %v2011_v14 = vld [vmem:[%s13568_s6 + $0x3a8] sm:$0xff]  ;;  %v11449_v18 = vpack.c.bf16 %v1961_v56, %v1960_v55  ;;  %v11455_v30 = vpack.c.bf16 %v1979_v16, %v1978_v10 }
 0x634   : > { %8449 = vmatpush3.bf16.msra.mxu1 %v11343_v61  ;;  %13875 = vst [vmem:[#allocation32_spill] sm:$0xff] %v11429_v63  ;;  %v11453_v20 = vpack.c.bf16 %v1993_v9, %v1992_v54  ;;  %v1962_v31 = vld [vmem:[%s13568_s6 + $0x220] sm:$0xff]  ;;  %v1963_v35 = vld [vmem:[%s13568_s6 + $0x228] sm:$0xff]  ;;  %v11467_v39 = vpack.c.bf16 %v2011_v14, %v2010_v17  ;;  %v1980_v46 = vld [vmem:[%s13568_s6 + $0x2b0] sm:$0xff] }
 0x635   : > { %8451 = vmatprep.subr.bf16.mxu1 %v11357_v15  ;;  %13876 = vst [vmem:[#allocation33_spill] sm:$0xff] %v11449_v18  ;;  %13878 = vst [vmem:[#allocation35_spill] sm:$0xff] %v11455_v30  ;;  %v1994_v38 = vld [vmem:[%s13568_s6 + $0x320] sm:$0xff]  ;;  %v1995_v40 = vld [vmem:[%s13568_s6 + $0x328] sm:$0xff]  ;;  %v11487_v54 = vpack.c.bf16 %v1963_v35, %v1962_v31 }
 0x636   : > { %8421 = vmatpush3.bf16.msra.mxu0 %v11375_v21  ;;  %13877 = vst [vmem:[#allocation34_spill] sm:$0xff] %v11453_v20  ;;  %13879 = vst [vmem:[#allocation36_spill] sm:$0xff] %v11467_v39  ;;  %v1981_v47 = vld [vmem:[%s13568_s6 + $0x2b8] sm:$0xff]  ;;  %v2012_v55 = vld [vmem:[%s13568_s6 + $0x3b0] sm:$0xff]  ;;  %v11491_v9 = vpack.c.bf16 %v1995_v40, %v1994_v38 }
 0x637   : > { %8455 = vmatprep.subr.bf16.mxu0 %v11381_v29  ;;  %v2013_v56 = vld [vmem:[%s13568_s6 + $0x3b8] sm:$0xff]  ;;  %13880 = vst [vmem:[#allocation37_spill] sm:$0xff] %v11487_v54  ;;  %v11493_v10 = vpack.c.bf16 %v1981_v47, %v1980_v46  ;;  %v1964_v16 = vld [vmem:[%s13568_s6 + $0x230] sm:$0xff]  ;;  %v1982_v38 = vld [vmem:[%s13568_s6 + $0x2c0] sm:$0xff] }
 0x638   : > { %8453 = vmatpush3.bf16.msra.mxu1 %v11379_v22  ;;  %13881 = vst [vmem:[#allocation38_spill] sm:$0xff] %v11491_v9  ;;  %v1965_v17 = vld [vmem:[%s13568_s6 + $0x238] sm:$0xff]  ;;  %v1996_v14 = vld [vmem:[%s13568_s6 + $0x330] sm:$0xff]  ;;  %v11505_v31 = vpack.c.bf16 %v2013_v56, %v2012_v55  ;;  %v1983_v40 = vld [vmem:[%s13568_s6 + $0x2c8] sm:$0xff] }
 0x639   : > { %8487 = vmatprep.subr.bf16.mxu1 %v11393_v36  ;;  %2224 = vmatmul.mubr.f32.vlgmr.msra.gmra.mrb[0].mxu0 %v10616_v0  ;;  %13882 = vst [vmem:[#allocation39_spill] sm:$0xff] %v11493_v10  ;;  %v1997_v35 = vld [vmem:[%s13568_s6 + $0x338] sm:$0xff]  ;;  %v2014_v46 = vld [vmem:[%s13568_s6 + $0x3c0] sm:$0xff]  ;;  %v2015_v47 = vld [vmem:[%s13568_s6 + $0x3c8] sm:$0xff]  ;;  %v11523_v55 = vpack.c.bf16 %v1965_v17, %v1964_v16 }
 0x63a   : > { %8457 = vmatpush3.bf16.msra.mxu0 %v11411_v48  ;;  %2363 = vmatprep.mubr.f32.mxu0 %v10641_v5  ;;  %13883 = vst [vmem:[#allocation40_spill] sm:$0xff] %v11505_v31  ;;  %v11527_v56 = vpack.c.bf16 %v1997_v35, %v1996_v14  ;;  %v1966_v5 = vld [vmem:[%s13568_s6 + $0x240] sm:$0xff]  ;;  %v11541_v17 = vpack.c.bf16 %v2015_v47, %v2014_v46  ;;  %v1999_v14 = vld [vmem:[%s13568_s6 + $0x348] sm:$0xff]  ;;  %v1984_v35 = vld [vmem:[%s13568_s6 + $0x2d0] sm:$0xff] }
 0x63b   : > { %2294 = vmatmul.mubr.f32.vlgmr.msra.gmra.mrb[0].mxu1 %v10626_v2  ;;  %8459 = vmatprep.subr.bf16.mxu0 %v11417_v53  ;;  %13884 = vst [vmem:[#allocation41_spill] sm:$0xff] %v11523_v55  ;;  %v1998_v16 = vld [vmem:[%s13568_s6 + $0x340] sm:$0xff]  ;;  %v2017_v46 = vld [vmem:[%s13568_s6 + $0x3d8] sm:$0xff] }
 0x63c   : > { %8489 = vmatpush3.bf16.msra.mxu1 %v11415_v52  ;;  %2433 = vmatprep.mubr.f32.mxu1 %v10652_v7  ;;  %13885 = vst [vmem:[#allocation42_spill] sm:$0xff] %v11527_v56  ;;  %v11529_v7 = vpack.c.bf16 %v1983_v40, %v1982_v38  ;;  %13887 = vst [vmem:[#allocation44_spill] sm:$0xff] %v11541_v17  ;;  %v1985_v38 = vld [vmem:[%s13568_s6 + $0x2d8] sm:$0xff]  ;;  %v2016_v40 = vld [vmem:[%s13568_s6 + $0x3d0] sm:$0xff] }
 0x63d   : > { %8491 = vmatprep.subr.bf16.mxu1 %v11429_v63 }
 0x63e   : > { %8461 = vmatpush3.bf16.msra.mxu0 %v11449_v18  ;;  %13886 = vst [vmem:[#allocation43_spill] sm:$0xff] %v11529_v7 }
 0x63f   : > { %8463 = vmatprep.subr.bf16.mxu0 %v11455_v30  ;;  %v2074_v30 = vld [vmem:[%s13569_s7 + $0x1a0] sm:$0xff] }
 0x640   : > { %8493 = vmatpush3.bf16.msra.mxu1 %v11453_v20  ;;  %v2082_v20 = vld [vmem:[%s13569_s7 + $0x1e0] sm:$0xff] }
 0x641   : > { %8495 = vmatprep.subr.bf16.mxu1 %v11467_v39  ;;  %v1967_v39 = vld [vmem:[%s13568_s6 + $0x248] sm:$0xff] }
 0x642   : > { %8465 = vmatpush3.bf16.msra.mxu0 %v11487_v54  ;;  %v11559_v47 = vpack.c.bf16 %v1967_v39, %v1966_v5  ;;  %v1969_v54 = vld [vmem:[%s13568_s6 + $0x258] sm:$0xff]  ;;  %v2000_v5 = vld [vmem:[%s13568_s6 + $0x350] sm:$0xff]  ;;  %v11577_v39 = vpack.c.bf16 %v2017_v46, %v2016_v40  ;;  %v2019_v40 = vld [vmem:[%s13568_s6 + $0x3e8] sm:$0xff] }
 0x643   : > { %8467 = vmatprep.subr.bf16.mxu0 %v11493_v10  ;;  %v11565_v10 = vpack.c.bf16 %v1985_v38, %v1984_v35  ;;  %v1987_v35 = vld [vmem:[%s13568_s6 + $0x2e8] sm:$0xff]  ;;  %v2018_v38 = vld [vmem:[%s13568_s6 + $0x3e0] sm:$0xff] }
 0x644   : > { %8497 = vmatpush3.bf16.msra.mxu1 %v11491_v9  ;;  %13888 = vst [vmem:[#allocation45_spill] sm:$0xff] %v11559_v47  ;;  %v1968_v9 = vld [vmem:[%s13568_s6 + $0x250] sm:$0xff]  ;;  %13891 = vst [vmem:[#allocation48_spill] sm:$0xff] %v11577_v39 }
 0x645   : > { %8499 = vmatprep.subr.bf16.mxu1 %v11505_v31  ;;  %v11563_v31 = vpack.c.bf16 %v1999_v14, %v1998_v16  ;;  %13890 = vst [vmem:[#allocation47_spill] sm:$0xff] %v11565_v10  ;;  %v2001_v16 = vld [vmem:[%s13568_s6 + $0x358] sm:$0xff]  ;;  %v1986_v14 = vld [vmem:[%s13568_s6 + $0x2e0] sm:$0xff]  ;;  %v11595_v46 = vpack.c.bf16 %v1969_v54, %v1968_v9  ;;  %v11613_v9 = vpack.c.bf16 %v2019_v40, %v2018_v38 }
 0x646   : > { %8469 = vmatpush3.bf16.msra.mxu0 %v11523_v55  ;;  %v1971_v55 = vld [vmem:[%s13568_s6 + $0x268] sm:$0xff]  ;;  %v2002_v54 = vld [vmem:[%s13568_s6 + $0x360] sm:$0xff]  ;;  %v2021_v38 = vld [vmem:[%s13568_s6 + $0x3f8] sm:$0xff] }
 0x647   : > { %8471 = vmatprep.subr.bf16.mxu0 %v11529_v7  ;;  %13889 = vst [vmem:[#allocation46_spill] sm:$0xff] %v11563_v31  ;;  %13892 = vst [vmem:[#allocation49_spill] sm:$0xff] %v11595_v46  ;;  %v11601_v7 = vpack.c.bf16 %v1987_v35, %v1986_v14  ;;  %v1989_v14 = vld [vmem:[%s13568_s6 + $0x2f8] sm:$0xff]  ;;  %v2020_v35 = vld [vmem:[%s13568_s6 + $0x3f0] sm:$0xff] }
 0x648   : > { %8501 = vmatpush3.bf16.msra.mxu1 %v11527_v56  ;;  %v1970_v56 = vld [vmem:[%s13568_s6 + $0x260] sm:$0xff]  ;;  %13895 = vst [vmem:[#allocation52_spill] sm:$0xff] %v11613_v9 }
 0x649   : > { %8503 = vmatprep.subr.bf16.mxu1 %v11541_v17  ;;  %v11599_v17 = vpack.c.bf16 %v2001_v16, %v2000_v5  ;;  %13894 = vst [vmem:[#allocation51_spill] sm:$0xff] %v11601_v7  ;;  %v2003_v5 = vld [vmem:[%s13568_s6 + $0x368] sm:$0xff]  ;;  %v1988_v16 = vld [vmem:[%s13568_s6 + $0x2f0] sm:$0xff]  ;;  %v11631_v40 = vpack.c.bf16 %v1971_v55, %v1970_v56  ;;  %v11646_v55 = vpack.c.bf16 %v2021_v38, %v2020_v35  ;;  %v2033_v38 = vld [vmem:[%s13569_s7 + $0x58] sm:$0xff] }
 0x64a   : > { %8473 = vmatpush3.bf16.msra.mxu0 %v11559_v47  ;;  %v1973_v47 = vld [vmem:[%s13568_s6 + $0x278] sm:$0xff]  ;;  %v2004_v56 = vld [vmem:[%s13568_s6 + $0x370] sm:$0xff] }
 0x64b   : > { %8475 = vmatprep.subr.bf16.mxu0 %v11565_v10  ;;  %13893 = vst [vmem:[#allocation50_spill] sm:$0xff] %v11599_v17  ;;  %13896 = vst [vmem:[#allocation53_spill] sm:$0xff] %v11631_v40  ;;  %v11637_v10 = vpack.c.bf16 %v1989_v14, %v1988_v16  ;;  %v2025_v14 = vld [vmem:[%s13569_s7 + $0x18] sm:$0xff] }
 0x64c   : > { %8505 = vmatpush3.bf16.msra.mxu1 %v11563_v31  ;;  %v1972_v31 = vld [vmem:[%s13568_s6 + $0x270] sm:$0xff]  ;;  %13899 = vst [vmem:[#allocation56_spill] sm:$0xff] %v11646_v55 }
 0x64d   : > { %8507 = vmatprep.subr.bf16.mxu1 %v11577_v39  ;;  %v11635_v39 = vpack.c.bf16 %v2003_v5, %v2002_v54  ;;  %13898 = vst [vmem:[#allocation55_spill] sm:$0xff] %v11637_v10  ;;  %v2005_v54 = vld [vmem:[%s13568_s6 + $0x378] sm:$0xff]  ;;  %v11655_v5 = vpack.c.bf16 %v1973_v47, %v1972_v31  ;;  %v2023_v31 = vld [vmem:[%s13569_s7 + $0x8] sm:$0xff] }
 0x64e   : > { %8477 = vmatpush3.bf16.msra.mxu0 %v11595_v46  ;;  %v11659_v16 = vpack.c.bf16 %v2005_v54, %v2004_v56  ;;  %v2031_v47 = vld [vmem:[%s13569_s7 + $0x48] sm:$0xff]  ;;  %v2022_v56 = vld [vmem:[%s13569_s7] sm:$0xff] }
 0x64f   : > { %8479 = vmatprep.subr.bf16.mxu0 %v11601_v7  ;;  %13897 = vst [vmem:[#allocation54_spill] sm:$0xff] %v11635_v39  ;;  %13900 = vst [vmem:[#allocation57_spill] sm:$0xff] %v11655_v5  ;;  %v11675_v35 = vpack.c.bf16 %v2031_v47, %v2023_v31  ;;  %v2030_v54 = vld [vmem:[%s13569_s7 + $0x40] sm:$0xff]  ;;  %v2024_v31 = vld [vmem:[%s13569_s7 + $0x10] sm:$0xff] }
 0x650   : > { %8509 = vmatpush3.bf16.msra.mxu1 %v11599_v17  ;;  %13901 = vst [vmem:[#allocation58_spill] sm:$0xff] %v11659_v16  ;;  %v2032_v47 = vld [vmem:[%s13569_s7 + $0x50] sm:$0xff]  ;;  %v2026_v17 = vld [vmem:[%s13569_s7 + $0x20] sm:$0xff] }
 0x651   : > { %8511 = vmatprep.subr.bf16.mxu1 %v11613_v9  ;;  %13902 = vst [vmem:[#allocation59_spill] sm:$0xff] %v11675_v35  ;;  %v2066_v46 = vld [vmem:[%s13569_s7 + $0x160] sm:$0xff] }
 0x652   : > { %8481 = vmatpush3.bf16.msra.mxu0 %v11631_v40 }
 0x653   : > { %8483 = vmatprep.subr.bf16.mxu0 %v11637_v10  ;;  %v11700_v10 = vpack.c.bf16 %v2032_v47, %v2024_v31  ;;  %v2038_v47 = vld [vmem:[%s13569_s7 + $0x80] sm:$0xff] }
 0x654   : > { %8513 = vmatpush3.bf16.msra.mxu1 %v11635_v39  ;;  %v2078_v39 = vld [vmem:[%s13569_s7 + $0x1c0] sm:$0xff] }
 0x655   : > { %8515 = vmatprep.subr.bf16.mxu1 %v11646_v55  ;;  %v2039_v55 = vld [vmem:[%s13569_s7 + $0x88] sm:$0xff]  ;;  %13905 = vst [vmem:[#allocation62_spill] sm:$0xff] %v11700_v10 }
 0x656   : > { %8485 = vmatpush3.bf16.msra.mxu0 %v11655_v5  ;;  %v11688_v5 = vpack.c.bf16 %v2030_v54, %v2022_v56  ;;  %v2049_v56 = vld [vmem:[%s13569_s7 + $0xd8] sm:$0xff] }
 0x657   : > { %8519 = vmatprep.subr.bf16.mxu0 %v11675_v35  ;;  %v2046_v35 = vld [vmem:[%s13569_s7 + $0xc0] sm:$0xff] }
 0x658   : > { %8517 = vmatpush3.bf16.msra.mxu1 %v11659_v16  ;;  %v11686_v16 = vpack.c.bf16 %v2033_v38, %v2025_v14  ;;  %13904 = vst [vmem:[#allocation61_spill] sm:$0xff] %v11688_v5  ;;  %v2047_v14 = vld [vmem:[%s13569_s7 + $0xc8] sm:$0xff]  ;;  %v2041_v38 = vld [vmem:[%s13569_s7 + $0x98] sm:$0xff] }
 0x659   : > { %2364 = vmatmul.mubr.f32.vlgmr.msra.gmra.mrb[2].mxu0 %v10636_v4  ;;  %v11713_v54 = vpack.c.bf16 %v2047_v14, %v2039_v55  ;;  %v11715_v31 = vpack.c.bf16 %v2049_v56, %v2041_v38  ;;  %v2048_v55 = vld [vmem:[%s13569_s7 + $0xd0] sm:$0xff]  ;;  %v2055_v14 = vld [vmem:[%s13569_s7 + $0x108] sm:$0xff] }
 0x65a   : > { %13903 = vst [vmem:[#allocation60_spill] sm:$0xff] %v11686_v16  ;;  %8551 = vmatprep.subr.bf16.mxu1 %v11686_v16  ;;  %8521 = vmatpush1.bf16.msra.mxu0 %v11688_v5  ;;  %v11727_v16 = vpack.c.bf16 %v2046_v35, %v2038_v47  ;;  %v2063_v38 = vld [vmem:[%s13569_s7 + $0x148] sm:$0xff]  ;;  %v2057_v47 = vld [vmem:[%s13569_s7 + $0x118] sm:$0xff]  ;;  %v2054_v5 = vld [vmem:[%s13569_s7 + $0x100] sm:$0xff] }
 0x65b   : > { %2434 = vmatmul.mubr.f32.vlgmr.msra.gmra.mrb[2].mxu1 %v10647_v6  ;;  %13906 = vst [vmem:[#allocation63_spill] sm:$0xff] %v11713_v54  ;;  %13907 = vst [vmem:[#allocation64_spill] sm:$0xff] %v11715_v31  ;;  %v2040_v6 = vld [vmem:[%s13569_s7 + $0x90] sm:$0xff]  ;;  %8523 = vmatprep.subr.bf16.mxu0 %v11713_v54  ;;  %v11742_v35 = vpack.c.bf16 %v2063_v38, %v2055_v14 }
 0x65c   : > { %8553 = vmatpush1.bf16.msra.mxu1 %v11700_v10  ;;  %13908 = vst [vmem:[#allocation65_spill] sm:$0xff] %v11727_v16  ;;  %v11740_v56 = vpack.c.bf16 %v2048_v55, %v2040_v6  ;;  %v2065_v10 = vld [vmem:[%s13569_s7 + $0x158] sm:$0xff]  ;;  %v2062_v6 = vld [vmem:[%s13569_s7 + $0x140] sm:$0xff]  ;;  %v2056_v55 = vld [vmem:[%s13569_s7 + $0x110] sm:$0xff] }
 0x65d   : > { %8555 = vmatprep.subr.bf16.mxu1 %v11715_v31  ;;  %13910 = vst [vmem:[#allocation67_spill] sm:$0xff] %v11742_v35  ;;  %v11753_v4 = vpack.c.bf16 %v2065_v10, %v2057_v47  ;;  %v2064_v14 = vld [vmem:[%s13569_s7 + $0x150] sm:$0xff]  ;;  %v11765_v38 = vpack.c.bf16 %v2062_v6, %v2054_v5  ;;  %v2071_v10 = vld [vmem:[%s13569_s7 + $0x188] sm:$0xff]  ;;  %v2073_v31 = vld [vmem:[%s13569_s7 + $0x198] sm:$0xff] }
 0x65e   : > { %13909 = vst [vmem:[#allocation66_spill] sm:$0xff] %v11740_v56  ;;  %8525 = vmatpush1.bf16.msra.mxu0 %v11727_v16  ;;  %v2079_v47 = vld [vmem:[%s13569_s7 + $0x1c8] sm:$0xff]  ;;  %v11778_v54 = vpack.c.bf16 %v2064_v14, %v2056_v55  ;;  %v2081_v6 = vld [vmem:[%s13569_s7 + $0x1d8] sm:$0xff]  ;;  %v2070_v16 = vld [vmem:[%s13569_s7 + $0x180] sm:$0xff] }
 0x65f   : > { %13911 = vst [vmem:[#allocation68_spill] sm:$0xff] %v11753_v4  ;;  %13912 = vst [vmem:[#allocation69_spill] sm:$0xff] %v11765_v38  ;;  %8527 = vmatprep.subr.bf16.mxu0 %v11742_v35  ;;  %v11780_v5 = vpack.c.bf16 %v2079_v47, %v2071_v10  ;;  %v2072_v55 = vld [vmem:[%s13569_s7 + $0x190] sm:$0xff]  ;;  %v11801_v10 = vpack.c.bf16 %v2078_v39, %v2070_v16  ;;  %v2095_v39 = vld [vmem:[%s13569_s7 + $0x248] sm:$0xff] }
 0x660   : > { %8557 = vmatpush1.bf16.msra.mxu1 %v11740_v56  ;;  %13913 = vst [vmem:[#allocation70_spill] sm:$0xff] %v11778_v54  ;;  %v11792_v56 = vpack.c.bf16 %v2081_v6, %v2073_v31  ;;  %v2080_v14 = vld [vmem:[%s13569_s7 + $0x1d0] sm:$0xff]  ;;  %v2087_v31 = vld [vmem:[%s13569_s7 + $0x208] sm:$0xff]  ;;  %v2089_v16 = vld [vmem:[%s13569_s7 + $0x218] sm:$0xff] }
 0x661   : > { %13914 = vst [vmem:[#allocation71_spill] sm:$0xff] %v11780_v5  ;;  %8559 = vmatprep.subr.bf16.mxu1 %v11753_v4  ;;  %13916 = vst [vmem:[#allocation73_spill] sm:$0xff] %v11801_v10  ;;  %v11805_v47 = vpack.c.bf16 %v2080_v14, %v2072_v55  ;;  %v11819_v6 = vpack.c.bf16 %v2095_v39, %v2087_v31  ;;  %v2097_v55 = vld [vmem:[%s13569_s7 + $0x258] sm:$0xff]  ;;  %v2086_v14 = vld [vmem:[%s13569_s7 + $0x200] sm:$0xff] }
 0x662   : > { %13915 = vst [vmem:[#allocation72_spill] sm:$0xff] %v11792_v56  ;;  %8529 = vmatpush1.bf16.msra.mxu0 %v11765_v38  ;;  %v2088_v31 = vld [vmem:[%s13569_s7 + $0x210] sm:$0xff] }
 0x663   : > { %8531 = vmatprep.subr.bf16.mxu0 %v11780_v5  ;;  %13917 = vst [vmem:[#allocation74_spill] sm:$0xff] %v11805_v47  ;;  %13918 = vst [vmem:[#allocation75_spill] sm:$0xff] %v11819_v6  ;;  %v2096_v39 = vld [vmem:[%s13569_s7 + $0x250] sm:$0xff] }
 0x664   : > { %8561 = vmatpush1.bf16.msra.mxu1 %v11778_v54  ;;  %v11841_v5 = vpack.c.bf16 %v2096_v39, %v2088_v31  ;;  %v2113_v31 = vld [vmem:[%s13569_s7 + $0x2d8] sm:$0xff]  ;;  %v2102_v39 = vld [vmem:[%s13569_s7 + $0x280] sm:$0xff]  ;;  %v13653_v54 = vmov 0.0   ;;  %v2136_v38 = vld [vmem:[%s13569_s7 + $0x390] sm:$0xff] }
 0x665   : > { %8563 = vmatprep.subr.bf16.mxu1 %v11792_v56  ;;  %2504 = vmatprep.mubr.f32.mxu0 %v13653_v54 }
 0x666   : > { %8533 = vmatpush1.bf16.msra.mxu0 %v11801_v10  ;;  %v11830_v10 = vpack.c.bf16 %v2097_v55, %v2089_v16  ;;  %13921 = vst [vmem:[#allocation78_spill] sm:$0xff] %v11841_v5  ;;  %v2111_v16 = vld [vmem:[%s13569_s7 + $0x2c8] sm:$0xff]  ;;  %v2105_v55 = vld [vmem:[%s13569_s7 + $0x298] sm:$0xff]  ;;  %2575 = vmatprep.mubr.f32.mxu1 %v13653_v54 }
 0x667   : > { %8535 = vmatprep.subr.bf16.mxu0 %v11819_v6 }
 0x668   : > { %8565 = vmatpush1.bf16.msra.mxu1 %v11805_v47  ;;  %v2094_v47 = vld [vmem:[%s13569_s7 + $0x240] sm:$0xff]  ;;  %13919 = vst [vmem:[#allocation76_spill] sm:$0xff] %v11830_v10 }
 0x669   : > { %v11832_v56 = vpack.c.bf16 %v2094_v47, %v2086_v14  ;;  %8567 = vmatprep.subr.bf16.mxu1 %v11830_v10  ;;  %v2103_v47 = vld [vmem:[%s13569_s7 + $0x288] sm:$0xff]  ;;  %v11866_v10 = vpack.c.bf16 %v2113_v31, %v2105_v55  ;;  %v2121_v31 = vld [vmem:[%s13569_s7 + $0x318] sm:$0xff] }
 0x66a   : > { %v11855_v14 = vpack.c.bf16 %v2111_v16, %v2103_v47  ;;  %v2104_v47 = vld [vmem:[%s13569_s7 + $0x290] sm:$0xff]  ;;  %v2127_v55 = vld [vmem:[%s13569_s7 + $0x348] sm:$0xff] }
 0x66b   : > { %13920 = vst [vmem:[#allocation77_spill] sm:$0xff] %v11832_v56  ;;  %8537 = vmatpush1.bf16.msra.mxu0 %v11832_v56  ;;  %v2110_v56 = vld [vmem:[%s13569_s7 + $0x2c0] sm:$0xff]  ;;  %13923 = vst [vmem:[#allocation80_spill] sm:$0xff] %v11866_v10  ;;  %v2112_v16 = vld [vmem:[%s13569_s7 + $0x2d0] sm:$0xff] }
 0x66c   : > { %8569 = vmatpush1.bf16.msra.mxu1 %v11841_v5  ;;  %13922 = vst [vmem:[#allocation79_spill] sm:$0xff] %v11855_v14  ;;  %v11868_v6 = vpack.c.bf16 %v2110_v56, %v2102_v39  ;;  %8539 = vmatprep.subr.bf16.mxu0 %v11855_v14  ;;  %v11877_v5 = vpack.c.bf16 %v2112_v16, %v2104_v47  ;;  %v2119_v56 = vld [vmem:[%s13569_s7 + $0x308] sm:$0xff]  ;;  %v2129_v47 = vld [vmem:[%s13569_s7 + $0x358] sm:$0xff]  ;;  %v2118_v16 = vld [vmem:[%s13569_s7 + $0x300] sm:$0xff] }
 0x66d   : > { %8571 = vmatprep.subr.bf16.mxu1 %v11866_v10  ;;  %v11891_v39 = vpack.c.bf16 %v2127_v55, %v2119_v56  ;;  %v11902_v10 = vpack.c.bf16 %v2129_v47, %v2121_v31  ;;  %v2120_v56 = vld [vmem:[%s13569_s7 + $0x310] sm:$0xff]  ;;  %v2143_v31 = vld [vmem:[%s13569_s7 + $0x3c8] sm:$0xff]  ;;  %v2137_v47 = vld [vmem:[%s13569_s7 + $0x398] sm:$0xff] }
 0x66e   : > { %13924 = vst [vmem:[#allocation81_spill] sm:$0xff] %v11868_v6  ;;  %13925 = vst [vmem:[#allocation82_spill] sm:$0xff] %v11877_v5  ;;  %v2128_v55 = vld [vmem:[%s13569_s7 + $0x350] sm:$0xff] }
 0x66f   : > { %8541 = vmatpush1.bf16.msra.mxu0 %v11868_v6  ;;  %13926 = vst [vmem:[#allocation83_spill] sm:$0xff] %v11891_v39  ;;  %v2126_v6 = vld [vmem:[%s13569_s7 + $0x340] sm:$0xff]  ;;  %13927 = vst [vmem:[#allocation84_spill] sm:$0xff] %v11902_v10 }
 0x670   : > { %8573 = vmatpush1.bf16.msra.mxu1 %v11877_v5  ;;  %v11904_v14 = vpack.c.bf16 %v2126_v6, %v2118_v16  ;;  %v2135_v5 = vld [vmem:[%s13569_s7 + $0x388] sm:$0xff]  ;;  %8543 = vmatprep.subr.bf16.mxu0 %v11891_v39  ;;  %v11918_v6 = vpack.c.bf16 %v2128_v55, %v2120_v56  ;;  %v2145_v16 = vld [vmem:[%s13569_s7 + $0x3d8] sm:$0xff]  ;;  %v2134_v55 = vld [vmem:[%s13569_s7 + $0x380] sm:$0xff] }
 0x671   : > { %8575 = vmatprep.subr.bf16.mxu1 %v11902_v10  ;;  %v11931_v54 = vpack.c.bf16 %v2143_v31, %v2135_v5  ;;  %v11933_v56 = vpack.c.bf16 %v2145_v16, %v2137_v47  ;;  %v2142_v39 = vld [vmem:[%s13569_s7 + $0x3c0] sm:$0xff]  ;;  %v2144_v5 = vld [vmem:[%s13569_s7 + $0x3d0] sm:$0xff]  ;;  %v2027_v31 = vld [vmem:[%s13569_s7 + $0x28] sm:$0xff] }
 0x672   : > { %13928 = vst [vmem:[#allocation85_spill] sm:$0xff] %v11904_v14  ;;  %13929 = vst [vmem:[#allocation86_spill] sm:$0xff] %v11918_v6  ;;  %v11945_v10 = vpack.c.bf16 %v2142_v39, %v2134_v55  ;;  %v2035_v47 = vld [vmem:[%s13569_s7 + $0x68] sm:$0xff]  ;;  %v11958_v16 = vpack.c.bf16 %v2144_v5, %v2136_v38  ;;  %v2029_v55 = vld [vmem:[%s13569_s7 + $0x38] sm:$0xff] }
 0x673   : > { %8545 = vmatpush1.bf16.msra.mxu0 %v11904_v14  ;;  %13930 = vst [vmem:[#allocation87_spill] sm:$0xff] %v11931_v54  ;;  %13931 = vst [vmem:[#allocation88_spill] sm:$0xff] %v11933_v56  ;;  %v11960_v39 = vpack.c.bf16 %v2035_v47, %v2027_v31  ;;  %v7130_v5 = vld [vmem:[%s13563_s1 + $0x1e] ss:$0 sm:$0xff] }
 0x674   : > { %8577 = vmatpush1.bf16.msra.mxu1 %v11918_v6  ;;  %13932 = vst [vmem:[#allocation89_spill] sm:$0xff] %v11945_v10  ;;  %8547 = vmatprep.subr.bf16.mxu0 %v11931_v54  ;;  %13933 = vst [vmem:[#allocation90_spill] sm:$0xff] %v11958_v16  ;;  %v2037_v6 = vld [vmem:[%s13569_s7 + $0x78] sm:$0xff] }
 0x675   : > { %8579 = vmatprep.subr.bf16.mxu1 %v11933_v56  ;;  %13934 = vst [vmem:[#allocation91_spill] sm:$0xff] %v11960_v39  ;;  %v11968_v14 = vpack.c.bf16 %v2037_v6, %v2029_v55 }
 0x677   : > { %13935 = vst [vmem:[#allocation92_spill] sm:$0xff] %v11968_v14  ;;  %8549 = vmatpush1.bf16.msra.mxu0 %v11945_v10 }
 0x678   : > { %8581 = vmatpush1.bf16.msra.mxu1 %v11958_v16  ;;  %8583 = vmatprep.subr.bf16.mxu0 %v11960_v39 }
 0x679   : > { %8615 = vmatprep.subr.bf16.mxu1 %v11968_v14 }
 0x70c   : > { %v7272_v38 = vpop.f32.mrb[0].mxu0 }
 0x70d   : > { %v7273_v31 = vpop.f32.mrb[1].mxu0 }
 0x70e   : > { %v7307_v47 = vpop.f32.mrb[0].mxu1  ;;  %v7274_v56 = vadd.f32 %v7273_v31, %v7272_v38  ;;  %v2034_v38 = vld [vmem:[%s13569_s7 + $0x60] sm:$0xff]  ;;  %v2044_v31 = vld [vmem:[%s13569_s7 + $0xb0] sm:$0xff] }
 0x70f   : > { %v7308_v54 = vpop.f32.mrb[1].mxu1 }
 0x710   : > { %v7309_v4 = vadd.f32 %v7308_v54, %v7307_v47  ;;  %v2226_v6 = vadd.f32 %v7274_v56, %v7130_v5  ;;  %v2036_v54 = vld [vmem:[%s13569_s7 + $0x70] sm:$0xff]  ;;  %v2042_v56 = vld [vmem:[%s13569_s7 + $0xa0] sm:$0xff] }
 0x711   : > { %v2050_v5 = vld [vmem:[%s13569_s7 + $0xe0] sm:$0xff] }
 0x712   : > { %v2296_v55 = vadd.f32 %v7309_v4, %v2226_v6  ;;  %v2028_v4 = vld [vmem:[%s13569_s7 + $0x30] sm:$0xff]  ;;  %v2059_v6 = vld [vmem:[%s13569_s7 + $0x128] sm:$0xff] }
 0x72c   : > { %v7342_v35 = vpop.f32.mrb[2].mxu0 }
 0x72d   : > { %v7343_v10 = vpop.f32.mrb[3].mxu0 }
 0x72e   : > { %v7377_v40 = vpop.f32.mrb[2].mxu1  ;;  %v7344_v16 = vadd.f32 %v7343_v10, %v7342_v35  ;;  %v2053_v35 = vld [vmem:[%s13569_s7 + $0xf8] sm:$0xff]  ;;  %v12001_v10 = vpack.c.bf16 %v2034_v38, %v2026_v17  ;;  %v2052_v17 = vld [vmem:[%s13569_s7 + $0xf0] sm:$0xff] }
 0x72f   : > { %v7378_v9 = vpop.f32.mrb[3].mxu1 }
 0x730   : > { %v7379_v39 = vadd.f32 %v7378_v9, %v7377_v40  ;;  %v2366_v7 = vadd.f32 %v7344_v16, %v2296_v55  ;;  %v2051_v9 = vld [vmem:[%s13569_s7 + $0xe8] sm:$0xff]  ;;  %v2045_v40 = vld [vmem:[%s13569_s7 + $0xb8] sm:$0xff]  ;;  %13936 = vst [vmem:[#allocation93_spill] sm:$0xff] %v12001_v10 }
 0x731   : > { %v2067_v55 = vld [vmem:[%s13569_s7 + $0x168] sm:$0xff] }
 0x732   : > { %v2436_v14 = vadd.f32 %v7379_v39, %v2366_v7  ;;  %v2043_v7 = vld [vmem:[%s13569_s7 + $0xa8] sm:$0xff]  ;;  %v12010_v39 = vpack.c.bf16 %v2053_v35, %v2045_v40  ;;  %v12048_v40 = vld [vmem:[%s13563_s1 + $0x1d] ss:$0 sm:$0xff]  ;;  %v2058_v35 = vld [vmem:[%s13569_s7 + $0x120] sm:$0xff] }
 0x733   : > { %v12008_v16 = vpack.c.bf16 %v2051_v9, %v2043_v7  ;;  %v12041_v7 = vpack.c.bf16 %v2050_v5, %v2042_v56  ;;  %v12043_v9 = vpack.c.bf16 %v2052_v17, %v2044_v31  ;;  %v12058_v5 = vpack.c.bf16 %v2067_v55, %v2059_v6  ;;  %v2060_v31 = vld [vmem:[%s13569_s7 + $0x130] sm:$0xff]  ;;  %v2077_v6 = vld [vmem:[%s13569_s7 + $0x1b8] sm:$0xff] }
 0x734   : > { %10525 = vtanh.f32 %v2436_v14  ;;  %v12003_v14 = vpack.c.bf16 %v2036_v54, %v2028_v4  ;;  %13939 = vst [vmem:[#allocation96_spill] sm:$0xff] %v12010_v39  ;;  %v2061_v4 = vld [vmem:[%s13569_s7 + $0x138] sm:$0xff]  ;;  %v2068_v17 = vld [vmem:[%s13569_s7 + $0x170] sm:$0xff] }
 0x735   : > { %13938 = vst [vmem:[#allocation95_spill] sm:$0xff] %v12008_v16  ;;  %v2069_v54 = vld [vmem:[%s13569_s7 + $0x178] sm:$0xff]  ;;  %13940 = vst [vmem:[#allocation97_spill] sm:$0xff] %v12041_v7 }
 0x736   : > { %13937 = vst [vmem:[#allocation94_spill] sm:$0xff] %v12003_v14  ;;  %13941 = vst [vmem:[#allocation98_spill] sm:$0xff] %v12058_v5  ;;  %v2085_v55 = vld [vmem:[%s13569_s7 + $0x1f8] sm:$0xff] }
 0x73e   : > { %v12021_v47 = vpop.eup %10525 }
 0x73f   : > { %2505 = vmatmul.mubr.f32.vlgmr.msra.gmra.mrb[4].mxu0 %v12021_v47  ;;  %2576 = vmatmul.mubr.f32.vlgmr.msra.gmra.mrb[4].mxu1 %v12021_v47  ;;  %v2781_v38 = vmul.f32 %v12021_v47, %v12021_v47 }
 0x740   : > { %8585 = vmatpush1.bf16.msra.mxu0 %v12001_v10  ;;  %8617 = vmatpush1.bf16.msra.mxu1 %v12003_v14  ;;  %v2075_v14 = vld [vmem:[%s13569_s7 + $0x1a8] sm:$0xff]  ;;  %v12069_v10 = vpack.c.bf16 %v2069_v54, %v2061_v4  ;;  %v12085_v4 = vpack.c.bf16 %v2066_v46, %v2058_v35  ;;  %v12087_v54 = vpack.c.bf16 %v2068_v17, %v2060_v31  ;;  %v2076_v46 = vld [vmem:[%s13569_s7 + $0x1b0] sm:$0xff]  ;;  %v2101_v17 = vld [vmem:[%s13569_s7 + $0x278] sm:$0xff] }
 0x741   : > { %8587 = vmatprep.subr.bf16.mxu0 %v12008_v16  ;;  %8619 = vmatprep.subr.bf16.mxu1 %v12010_v39  ;;  %v2782_v56 = vsub.f32 1.0, %v2781_v38  ;;  %v2083_v38 = vld [vmem:[%s13569_s7 + $0x1e8] sm:$0xff]  ;;  %v13943_v39 = vmov 0.0   ;;  %v2084_v35 = vld [vmem:[%s13569_s7 + $0x1f0] sm:$0xff] }
 0x742   : > { %13942 = vst [vmem:[#allocation99_spill] sm:$0xff] %v12069_v10  ;;  %2646 = vmatprep.mubr.f32.mxu0 %v13943_v39  ;;  %2717 = vmatprep.mubr.f32.mxu1 %v13943_v39  ;;  %13944 = vst [vmem:[#allocation100_spill] sm:$0xff] %v12085_v4  ;;  %v2091_v31 = vld [vmem:[%s13569_s7 + $0x228] sm:$0xff] }
 0x743   : > { %v2789_v16 = vmul.f32 %v12048_v40, %v2782_v56  ;;  %13945 = vst [vmem:[#allocation101_spill] sm:$0xff] %v12087_v54  ;;  %v12096_v56 = vpack.c.bf16 %v2083_v38, %v2075_v14  ;;  %v2099_v14 = vld [vmem:[%s13569_s7 + $0x268] sm:$0xff]  ;;  %v12121_v38 = vpack.c.bf16 %v2082_v20, %v2074_v30  ;;  %v2092_v20 = vld [vmem:[%s13569_s7 + $0x230] sm:$0xff] }
 0x744   : > { %8589 = vmatpush1.bf16.msra.mxu0 %v12041_v7  ;;  %8621 = vmatpush1.bf16.msra.mxu1 %v12043_v9  ;;  %v12098_v7 = vpack.c.bf16 %v2085_v55, %v2077_v6  ;;  %v12123_v6 = vpack.c.bf16 %v2084_v35, %v2076_v46  ;;  %v2090_v55 = vld [vmem:[%s13569_s7 + $0x220] sm:$0xff]  ;;  %v2100_v30 = vld [vmem:[%s13569_s7 + $0x270] sm:$0xff]  ;;  %v2107_v46 = vld [vmem:[%s13569_s7 + $0x2a8] sm:$0xff] }
 0x745   : > { %2790 = vadd.xlane.f32.xlu0 %v2789_v16  ;;  %8591 = vmatprep.subr.bf16.mxu0 %v12058_v5  ;;  %13946 = vst [vmem:[#allocation102_spill] sm:$0xff] %v12096_v56  ;;  %v2093_v16 = vld [vmem:[%s13569_s7 + $0x238] sm:$0xff]  ;;  %13948 = vst [vmem:[#allocation104_spill] sm:$0xff] %v12121_v38  ;;  %v12133_v5 = vpack.c.bf16 %v2099_v14, %v2091_v31  ;;  %v2115_v35 = vld [vmem:[%s13569_s7 + $0x2e8] sm:$0xff] }
 0x746   : > { %13947 = vst [vmem:[#allocation103_spill] sm:$0xff] %v12098_v7  ;;  %8623 = vmatprep.subr.bf16.mxu1 %v12069_v10  ;;  %13949 = vst [vmem:[#allocation105_spill] sm:$0xff] %v12123_v6  ;;  %v2098_v10 = vld [vmem:[%s13569_s7 + $0x260] sm:$0xff]  ;;  %v2109_v31 = vld [vmem:[%s13569_s7 + $0x2b8] sm:$0xff] }
 0x747   : > { %13950 = vst [vmem:[#allocation106_spill] sm:$0xff] %v12133_v5  ;;  %v2117_v14 = vld [vmem:[%s13569_s7 + $0x2f8] sm:$0xff] }
 0x748   : > { %8593 = vmatpush1.bf16.msra.mxu0 %v12085_v4  ;;  %8625 = vmatpush1.bf16.msra.mxu1 %v12087_v54  ;;  %v12135_v4 = vpack.c.bf16 %v2101_v17, %v2093_v16  ;;  %v12157_v16 = vpack.c.bf16 %v2098_v10, %v2090_v55  ;;  %v12159_v17 = vpack.c.bf16 %v2100_v30, %v2092_v20  ;;  %v2108_v10 = vld [vmem:[%s13569_s7 + $0x2b0] sm:$0xff]  ;;  %v2123_v20 = vld [vmem:[%s13569_s7 + $0x328] sm:$0xff] }
 0x749   : > { %8595 = vmatprep.subr.bf16.mxu0 %v12096_v56  ;;  %8627 = vmatprep.subr.bf16.mxu1 %v12098_v7  ;;  %v2106_v7 = vld [vmem:[%s13569_s7 + $0x2a0] sm:$0xff]  ;;  %v12169_v54 = vpack.c.bf16 %v2115_v35, %v2107_v46  ;;  %v2116_v55 = vld [vmem:[%s13569_s7 + $0x2f0] sm:$0xff]  ;;  %v2131_v30 = vld [vmem:[%s13569_s7 + $0x368] sm:$0xff] }
 0x74a   : > { %13951 = vst [vmem:[#allocation107_spill] sm:$0xff] %v12135_v4  ;;  %13952 = vst [vmem:[#allocation108_spill] sm:$0xff] %v12157_v16  ;;  %v2114_v56 = vld [vmem:[%s13569_s7 + $0x2e0] sm:$0xff]  ;;  %v2125_v46 = vld [vmem:[%s13569_s7 + $0x338] sm:$0xff] }
 0x74b   : > { %13953 = vst [vmem:[#allocation109_spill] sm:$0xff] %v12159_v17  ;;  %13954 = vst [vmem:[#allocation110_spill] sm:$0xff] %v12169_v54  ;;  %v2133_v35 = vld [vmem:[%s13569_s7 + $0x378] sm:$0xff] }
 0x74c   : > { %8597 = vmatpush1.bf16.msra.mxu0 %v12121_v38  ;;  %8629 = vmatpush1.bf16.msra.mxu1 %v12123_v6  ;;  %v12171_v38 = vpack.c.bf16 %v2117_v14, %v2109_v31  ;;  %v12193_v31 = vpack.c.bf16 %v2114_v56, %v2106_v7  ;;  %v12195_v14 = vpack.c.bf16 %v2116_v55, %v2108_v10  ;;  %v2124_v7 = vld [vmem:[%s13569_s7 + $0x330] sm:$0xff]  ;;  %v2139_v10 = vld [vmem:[%s13569_s7 + $0x3a8] sm:$0xff] }
 0x74d   : > { %8599 = vmatprep.subr.bf16.mxu0 %v12133_v5  ;;  %8631 = vmatprep.subr.bf16.mxu1 %v12135_v4  ;;  %v2122_v4 = vld [vmem:[%s13569_s7 + $0x320] sm:$0xff]  ;;  %v12205_v6 = vpack.c.bf16 %v2131_v30, %v2123_v20  ;;  %v2132_v56 = vld [vmem:[%s13569_s7 + $0x370] sm:$0xff]  ;;  %v2147_v55 = vld [vmem:[%s13569_s7 + $0x3e8] sm:$0xff] }
 0x74e   : > { %13955 = vst [vmem:[#allocation111_spill] sm:$0xff] %v12171_v38  ;;  %13956 = vst [vmem:[#allocation112_spill] sm:$0xff] %v12195_v14  ;;  %v2130_v5 = vld [vmem:[%s13569_s7 + $0x360] sm:$0xff]  ;;  %v2141_v20 = vld [vmem:[%s13569_s7 + $0x3b8] sm:$0xff] }
 0x74f   : > { %v2149_v30 = vld [vmem:[%s13569_s7 + $0x3f8] sm:$0xff] }
 0x750   : > { %8601 = vmatpush1.bf16.msra.mxu0 %v12157_v16  ;;  %8633 = vmatpush1.bf16.msra.mxu1 %v12159_v17  ;;  %v12207_v16 = vpack.c.bf16 %v2133_v35, %v2125_v46  ;;  %v12229_v46 = vpack.c.bf16 %v2130_v5, %v2122_v4  ;;  %v12231_v35 = vpack.c.bf16 %v2132_v56, %v2124_v7  ;;  %v2140_v5 = vld [vmem:[%s13569_s7 + $0x3b0] sm:$0xff] }
 0x751   : > { %8603 = vmatprep.subr.bf16.mxu0 %v12169_v54  ;;  %8635 = vmatprep.subr.bf16.mxu1 %v12171_v38  ;;  %v2138_v38 = vld [vmem:[%s13569_s7 + $0x3a0] sm:$0xff]  ;;  %v12238_v54 = vpack.c.bf16 %v2147_v55, %v2139_v10  ;;  %v12240_v17 = vpack.c.bf16 %v2149_v30, %v2141_v20  ;;  %v2148_v4 = vld [vmem:[%s13569_s7 + $0x3f0] sm:$0xff] }
 0x752   : > { %v12255_v56 = vpack.c.bf16 %v2148_v4, %v2140_v5  ;;  %v2150_v55 = vld [vmem:[%s13563_s1 + $0x15] sm:$0xff] }
 0x754   : > { %8605 = vmatpush1.bf16.msra.mxu0 %v12193_v31  ;;  %8637 = vmatpush1.bf16.msra.mxu1 %v12195_v14  ;;  %v2146_v14 = vld [vmem:[%s13569_s7 + $0x3e0] sm:$0xff] }
 0x755   : > { %8607 = vmatprep.subr.bf16.mxu0 %v12205_v6  ;;  %8639 = vmatprep.subr.bf16.mxu1 %v12207_v16  ;;  %v12253_v7 = vpack.c.bf16 %v2146_v14, %v2138_v38 }
 0x758   : > { %8609 = vmatpush1.bf16.msra.mxu0 %v12229_v46  ;;  %8641 = vmatpush1.bf16.msra.mxu1 %v12231_v35 }
 0x759   : > { %8611 = vmatprep.subr.bf16.mxu0 %v12238_v54  ;;  %8643 = vmatprep.subr.bf16.mxu1 %v12240_v17 }
 0x75c   : > { %8613 = vmatpush1.bf16.msra.mxu0 %v12253_v7  ;;  %8645 = vmatpush1.bf16.msra.mxu1 %v12255_v56 }
 0x75d   : > { %8647 = vmatprep.subr.bf16.mxu0 %v11093_v19  ;;  %8679 = vmatprep.subr.bf16.mxu1 %v11106_v24 }
 0x75f   : > { %2647 = vmatmul.mubr.f32.vlgmr.msra.gmra.mrb[6].mxu0 %v12021_v47  ;;  %2718 = vmatmul.mubr.f32.vlgmr.msra.gmra.mrb[6].mxu1 %v12021_v47  ;;  %v2733_v47 = vlaneseq }
 0x760   : > { %8649 = vmatpush3.bf16.msra.mxu0 %v11104_v23  ;;  %8681 = vmatpush3.bf16.msra.mxu1 %v11118_v28 }
 0x761   : > { %8651 = vmatprep.subr.bf16.mxu0 %v11131_v32  ;;  %8683 = vmatprep.subr.bf16.mxu1 %v11145_v37  ;;  %v12297_v38 = vshrl.u32 %v2733_v47, 7 }
 0x763   : > { %v2739_v14 = vsub.s32 1, %v12297_v38  ;;  %v2747_v10 = vsub.s32 3, %v12297_v38  ;;  %v2735_v20 = vsub.s32 0, %v12297_v38  ;;  %v2743_v30 = vsub.s32 2, %v12297_v38 }
 0x764   : > { %8653 = vmatpush3.bf16.msra.mxu0 %v11133_v33  ;;  %8685 = vmatpush3.bf16.msra.mxu1 %v11157_v41 }
 0x765   : > { %8655 = vmatprep.subr.bf16.mxu0 %v11159_v42  ;;  %8687 = vmatprep.subr.bf16.mxu1 %v11183_v50 }
 0x768   : > { %8657 = vmatpush3.bf16.msra.mxu0 %v11181_v49  ;;  %8689 = vmatpush3.bf16.msra.mxu1 %v11196_v57 }
 0x769   : > { %8659 = vmatprep.subr.bf16.mxu0 %v11198_v59  ;;  %8691 = vmatprep.subr.bf16.mxu1 %v11210_v58 }
 0x76c   : > { %8661 = vmatpush3.bf16.msra.mxu0 %v11225_v8  ;;  %8693 = vmatpush3.bf16.msra.mxu1 %v11235_v11 }
 0x76d   : > { %8663 = vmatprep.subr.bf16.mxu0 %v11237_v12  ;;  %8695 = vmatprep.subr.bf16.mxu1 %v11249_v13 }
 0x770   : > { %8665 = vmatpush3.bf16.msra.mxu0 %v11267_v26  ;;  %8697 = vmatpush3.bf16.msra.mxu1 %v11271_v27 }
 0x771   : > { %8667 = vmatprep.subr.bf16.mxu0 %v11273_v25  ;;  %8699 = vmatprep.subr.bf16.mxu1 %v11285_v34 }
 0x774   : > { %8669 = vmatpush3.bf16.msra.mxu0 %v11303_v43  ;;  %8701 = vmatpush3.bf16.msra.mxu1 %v11307_v44 }
 0x775   : > { %8671 = vmatprep.subr.bf16.mxu0 %v11309_v45  ;;  %8703 = vmatprep.subr.bf16.mxu1 %v11321_v51 }
 0x778   : > { %8673 = vmatpush3.bf16.msra.mxu0 %v11339_v60  ;;  %8705 = vmatpush3.bf16.msra.mxu1 %v11343_v61 }
 0x779   : > { %8675 = vmatprep.subr.bf16.mxu0 %v11345_v62  ;;  %8707 = vmatprep.subr.bf16.mxu1 %v11357_v15  ;;  %v12314_v15 = vrot.slane %v2150_v55, %v2743_v30  ;;  %v13970_v30 = vld [vmem:[#allocation43_spill] sm:$0xff] }
 0x77b   : > { %13960 = vst [vmem:[#allocation116_spill] sm:$0xff] %v12314_v15 }
 0x77c   : > { %8677 = vmatpush3.bf16.msra.mxu0 %v11375_v21  ;;  %8709 = vmatpush3.bf16.msra.mxu1 %v11379_v22  ;;  %v12311_v22 = vrot.slane %v2150_v55, %v2735_v20  ;;  %v13969_v20 = vld [vmem:[#allocation42_spill] sm:$0xff] }
 0x77d   : > { %8711 = vmatprep.subr.bf16.mxu0 %v11381_v29  ;;  %8743 = vmatprep.subr.bf16.mxu1 %v11393_v36  ;;  %v12306_v29 = vrot.slane %v2150_v55, %v2739_v14  ;;  %v12308_v36 = vrot.slane %v2150_v55, %v2747_v10 }
 0x77e   : > { %13959 = vst [vmem:[#allocation115_spill] sm:$0xff] %v12311_v22 }
 0x77f   : > { %13957 = vst [vmem:[#allocation113_spill] sm:$0xff] %v12306_v29  ;;  %13958 = vst [vmem:[#allocation114_spill] sm:$0xff] %v12308_v36 }
 0x812   : > { %v2506_v5 = vpop.f32.mrb[4].mxu0  ;;  %v2577_v4 = vpop.f32.mrb[4].mxu1 }
 0x813   : > { %v2724_v47 = vadd.f32 %v2506_v5, %v10616_v0  ;;  %v2726_v21 = vadd.f32 %v2577_v4, %v10626_v2  ;;  %v2508_v62 = vpop.f32.mrb[5].mxu0  ;;  %v2579_v61 = vpop.f32.mrb[5].mxu1  ;;  %v13962_v2 = vld [vmem:[#allocation35_spill] sm:$0xff]  ;;  %v13971_v5 = vld [vmem:[#allocation44_spill] sm:$0xff]  ;;  %v13972_v4 = vld [vmem:[#allocation45_spill] sm:$0xff] }
 0x814   : > { %v2725_v60 = vadd.f32 %v2508_v62, %v10621_v1  ;;  %v2727_v51 = vadd.f32 %v2579_v61, %v10631_v3  ;;  %v13961_v1 = vld [vmem:[#allocation34_spill] sm:$0xff]  ;;  %v13963_v3 = vld [vmem:[#allocation36_spill] sm:$0xff]  ;;  %v13966_v61 = vld [vmem:[#allocation39_spill] sm:$0xff] }
 0x815   : > { %v12325_v0 = vadd.f32 %v12311_v22, %v2724_v47  ;;  %v12328_v10 = vadd.f32 %v12314_v15, %v2726_v21  ;;  %v13967_v62 = vld [vmem:[#allocation40_spill] sm:$0xff]  ;;  %v13968_v21 = vld [vmem:[#allocation41_spill] sm:$0xff]  ;;  %v13973_v47 = vld [vmem:[#allocation46_spill] sm:$0xff] }
 0x816   : > { %v12319_v45 = vadd.f32 %v12306_v29, %v2725_v60  ;;  %v12322_v14 = vadd.f32 %v12308_v36, %v2727_v51  ;;  %v13964_v51 = vld [vmem:[#allocation37_spill] sm:$0xff]  ;;  %v13965_v60 = vld [vmem:[#allocation38_spill] sm:$0xff]  ;;  %v13990_v15 = vld [vmem:[#allocation3_spill] sm:$0xff] }
 0x817   : > { %v13991_v22 = vld [vmem:[#allocation5_spill] sm:$0xff] }
 0x818   : > { %2864 = vmatprep.mubr.f32.mxu0 %v12319_v45  ;;  %2934 = vmatprep.mubr.f32.mxu1 %v12322_v14 }
 0x819   : > { %2865 = vmatmul.mubr.f32.vlgmr.msra.gmra.mrb[8].mxu0 %v12325_v0  ;;  %2935 = vmatmul.mubr.f32.vlgmr.msra.gmra.mrb[8].mxu1 %v12328_v10 }
 0x81a   : > { %8713 = vmatpush3.bf16.msra.mxu0 %v11411_v48  ;;  %8745 = vmatpush3.bf16.msra.mxu1 %v11415_v52  ;;  %v13988_v48 = vld [vmem:[#allocation55_spill] sm:$0xff] }
 0x81b   : > { %8715 = vmatprep.subr.bf16.mxu0 %v11417_v53  ;;  %8747 = vmatprep.subr.bf16.mxu1 %v11429_v63  ;;  %v13986_v53 = vld [vmem:[#allocation4_spill] sm:$0xff] }
 0x81e   : > { %8717 = vmatpush3.bf16.msra.mxu0 %v11449_v18  ;;  %8749 = vmatpush3.bf16.msra.mxu1 %v13961_v1  ;;  %v13985_v18 = vld [vmem:[#allocation2_spill] sm:$0xff] }
 0x81f   : > { %8719 = vmatprep.subr.bf16.mxu0 %v13962_v2  ;;  %8751 = vmatprep.subr.bf16.mxu1 %v13963_v3  ;;  %v13974_v3 = vld [vmem:[#allocation47_spill] sm:$0xff]  ;;  %v13981_v2 = vld [vmem:[#allocation53_spill] sm:$0xff] }
 0x822   : > { %8721 = vmatpush3.bf16.msra.mxu0 %v13964_v51  ;;  %8753 = vmatpush3.bf16.msra.mxu1 %v13965_v60  ;;  %v13975_v51 = vld [vmem:[#allocation48_spill] sm:$0xff]  ;;  %v13976_v60 = vld [vmem:[#allocation49_spill] sm:$0xff] }
 0x823   : > { %8723 = vmatprep.subr.bf16.mxu0 %v13966_v61  ;;  %8755 = vmatprep.subr.bf16.mxu1 %v13967_v62  ;;  %v13977_v61 = vld [vmem:[#allocation50_spill] sm:$0xff]  ;;  %v13978_v62 = vld [vmem:[#allocation51_spill] sm:$0xff] }
 0x826   : > { %8725 = vmatpush3.bf16.msra.mxu0 %v13968_v21  ;;  %8757 = vmatpush3.bf16.msra.mxu1 %v13969_v20  ;;  %v2751_v21 = vsub.s32 4, %v12297_v38  ;;  %v2755_v20 = vsub.s32 5, %v12297_v38 }
 0x827   : > { %8727 = vmatprep.subr.bf16.mxu0 %v13970_v30  ;;  %8759 = vmatprep.subr.bf16.mxu1 %v13971_v5  ;;  %v2763_v30 = vsub.s32 7, %v12297_v38  ;;  %v13979_v5 = vld [vmem:[#allocation52_spill] sm:$0xff] }
 0x829   : > { %v12368_v1 = vrot.slane %v2150_v55, %v2763_v30 }
 0x82a   : > { %8729 = vmatpush3.bf16.msra.mxu0 %v13972_v4  ;;  %8761 = vmatpush3.bf16.msra.mxu1 %v13973_v47  ;;  %v2759_v47 = vsub.s32 6, %v12297_v38 }
 0x82b   : > { %8731 = vmatprep.subr.bf16.mxu0 %v13974_v3  ;;  %8763 = vmatprep.subr.bf16.mxu1 %v13975_v51  ;;  %v12362_v3 = vrot.slane %v2150_v55, %v2751_v21  ;;  %13984 = vst [vmem:[#allocation119_spill] sm:$0xff] %v12368_v1  ;;  %v13989_v21 = vld [vmem:[#allocation56_spill] sm:$0xff] }
 0x82c   : > { %v12372_v52 = vrot.slane %v2150_v55, %v2759_v47  ;;  %v14005_v47 = vld [vmem:[#allocation67_spill] sm:$0xff] }
 0x82d   : > { %13980 = vst [vmem:[#allocation117_spill] sm:$0xff] %v12362_v3 }
 0x82e   : > { %8733 = vmatpush3.bf16.msra.mxu0 %v13976_v60  ;;  %8765 = vmatpush3.bf16.msra.mxu1 %v13977_v61  ;;  %v13982_v60 = vld [vmem:[#allocation54_spill] sm:$0xff]  ;;  %v12366_v61 = vrot.slane %v2150_v55, %v2755_v20  ;;  %13987 = vst [vmem:[#allocation120_spill] sm:$0xff] %v12372_v52 }
 0x82f   : > { %8735 = vmatprep.subr.bf16.mxu0 %v13978_v62  ;;  %8767 = vmatprep.subr.bf16.mxu1 %v13979_v5 }
 0x830   : > { %13983 = vst [vmem:[#allocation118_spill] sm:$0xff] %v12366_v61 }
 0x832   : > { %v2648_v4 = vpop.f32.mrb[6].mxu0  ;;  %v2719_v51 = vpop.f32.mrb[6].mxu1  ;;  %8737 = vmatpush3.bf16.msra.mxu0 %v13981_v2  ;;  %8769 = vmatpush3.bf16.msra.mxu1 %v13982_v60 }
 0x833   : > { %v2728_v63 = vadd.f32 %v2648_v4, %v13985_v18  ;;  %v2730_v62 = vadd.f32 %v2719_v51, %v13986_v53  ;;  %v2650_v5 = vpop.f32.mrb[7].mxu0  ;;  %v2721_v38 = vpop.f32.mrb[7].mxu1  ;;  %8739 = vmatprep.subr.bf16.mxu0 %v13988_v48  ;;  %8771 = vmatprep.subr.bf16.mxu1 %v13989_v21  ;;  %v13994_v18 = vld [vmem:[#allocation57_spill] sm:$0xff]  ;;  %v13995_v53 = vld [vmem:[#allocation58_spill] sm:$0xff]  ;;  %v13997_v4 = vld [vmem:[#allocation59_spill] sm:$0xff] }
 0x834   : > { %v2729_v2 = vadd.f32 %v2650_v5, %v13990_v15  ;;  %v2731_v60 = vadd.f32 %v2721_v38, %v13991_v22  ;;  %v13998_v15 = vld [vmem:[#allocation60_spill] sm:$0xff]  ;;  %v13999_v22 = vld [vmem:[#allocation61_spill] sm:$0xff]  ;;  %v14004_v5 = vld [vmem:[#allocation66_spill] sm:$0xff] }
 0x835   : > { %v12387_v55 = vadd.f32 %v12362_v3, %v2728_v63  ;;  %v12390_v51 = vadd.f32 %v12372_v52, %v2730_v62  ;;  %v14001_v63 = vld [vmem:[#allocation63_spill] sm:$0xff]  ;;  %v14003_v62 = vld [vmem:[#allocation65_spill] sm:$0xff]  ;;  %v14006_v38 = vld [vmem:[#allocation68_spill] sm:$0xff] }
 0x836   : > { %v12379_v20 = vadd.f32 %v12366_v61, %v2729_v2  ;;  %v12382_v30 = vadd.f32 %v12368_v1, %v2731_v60  ;;  %8741 = vmatpush3.bf16.msra.mxu0 %v13994_v18  ;;  %8773 = vmatpush3.bf16.msra.mxu1 %v13995_v53  ;;  %v14000_v2 = vld [vmem:[#allocation62_spill] sm:$0xff]  ;;  %v14002_v60 = vld [vmem:[#allocation64_spill] sm:$0xff]  ;;  %v14013_v52 = vld [vmem:[#allocation75_spill] sm:$0xff] }
 0x837   : > { %13996 = vst [vmem:[#allocation123_spill] sm:$0xff] %v12390_v51  ;;  %8775 = vmatprep.subr.bf16.mxu0 %v13997_v4  ;;  %8807 = vmatprep.subr.bf16.mxu1 %v13998_v15  ;;  %v14007_v15 = vld [vmem:[#allocation69_spill] sm:$0xff]  ;;  %v14012_v4 = vld [vmem:[#allocation74_spill] sm:$0xff] }
 0x838   : > { %13992 = vst [vmem:[#allocation121_spill] sm:$0xff] %v12379_v20  ;;  %13993 = vst [vmem:[#allocation122_spill] sm:$0xff] %v12382_v30  ;;  %3004 = vmatprep.mubr.f32.mxu0 %v12379_v20  ;;  %3074 = vmatprep.mubr.f32.mxu1 %v12382_v30  ;;  %v14031_v48 = vld [vmem:[#allocation93_spill] sm:$0xff] }
 0x839   : > { %3005 = vmatmul.mubr.f32.vlgmr.msra.gmra.mrb[10].mxu0 %v12387_v55  ;;  %3075 = vmatmul.mubr.f32.vlgmr.msra.gmra.mrb[10].mxu1 %v12390_v51  ;;  %v14032_v51 = vld [vmem:[#allocation94_spill] sm:$0xff] }
 0x83a   : > { %8777 = vmatpush1.bf16.msra.mxu0 %v13999_v22  ;;  %8809 = vmatpush1.bf16.msra.mxu1 %v14000_v2  ;;  %v14008_v22 = vld [vmem:[#allocation70_spill] sm:$0xff]  ;;  %v14009_v2 = vld [vmem:[#allocation71_spill] sm:$0xff] }
 0x83b   : > { %8779 = vmatprep.subr.bf16.mxu0 %v14001_v63  ;;  %8811 = vmatprep.subr.bf16.mxu1 %v14002_v60  ;;  %v14010_v63 = vld [vmem:[#allocation72_spill] sm:$0xff]  ;;  %v14011_v60 = vld [vmem:[#allocation73_spill] sm:$0xff] }
 0x83c   : > { %3145 = vmatprep.mubr.f32.mxu0 %v13943_v39  ;;  %3216 = vmatprep.mubr.f32.mxu1 %v13943_v39 }
 0x83e   : > { %8781 = vmatpush1.bf16.msra.mxu0 %v14003_v62  ;;  %8813 = vmatpush1.bf16.msra.mxu1 %v14004_v5  ;;  %v14014_v62 = vld [vmem:[#allocation76_spill] sm:$0xff]  ;;  %v14015_v5 = vld [vmem:[#allocation77_spill] sm:$0xff] }
 0x83f   : > { %8783 = vmatprep.subr.bf16.mxu0 %v14005_v47  ;;  %8815 = vmatprep.subr.bf16.mxu1 %v14006_v38  ;;  %v14016_v47 = vld [vmem:[#allocation78_spill] sm:$0xff]  ;;  %v14017_v38 = vld [vmem:[#allocation79_spill] sm:$0xff] }
 0x842   : > { %8785 = vmatpush1.bf16.msra.mxu0 %v14007_v15  ;;  %8817 = vmatpush1.bf16.msra.mxu1 %v14008_v22  ;;  %v14018_v15 = vld [vmem:[#allocation80_spill] sm:$0xff]  ;;  %v14019_v22 = vld [vmem:[#allocation81_spill] sm:$0xff] }
 0x843   : > { %8787 = vmatprep.subr.bf16.mxu0 %v14009_v2  ;;  %8819 = vmatprep.subr.bf16.mxu1 %v14010_v63  ;;  %v14020_v2 = vld [vmem:[#allocation82_spill] sm:$0xff]  ;;  %v14021_v63 = vld [vmem:[#allocation83_spill] sm:$0xff] }
 0x846   : > { %8789 = vmatpush1.bf16.msra.mxu0 %v14011_v60  ;;  %8821 = vmatpush1.bf16.msra.mxu1 %v14012_v4  ;;  %v14022_v60 = vld [vmem:[#allocation84_spill] sm:$0xff]  ;;  %v14023_v4 = vld [vmem:[#allocation85_spill] sm:$0xff] }
 0x847   : > { %8791 = vmatprep.subr.bf16.mxu0 %v14013_v52  ;;  %8823 = vmatprep.subr.bf16.mxu1 %v14014_v62  ;;  %v14024_v52 = vld [vmem:[#allocation86_spill] sm:$0xff]  ;;  %v14025_v62 = vld [vmem:[#allocation87_spill] sm:$0xff] }
 0x84a   : > { %8793 = vmatpush1.bf16.msra.mxu0 %v14015_v5  ;;  %8825 = vmatpush1.bf16.msra.mxu1 %v14016_v47  ;;  %v14026_v5 = vld [vmem:[#allocation88_spill] sm:$0xff]  ;;  %v14027_v47 = vld [vmem:[#allocation89_spill] sm:$0xff] }
 0x84b   : > { %8795 = vmatprep.subr.bf16.mxu0 %v14017_v38  ;;  %8827 = vmatprep.subr.bf16.mxu1 %v14018_v15  ;;  %v14028_v38 = vld [vmem:[#allocation90_spill] sm:$0xff]  ;;  %v14029_v15 = vld [vmem:[#allocation91_spill] sm:$0xff] }
 0x84e   : > { %8797 = vmatpush1.bf16.msra.mxu0 %v14019_v22  ;;  %8829 = vmatpush1.bf16.msra.mxu1 %v14020_v2  ;;  %v14030_v22 = vld [vmem:[#allocation92_spill] sm:$0xff] }
 0x84f   : > { %8799 = vmatprep.subr.bf16.mxu0 %v14021_v63  ;;  %8831 = vmatprep.subr.bf16.mxu1 %v14022_v60 }
 0x852   : > { %8801 = vmatpush1.bf16.msra.mxu0 %v14023_v4  ;;  %8833 = vmatpush1.bf16.msra.mxu1 %v14024_v52  ;;  %v7132_v4 = vld [vmem:[%s13563_s1 + $0x1f] ss:$0 sm:$0xff] }
 0x853   : > { %8803 = vmatprep.subr.bf16.mxu0 %v14025_v62  ;;  %8835 = vmatprep.subr.bf16.mxu1 %v14026_v5 }
 0x856   : > { %8805 = vmatpush1.bf16.msra.mxu0 %v14027_v47  ;;  %8837 = vmatpush1.bf16.msra.mxu1 %v14028_v38 }
 0x857   : > { %8839 = vmatprep.subr.bf16.mxu0 %v14029_v15  ;;  %8871 = vmatprep.subr.bf16.mxu1 %v14030_v22 }
 0x8ec   : > { %v7412_v2 = vpop.f32.mrb[8].mxu0  ;;  %v7447_v63 = vpop.f32.mrb[8].mxu1 }
 0x8ed   : > { %v7413_v60 = vpop.f32.mrb[9].mxu0  ;;  %v7448_v52 = vpop.f32.mrb[9].mxu1 }
 0x8ee   : > { %v7414_v3 = vadd.f32 %v7413_v60, %v7412_v2  ;;  %v7449_v62 = vadd.f32 %v7448_v52, %v7447_v63  ;;  %v14033_v52 = vld [vmem:[#allocation95_spill] sm:$0xff]  ;;  %v14042_v2 = vld [vmem:[#allocation104_spill] sm:$0xff]  ;;  %v14043_v63 = vld [vmem:[#allocation105_spill] sm:$0xff] }
 0x8ef   : > { %v14044_v60 = vld [vmem:[#allocation106_spill] sm:$0xff] }
 0x8f0   : > { %v2867_v53 = vadd.f32 %v7414_v3, %v7132_v4  ;;  %v14034_v3 = vld [vmem:[#allocation96_spill] sm:$0xff] }
 0x8f1   : > { %v14038_v4 = vld [vmem:[#allocation100_spill] sm:$0xff] }
 0x8f2   : > { %v2937_v5 = vadd.f32 %v7449_v62, %v2867_v53  ;;  %v14045_v62 = vld [vmem:[#allocation107_spill] sm:$0xff] }
 0x90c   : > { %v7482_v18 = vpop.f32.mrb[10].mxu0  ;;  %v7517_v47 = vpop.f32.mrb[10].mxu1 }
 0x90d   : > { %v7483_v1 = vpop.f32.mrb[11].mxu0  ;;  %v7518_v38 = vpop.f32.mrb[11].mxu1 }
 0x90e   : > { %v7484_v61 = vadd.f32 %v7483_v1, %v7482_v18  ;;  %v7519_v15 = vadd.f32 %v7518_v38, %v7517_v47  ;;  %v14037_v18 = vld [vmem:[#allocation99_spill] sm:$0xff]  ;;  %v14047_v47 = vld [vmem:[#allocation109_spill] sm:$0xff]  ;;  %v14048_v38 = vld [vmem:[#allocation110_spill] sm:$0xff] }
 0x910   : > { %v3007_v30 = vadd.f32 %v7484_v61, %v2937_v5  ;;  %v14035_v61 = vld [vmem:[#allocation97_spill] sm:$0xff]  ;;  %v14046_v5 = vld [vmem:[#allocation108_spill] sm:$0xff] }
 0x912   : > { %v3077_v22 = vadd.f32 %v7519_v15, %v3007_v30  ;;  %v14036_v30 = vld [vmem:[#allocation98_spill] sm:$0xff]  ;;  %v14039_v15 = vld [vmem:[#allocation101_spill] sm:$0xff] }
 0x914   : > { %10527 = vtanh.f32 %v3077_v22  ;;  %v14041_v22 = vld [vmem:[#allocation103_spill] sm:$0xff] }
 0x91e   : > { %v10528_v20 = vpop.eup %10527 }
 0x91f   : > { %3146 = vmatmul.mubr.f32.vlgmr.msra.gmra.mrb[12].mxu0 %v10528_v20  ;;  %3217 = vmatmul.mubr.f32.vlgmr.msra.gmra.mrb[12].mxu1 %v10528_v20  ;;  %v3381_v21 = vmul.f32 %v10528_v20, %v10528_v20 }
 0x920   : > { %8841 = vmatpush1.bf16.msra.mxu0 %v14031_v48  ;;  %8873 = vmatpush1.bf16.msra.mxu1 %v14032_v51 }
 0x921   : > { %8843 = vmatprep.subr.bf16.mxu0 %v14033_v52  ;;  %8875 = vmatprep.subr.bf16.mxu1 %v14034_v3  ;;  %v3382_v53 = vsub.f32 1.0, %v3381_v21  ;;  %v14040_v21 = vld [vmem:[#allocation102_spill] sm:$0xff] }
 0x922   : > { %3287 = vmatprep.mubr.f32.mxu0 %v13943_v39  ;;  %3358 = vmatprep.mubr.f32.mxu1 %v13943_v39 }
 0x923   : > { %v3383_v1 = vmul.f32 %v12048_v40, %v3382_v53  ;;  %v14049_v53 = vld [vmem:[#allocation111_spill] sm:$0xff] }
 0x924   : > { %8845 = vmatpush1.bf16.msra.mxu0 %v14035_v61  ;;  %8877 = vmatpush1.bf16.msra.mxu1 %v12043_v9 }
 0x925   : > { %3384 = vadd.xlane.f32.xlu0 %v3383_v1  ;;  %8847 = vmatprep.subr.bf16.mxu0 %v14036_v30  ;;  %v14050_v1 = vld [vmem:[#allocation112_spill] sm:$0xff] }
 0x926   : > { %8879 = vmatprep.subr.bf16.mxu1 %v14037_v18 }
 0x928   : > { %8849 = vmatpush1.bf16.msra.mxu0 %v14038_v4  ;;  %8881 = vmatpush1.bf16.msra.mxu1 %v14039_v15 }
 0x929   : > { %8851 = vmatprep.subr.bf16.mxu0 %v14040_v21  ;;  %8883 = vmatprep.subr.bf16.mxu1 %v14041_v22 }
 0x92c   : > { %8853 = vmatpush1.bf16.msra.mxu0 %v14042_v2  ;;  %8885 = vmatpush1.bf16.msra.mxu1 %v14043_v63 }
 0x92d   : > { %8855 = vmatprep.subr.bf16.mxu0 %v14044_v60  ;;  %8887 = vmatprep.subr.bf16.mxu1 %v14045_v62 }
 0x930   : > { %8857 = vmatpush1.bf16.msra.mxu0 %v14046_v5  ;;  %8889 = vmatpush1.bf16.msra.mxu1 %v14047_v47 }
 0x931   : > { %8859 = vmatprep.subr.bf16.mxu0 %v14048_v38  ;;  %8891 = vmatprep.subr.bf16.mxu1 %v14049_v53 }
 0x934   : > { %8861 = vmatpush1.bf16.msra.mxu0 %v12193_v31  ;;  %8893 = vmatpush1.bf16.msra.mxu1 %v14050_v1 }
 0x935   : > { %8863 = vmatprep.subr.bf16.mxu0 %v12205_v6  ;;  %8895 = vmatprep.subr.bf16.mxu1 %v12207_v16 }
 0x938   : > { %8865 = vmatpush1.bf16.msra.mxu0 %v12229_v46  ;;  %8897 = vmatpush1.bf16.msra.mxu1 %v12231_v35 }
 0x939   : > { %8867 = vmatprep.subr.bf16.mxu0 %v12238_v54  ;;  %8899 = vmatprep.subr.bf16.mxu1 %v12240_v17 }
 0x93c   : > { %8869 = vmatpush1.bf16.msra.mxu0 %v12253_v7  ;;  %8901 = vmatpush1.bf16.msra.mxu1 %v12255_v56 }
 0x93d   : > { %8903 = vmatprep.subr.bf16.mxu0 %v11093_v19  ;;  %8935 = vmatprep.subr.bf16.mxu1 %v11106_v24 }
 0x93f   : > { %3288 = vmatmul.mubr.f32.vlgmr.msra.gmra.mrb[14].mxu0 %v10528_v20  ;;  %3359 = vmatmul.mubr.f32.vlgmr.msra.gmra.mrb[14].mxu1 %v10528_v20  ;;  %v14051_v20 = vld [vmem:[#allocation19_spill] sm:$0xff] }
 0x940   : > { %8905 = vmatpush3.bf16.msra.mxu0 %v11104_v23  ;;  %8937 = vmatpush3.bf16.msra.mxu1 %v11118_v28 }
 0x941   : > { %8907 = vmatprep.subr.bf16.mxu0 %v11131_v32  ;;  %8939 = vmatprep.subr.bf16.mxu1 %v11145_v37 }
 0x944   : > { %8909 = vmatpush3.bf16.msra.mxu0 %v11133_v33  ;;  %8941 = vmatpush3.bf16.msra.mxu1 %v11157_v41 }
 0x945   : > { %8911 = vmatprep.subr.bf16.mxu0 %v11159_v42  ;;  %8943 = vmatprep.subr.bf16.mxu1 %v11183_v50 }
 0x948   : > { %8913 = vmatpush3.bf16.msra.mxu0 %v11181_v49  ;;  %8945 = vmatpush3.bf16.msra.mxu1 %v11196_v57 }
 0x949   : > { %8915 = vmatprep.subr.bf16.mxu0 %v11198_v59  ;;  %8947 = vmatprep.subr.bf16.mxu1 %v11210_v58  ;;  %v14064_v59 = vld [vmem:[#allocation116_spill] sm:$0xff] }
 0x94c   : > { %8917 = vmatpush3.bf16.msra.mxu0 %v11225_v8  ;;  %8949 = vmatpush3.bf16.msra.mxu1 %v11235_v11  ;;  %v14052_v8 = vld [vmem:[#allocation20_spill] sm:$0xff]  ;;  %v14053_v11 = vld [vmem:[#allocation21_spill] sm:$0xff] }
 0x94d   : > { %8919 = vmatprep.subr.bf16.mxu0 %v11237_v12  ;;  %8951 = vmatprep.subr.bf16.mxu1 %v11249_v13  ;;  %v14054_v12 = vld [vmem:[#allocation22_spill] sm:$0xff]  ;;  %v14055_v13 = vld [vmem:[#allocation23_spill] sm:$0xff] }
 0x950   : > { %8921 = vmatpush3.bf16.msra.mxu0 %v11267_v26  ;;  %8953 = vmatpush3.bf16.msra.mxu1 %v11271_v27  ;;  %v14056_v26 = vld [vmem:[#allocation24_spill] sm:$0xff]  ;;  %v14057_v27 = vld [vmem:[#allocation25_spill] sm:$0xff] }
 0x951   : > { %8923 = vmatprep.subr.bf16.mxu0 %v11273_v25  ;;  %8955 = vmatprep.subr.bf16.mxu1 %v11285_v34  ;;  %v14058_v25 = vld [vmem:[#allocation26_spill] sm:$0xff]  ;;  %v14059_v34 = vld [vmem:[#allocation27_spill] sm:$0xff] }
 0x954   : > { %8925 = vmatpush3.bf16.msra.mxu0 %v11303_v43  ;;  %8957 = vmatpush3.bf16.msra.mxu1 %v11307_v44  ;;  %v14060_v43 = vld [vmem:[#allocation28_spill] sm:$0xff] }
 0x955   : > { %8927 = vmatprep.subr.bf16.mxu0 %v14051_v20  ;;  %8959 = vmatprep.subr.bf16.mxu1 %v14052_v8 }
 0x958   : > { %8929 = vmatpush3.bf16.msra.mxu0 %v14053_v11  ;;  %8961 = vmatpush3.bf16.msra.mxu1 %v14054_v12 }
 0x959   : > { %8931 = vmatprep.subr.bf16.mxu0 %v14055_v13  ;;  %8963 = vmatprep.subr.bf16.mxu1 %v14056_v26 }
 0x95c   : > { %8933 = vmatpush3.bf16.msra.mxu0 %v14057_v27  ;;  %8965 = vmatpush3.bf16.msra.mxu1 %v14058_v25 }
 0x95d   : > { %8967 = vmatprep.subr.bf16.mxu0 %v14059_v34  ;;  %8999 = vmatprep.subr.bf16.mxu1 %v14060_v43  ;;  %v14063_v34 = vld [vmem:[#allocation115_spill] sm:$0xff] }
 0x9f2   : > { %v3147_v44 = vpop.f32.mrb[12].mxu0  ;;  %v3218_v20 = vpop.f32.mrb[12].mxu1 }
 0x9f3   : > { %v3365_v8 = vadd.f32 %v3147_v44, %v12325_v0  ;;  %v3367_v11 = vadd.f32 %v3218_v20, %v12328_v10  ;;  %v3149_v58 = vpop.f32.mrb[13].mxu0  ;;  %v3220_v12 = vpop.f32.mrb[13].mxu1  ;;  %v14071_v44 = vld [vmem:[#allocation35_spill] sm:$0xff]  ;;  %v14074_v0 = vld [vmem:[#allocation38_spill] sm:$0xff]  ;;  %v14076_v20 = vld [vmem:[#allocation40_spill] sm:$0xff] }
 0x9f4   : > { %v3366_v13 = vadd.f32 %v3149_v58, %v12319_v45  ;;  %v3368_v26 = vadd.f32 %v3220_v12, %v12322_v14  ;;  %v14065_v58 = vld [vmem:[#allocation29_spill] sm:$0xff]  ;;  %v14066_v12 = vld [vmem:[#allocation30_spill] sm:$0xff]  ;;  %v14072_v45 = vld [vmem:[#allocation36_spill] sm:$0xff] }
 0x9f5   : > { %v12513_v43 = vadd.f32 %v3365_v8, %v14063_v34  ;;  %v12516_v57 = vadd.f32 %v3367_v11, %v14064_v59  ;;  %v14069_v8 = vld [vmem:[#allocation33_spill] sm:$0xff]  ;;  %v14070_v11 = vld [vmem:[#allocation34_spill] sm:$0xff]  ;;  %v14075_v10 = vld [vmem:[#allocation39_spill] sm:$0xff] }
 0x9f6   : > { %v12507_v27 = vadd.f32 %v3366_v13, %v12306_v29  ;;  %v12510_v25 = vadd.f32 %v3368_v26, %v12308_v36  ;;  %v14067_v13 = vld [vmem:[#allocation31_spill] sm:$0xff]  ;;  %v14068_v26 = vld [vmem:[#allocation32_spill] sm:$0xff]  ;;  %v14073_v14 = vld [vmem:[#allocation37_spill] sm:$0xff] }
 0x9f7   : > { %v14092_v34 = vld [vmem:[#allocation55_spill] sm:$0xff]  ;;  %v14095_v36 = vld [vmem:[#allocation122_spill] sm:$0xff] }
 0x9f8   : > { %14061 = vst [vmem:[#allocation93_spill] sm:$0xff] %v12507_v27  ;;  %14062 = vst [vmem:[#allocation94_spill] sm:$0xff] %v12510_v25  ;;  %3458 = vmatprep.mubr.f32.mxu0 %v12507_v27  ;;  %3528 = vmatprep.mubr.f32.mxu1 %v12510_v25  ;;  %v14096_v29 = vld [vmem:[#allocation118_spill] sm:$0xff] }
 0x9f9   : > { %3459 = vmatmul.mubr.f32.vlgmr.msra.gmra.mrb[16].mxu0 %v12513_v43  ;;  %3529 = vmatmul.mubr.f32.vlgmr.msra.gmra.mrb[16].mxu1 %v12516_v57 }
 0x9fa   : > { %8969 = vmatpush3.bf16.msra.mxu0 %v14065_v58  ;;  %9001 = vmatpush3.bf16.msra.mxu1 %v14066_v12  ;;  %v14077_v12 = vld [vmem:[#allocation41_spill] sm:$0xff] }
 0x9fb   : > { %8971 = vmatprep.subr.bf16.mxu0 %v14067_v13  ;;  %9003 = vmatprep.subr.bf16.mxu1 %v14068_v26  ;;  %v14078_v13 = vld [vmem:[#allocation42_spill] sm:$0xff]  ;;  %v14079_v26 = vld [vmem:[#allocation43_spill] sm:$0xff]  ;;  %v14089_v58 = vld [vmem:[#allocation53_spill] sm:$0xff] }
 0x9fe   : > { %8973 = vmatpush3.bf16.msra.mxu0 %v14069_v8  ;;  %9005 = vmatpush3.bf16.msra.mxu1 %v14070_v11  ;;  %v14080_v8 = vld [vmem:[#allocation44_spill] sm:$0xff]  ;;  %v14081_v11 = vld [vmem:[#allocation45_spill] sm:$0xff] }
 0x9ff   : > { %8975 = vmatprep.subr.bf16.mxu0 %v14071_v44  ;;  %9007 = vmatprep.subr.bf16.mxu1 %v14072_v45  ;;  %v14082_v44 = vld [vmem:[#allocation46_spill] sm:$0xff]  ;;  %v14083_v45 = vld [vmem:[#allocation47_spill] sm:$0xff] }
 0xa02   : > { %8977 = vmatpush3.bf16.msra.mxu0 %v14073_v14  ;;  %9009 = vmatpush3.bf16.msra.mxu1 %v14074_v0  ;;  %v14084_v14 = vld [vmem:[#allocation48_spill] sm:$0xff]  ;;  %v14085_v0 = vld [vmem:[#allocation49_spill] sm:$0xff] }
 0xa03   : > { %8979 = vmatprep.subr.bf16.mxu0 %v14075_v10  ;;  %9011 = vmatprep.subr.bf16.mxu1 %v14076_v20  ;;  %v14086_v10 = vld [vmem:[#allocation50_spill] sm:$0xff]  ;;  %v14087_v20 = vld [vmem:[#allocation51_spill] sm:$0xff] }
 0xa06   : > { %8981 = vmatpush3.bf16.msra.mxu0 %v14077_v12  ;;  %9013 = vmatpush3.bf16.msra.mxu1 %v14078_v13  ;;  %v14088_v12 = vld [vmem:[#allocation52_spill] sm:$0xff] }
 0xa07   : > { %8983 = vmatprep.subr.bf16.mxu0 %v14079_v26  ;;  %9015 = vmatprep.subr.bf16.mxu1 %v14080_v8  ;;  %v14090_v8 = vld [vmem:[#allocation54_spill] sm:$0xff] }
 0xa0a   : > { %8985 = vmatpush3.bf16.msra.mxu0 %v14081_v11  ;;  %9017 = vmatpush3.bf16.msra.mxu1 %v14082_v44  ;;  %v14091_v11 = vld [vmem:[#allocation123_spill] sm:$0xff] }
 0xa0b   : > { %8987 = vmatprep.subr.bf16.mxu0 %v14083_v45  ;;  %9019 = vmatprep.subr.bf16.mxu1 %v14084_v14 }
 0xa0e   : > { %8989 = vmatpush3.bf16.msra.mxu0 %v14085_v0  ;;  %9021 = vmatpush3.bf16.msra.mxu1 %v14086_v10  ;;  %v14093_v0 = vld [vmem:[#allocation56_spill] sm:$0xff]  ;;  %v14094_v10 = vld [vmem:[#allocation121_spill] sm:$0xff] }
 0xa0f   : > { %8991 = vmatprep.subr.bf16.mxu0 %v14087_v20  ;;  %9023 = vmatprep.subr.bf16.mxu1 %v14088_v12 }
 0xa12   : > { %v3289_v13 = vpop.f32.mrb[14].mxu0  ;;  %v3360_v26 = vpop.f32.mrb[14].mxu1  ;;  %8993 = vmatpush3.bf16.msra.mxu0 %v14089_v58  ;;  %9025 = vmatpush3.bf16.msra.mxu1 %v14090_v8  ;;  %v14098_v58 = vld [vmem:[#allocation119_spill] sm:$0xff]  ;;  %v14100_v8 = vld [vmem:[#allocation57_spill] sm:$0xff] }
 0xa13   : > { %v3369_v44 = vadd.f32 %v3289_v13, %v12387_v55  ;;  %v3371_v45 = vadd.f32 %v3360_v26, %v14091_v11  ;;  %v3291_v59 = vpop.f32.mrb[15].mxu0  ;;  %v3362_v14 = vpop.f32.mrb[15].mxu1  ;;  %8995 = vmatprep.subr.bf16.mxu0 %v14092_v34  ;;  %9027 = vmatprep.subr.bf16.mxu1 %v14093_v0  ;;  %v14101_v55 = vld [vmem:[#allocation58_spill] sm:$0xff]  ;;  %v14102_v13 = vld [vmem:[#allocation117_spill] sm:$0xff]  ;;  %v14104_v11 = vld [vmem:[#allocation120_spill] sm:$0xff] }
 0xa14   : > { %v3370_v20 = vadd.f32 %v3291_v59, %v14094_v10  ;;  %v3372_v12 = vadd.f32 %v3362_v14, %v14095_v36  ;;  %v14106_v0 = vld [vmem:[#allocation59_spill] sm:$0xff]  ;;  %v14107_v59 = vld [vmem:[#allocation60_spill] sm:$0xff]  ;;  %v14108_v36 = vld [vmem:[#allocation61_spill] sm:$0xff] }
 0xa15   : > { %v12563_v26 = vadd.f32 %v3369_v44, %v14102_v13  ;;  %v12566_v34 = vadd.f32 %v3371_v45, %v14104_v11  ;;  %v14110_v44 = vld [vmem:[#allocation63_spill] sm:$0xff]  ;;  %v14111_v45 = vld [vmem:[#allocation64_spill] sm:$0xff]  ;;  %v14112_v14 = vld [vmem:[#allocation65_spill] sm:$0xff] }
 0xa16   : > { %v12555_v25 = vadd.f32 %v3370_v20, %v14096_v29  ;;  %v12558_v27 = vadd.f32 %v3372_v12, %v14098_v58  ;;  %8997 = vmatpush3.bf16.msra.mxu0 %v14100_v8  ;;  %9029 = vmatpush3.bf16.msra.mxu1 %v14101_v55  ;;  %v14109_v12 = vld [vmem:[#allocation62_spill] sm:$0xff]  ;;  %v14114_v20 = vld [vmem:[#allocation67_spill] sm:$0xff] }
 0xa17   : > { %14103 = vst [vmem:[#allocation97_spill] sm:$0xff] %v12563_v26  ;;  %14105 = vst [vmem:[#allocation98_spill] sm:$0xff] %v12566_v34  ;;  %9031 = vmatprep.subr.bf16.mxu0 %v14106_v0  ;;  %9063 = vmatprep.subr.bf16.mxu1 %v14107_v59  ;;  %v14113_v10 = vld [vmem:[#allocation66_spill] sm:$0xff]  ;;  %v14115_v59 = vld [vmem:[#allocation68_spill] sm:$0xff] }
 0xa18   : > { %14097 = vst [vmem:[#allocation95_spill] sm:$0xff] %v12555_v25  ;;  %14099 = vst [vmem:[#allocation96_spill] sm:$0xff] %v12558_v27  ;;  %3598 = vmatprep.mubr.f32.mxu0 %v12555_v25  ;;  %3668 = vmatprep.mubr.f32.mxu1 %v12558_v27  ;;  %v14116_v0 = vld [vmem:[#allocation69_spill] sm:$0xff]  ;;  %v14121_v11 = vld [vmem:[#allocation74_spill] sm:$0xff] }
 0xa19   : > { %3599 = vmatmul.mubr.f32.vlgmr.msra.gmra.mrb[18].mxu0 %v12563_v26  ;;  %3669 = vmatmul.mubr.f32.vlgmr.msra.gmra.mrb[18].mxu1 %v12566_v34  ;;  %v14122_v13 = vld [vmem:[#allocation75_spill] sm:$0xff] }
 0xa1a   : > { %9033 = vmatpush1.bf16.msra.mxu0 %v14108_v36  ;;  %9065 = vmatpush1.bf16.msra.mxu1 %v14109_v12  ;;  %v14117_v36 = vld [vmem:[#allocation70_spill] sm:$0xff]  ;;  %v14118_v12 = vld [vmem:[#allocation71_spill] sm:$0xff] }
 0xa1b   : > { %9035 = vmatprep.subr.bf16.mxu0 %v14110_v44  ;;  %9067 = vmatprep.subr.bf16.mxu1 %v14111_v45  ;;  %v14119_v44 = vld [vmem:[#allocation72_spill] sm:$0xff]  ;;  %v14120_v45 = vld [vmem:[#allocation73_spill] sm:$0xff] }
 0xa1c   : > { %3739 = vmatprep.mubr.f32.mxu0 %v13943_v39  ;;  %3810 = vmatprep.mubr.f32.mxu1 %v13943_v39 }
 0xa1e   : > { %9037 = vmatpush1.bf16.msra.mxu0 %v14112_v14  ;;  %9069 = vmatpush1.bf16.msra.mxu1 %v14113_v10  ;;  %v14123_v14 = vld [vmem:[#allocation76_spill] sm:$0xff]  ;;  %v14124_v10 = vld [vmem:[#allocation77_spill] sm:$0xff] }
 0xa1f   : > { %9039 = vmatprep.subr.bf16.mxu0 %v14114_v20  ;;  %9071 = vmatprep.subr.bf16.mxu1 %v14115_v59  ;;  %v14125_v20 = vld [vmem:[#allocation78_spill] sm:$0xff]  ;;  %v14126_v59 = vld [vmem:[#allocation79_spill] sm:$0xff] }
 0xa22   : > { %9041 = vmatpush1.bf16.msra.mxu0 %v14116_v0  ;;  %9073 = vmatpush1.bf16.msra.mxu1 %v14117_v36  ;;  %v14127_v0 = vld [vmem:[#allocation80_spill] sm:$0xff]  ;;  %v14128_v36 = vld [vmem:[#allocation81_spill] sm:$0xff] }
 0xa23   : > { %9043 = vmatprep.subr.bf16.mxu0 %v14118_v12  ;;  %9075 = vmatprep.subr.bf16.mxu1 %v14119_v44  ;;  %v14129_v12 = vld [vmem:[#allocation82_spill] sm:$0xff]  ;;  %v14130_v44 = vld [vmem:[#allocation83_spill] sm:$0xff] }
 0xa26   : > { %9045 = vmatpush1.bf16.msra.mxu0 %v14120_v45  ;;  %9077 = vmatpush1.bf16.msra.mxu1 %v14121_v11  ;;  %v14131_v45 = vld [vmem:[#allocation84_spill] sm:$0xff]  ;;  %v14132_v11 = vld [vmem:[#allocation85_spill] sm:$0xff] }
 0xa27   : > { %9047 = vmatprep.subr.bf16.mxu0 %v14122_v13  ;;  %9079 = vmatprep.subr.bf16.mxu1 %v14123_v14  ;;  %v14133_v13 = vld [vmem:[#allocation86_spill] sm:$0xff]  ;;  %v14134_v14 = vld [vmem:[#allocation87_spill] sm:$0xff] }
 0xa2a   : > { %9049 = vmatpush1.bf16.msra.mxu0 %v14124_v10  ;;  %9081 = vmatpush1.bf16.msra.mxu1 %v14125_v20  ;;  %v14135_v10 = vld [vmem:[#allocation88_spill] sm:$0xff]  ;;  %v14136_v20 = vld [vmem:[#allocation89_spill] sm:$0xff] }
 0xa2b   : > { %9051 = vmatprep.subr.bf16.mxu0 %v14126_v59  ;;  %9083 = vmatprep.subr.bf16.mxu1 %v14127_v0  ;;  %v14137_v59 = vld [vmem:[#allocation90_spill] sm:$0xff]  ;;  %v14138_v0 = vld [vmem:[#allocation91_spill] sm:$0xff] }
 0xa2e   : > { %9053 = vmatpush1.bf16.msra.mxu0 %v14128_v36  ;;  %9085 = vmatpush1.bf16.msra.mxu1 %v14129_v12  ;;  %v14139_v36 = vld [vmem:[#allocation92_spill] sm:$0xff] }
 0xa2f   : > { %9055 = vmatprep.subr.bf16.mxu0 %v14130_v44  ;;  %9087 = vmatprep.subr.bf16.mxu1 %v14131_v45 }
 0xa32   : > { %9057 = vmatpush1.bf16.msra.mxu0 %v14132_v11  ;;  %9089 = vmatpush1.bf16.msra.mxu1 %v14133_v13  ;;  %v7133_v11 = vld [vmem:[%s13563_s1 + $0x20] ss:$0 sm:$0xff] }
 0xa33   : > { %9059 = vmatprep.subr.bf16.mxu0 %v14134_v14  ;;  %9091 = vmatprep.subr.bf16.mxu1 %v14135_v10 }
 0xa36   : > { %9061 = vmatpush1.bf16.msra.mxu0 %v14136_v20  ;;  %9093 = vmatpush1.bf16.msra.mxu1 %v14137_v59 }
 0xa37   : > { %9095 = vmatprep.subr.bf16.mxu0 %v14138_v0  ;;  %9127 = vmatprep.subr.bf16.mxu1 %v14139_v36 }
 0xacc   : > { %v7552_v12 = vpop.f32.mrb[16].mxu0  ;;  %v7587_v44 = vpop.f32.mrb[16].mxu1 }
 0xacd   : > { %v7553_v45 = vpop.f32.mrb[17].mxu0  ;;  %v7588_v13 = vpop.f32.mrb[17].mxu1 }
 0xace   : > { %v7554_v55 = vadd.f32 %v7553_v45, %v7552_v12  ;;  %v7589_v14 = vadd.f32 %v7588_v13, %v7587_v44  ;;  %v14147_v13 = vld [vmem:[#allocation13_spill] sm:$0xff]  ;;  %v14152_v12 = vld [vmem:[#allocation18_spill] sm:$0xff]  ;;  %v14153_v44 = vld [vmem:[#allocation19_spill] sm:$0xff] }
 0xacf   : > { %v14154_v45 = vld [vmem:[#allocation20_spill] sm:$0xff] }
 0xad0   : > { %v3461_v8 = vadd.f32 %v7554_v55, %v7133_v11  ;;  %v14146_v55 = vld [vmem:[#allocation12_spill] sm:$0xff]  ;;  %v14149_v11 = vld [vmem:[#allocation15_spill] sm:$0xff] }
 0xad2   : > { %v3531_v10 = vadd.f32 %v7589_v14, %v3461_v8  ;;  %v14155_v14 = vld [vmem:[#allocation21_spill] sm:$0xff] }
 0xaec   : > { %v7622_v58 = vpop.f32.mrb[18].mxu0  ;;  %v7657_v20 = vpop.f32.mrb[18].mxu1 }
 0xaed   : > { %v7623_v29 = vpop.f32.mrb[19].mxu0  ;;  %v7658_v59 = vpop.f32.mrb[19].mxu1 }
 0xaee   : > { %v7624_v27 = vadd.f32 %v7623_v29, %v7622_v58  ;;  %v7659_v0 = vadd.f32 %v7658_v59, %v7657_v20  ;;  %v14142_v29 = vld [vmem:[#allocation8_spill] sm:$0xff]  ;;  %v14144_v58 = vld [vmem:[#allocation10_spill] sm:$0xff]  ;;  %v14157_v20 = vld [vmem:[#allocation23_spill] sm:$0xff] }
 0xaef   : > { %v14150_v59 = vld [vmem:[#allocation16_spill] sm:$0xff] }
 0xaf0   : > { %v3601_v25 = vadd.f32 %v7624_v27, %v3531_v10  ;;  %v14156_v10 = vld [vmem:[#allocation22_spill] sm:$0xff] }
 0xaf2   : > { %v3671_v36 = vadd.f32 %v7659_v0, %v3601_v25  ;;  %v14140_v25 = vld [vmem:[#allocation6_spill] sm:$0xff]  ;;  %v14145_v0 = vld [vmem:[#allocation11_spill] sm:$0xff] }
 0xaf4   : > { %10529 = vtanh.f32 %v3671_v36  ;;  %v14151_v36 = vld [vmem:[#allocation17_spill] sm:$0xff] }
 0xafe   : > { %v10530_v34 = vpop.eup %10529 }
 0xaff   : > { %3740 = vmatmul.mubr.f32.vlgmr.msra.gmra.mrb[20].mxu0 %v10530_v34  ;;  %3811 = vmatmul.mubr.f32.vlgmr.msra.gmra.mrb[20].mxu1 %v10530_v34  ;;  %v3975_v26 = vmul.f32 %v10530_v34, %v10530_v34 }
 0xb00   : > { %9097 = vmatpush1.bf16.msra.mxu0 %v14031_v48  ;;  %9129 = vmatpush1.bf16.msra.mxu1 %v14032_v51 }
 0xb01   : > { %9099 = vmatprep.subr.bf16.mxu0 %v14033_v52  ;;  %9131 = vmatprep.subr.bf16.mxu1 %v14034_v3  ;;  %v3976_v8 = vsub.f32 1.0, %v3975_v26  ;;  %v14148_v26 = vld [vmem:[#allocation14_spill] sm:$0xff] }
 0xb02   : > { %3881 = vmatprep.mubr.f32.mxu0 %v13943_v39  ;;  %3952 = vmatprep.mubr.f32.mxu1 %v13943_v39 }
 0xb03   : > { %v3977_v27 = vmul.f32 %v12048_v40, %v3976_v8  ;;  %v14143_v40 = vld [vmem:[#allocation9_spill] sm:$0xff]  ;;  %v14158_v8 = vld [vmem:[#allocation24_spill] sm:$0xff] }
 0xb04   : > { %9101 = vmatpush1.bf16.msra.mxu0 %v14035_v61  ;;  %9133 = vmatpush1.bf16.msra.mxu1 %v12043_v9 }
 0xb05   : > { %3978 = vadd.xlane.f32.xlu1 %v3977_v27  ;;  %9103 = vmatprep.subr.bf16.mxu0 %v14036_v30  ;;  %v14159_v27 = vld [vmem:[#allocation25_spill] sm:$0xff] }
 0xb06   : > { %9135 = vmatprep.subr.bf16.mxu1 %v14037_v18 }
 0xb08   : > { %9105 = vmatpush1.bf16.msra.mxu0 %v14038_v4  ;;  %9137 = vmatpush1.bf16.msra.mxu1 %v14039_v15 }
 0xb09   : > { %9107 = vmatprep.subr.bf16.mxu0 %v14040_v21  ;;  %9139 = vmatprep.subr.bf16.mxu1 %v14041_v22 }
 0xb0c   : > { %9109 = vmatpush1.bf16.msra.mxu0 %v14042_v2  ;;  %9141 = vmatpush1.bf16.msra.mxu1 %v14043_v63 }
 0xb0d   : > { %9111 = vmatprep.subr.bf16.mxu0 %v14044_v60  ;;  %9143 = vmatprep.subr.bf16.mxu1 %v14045_v62 }
 0xb10   : > { %9113 = vmatpush1.bf16.msra.mxu0 %v14046_v5  ;;  %9145 = vmatpush1.bf16.msra.mxu1 %v14047_v47 }
 0xb11   : > { %9115 = vmatprep.subr.bf16.mxu0 %v14048_v38  ;;  %9147 = vmatprep.subr.bf16.mxu1 %v14049_v53 }
 0xb14   : > { %9117 = vmatpush1.bf16.msra.mxu0 %v12193_v31  ;;  %9149 = vmatpush1.bf16.msra.mxu1 %v14050_v1 }
 0xb15   : > { %9119 = vmatprep.subr.bf16.mxu0 %v12205_v6  ;;  %9151 = vmatprep.subr.bf16.mxu1 %v12207_v16 }
 0xb18   : > { %9121 = vmatpush1.bf16.msra.mxu0 %v12229_v46  ;;  %9153 = vmatpush1.bf16.msra.mxu1 %v12231_v35 }
 0xb19   : > { %9123 = vmatprep.subr.bf16.mxu0 %v12238_v54  ;;  %9155 = vmatprep.subr.bf16.mxu1 %v12240_v17 }
 0xb1c   : > { %9125 = vmatpush1.bf16.msra.mxu0 %v12253_v7  ;;  %9157 = vmatpush1.bf16.msra.mxu1 %v12255_v56 }
 0xb1d   : > { %9159 = vmatprep.subr.bf16.mxu0 %v11093_v19  ;;  %9191 = vmatprep.subr.bf16.mxu1 %v11106_v24 }
 0xb1f   : > { %3882 = vmatmul.mubr.f32.vlgmr.msra.gmra.mrb[22].mxu0 %v10530_v34  ;;  %3953 = vmatmul.mubr.f32.vlgmr.msra.gmra.mrb[22].mxu1 %v10530_v34  ;;  %v14141_v34 = vld [vmem:[#allocation7_spill] sm:$0xff] }
 0xb20   : > { %9161 = vmatpush3.bf16.msra.mxu0 %v11104_v23  ;;  %9193 = vmatpush3.bf16.msra.mxu1 %v11118_v28 }
 0xb21   : > { %9163 = vmatprep.subr.bf16.mxu0 %v11131_v32  ;;  %9195 = vmatprep.subr.bf16.mxu1 %v11145_v37 }
 0xb24   : > { %9165 = vmatpush3.bf16.msra.mxu0 %v11133_v33  ;;  %9197 = vmatpush3.bf16.msra.mxu1 %v11157_v41 }
 0xb25   : > { %9167 = vmatprep.subr.bf16.mxu0 %v11159_v42  ;;  %9199 = vmatprep.subr.bf16.mxu1 %v11183_v50 }
 0xb28   : > { %9169 = vmatpush3.bf16.msra.mxu0 %v11181_v49  ;;  %9201 = vmatpush3.bf16.msra.mxu1 %v14140_v25 }
 0xb29   : > { %9171 = vmatprep.subr.bf16.mxu0 %v14141_v34  ;;  %9203 = vmatprep.subr.bf16.mxu1 %v14142_v29 }
 0xb2c   : > { %9173 = vmatpush3.bf16.msra.mxu0 %v14143_v40  ;;  %9205 = vmatpush3.bf16.msra.mxu1 %v14144_v58  ;;  %v14170_v40 = vld [vmem:[#allocation116_spill] sm:$0xff] }
 0xb2d   : > { %9175 = vmatprep.subr.bf16.mxu0 %v14145_v0  ;;  %9207 = vmatprep.subr.bf16.mxu1 %v14146_v55  ;;  %v14164_v55 = vld [vmem:[#allocation94_spill] sm:$0xff]  ;;  %v14165_v0 = vld [vmem:[#allocation113_spill] sm:$0xff] }
 0xb30   : > { %9177 = vmatpush3.bf16.msra.mxu0 %v14147_v13  ;;  %9209 = vmatpush3.bf16.msra.mxu1 %v14148_v26  ;;  %v14163_v13 = vld [vmem:[#allocation93_spill] sm:$0xff] }
 0xb31   : > { %9179 = vmatprep.subr.bf16.mxu0 %v14149_v11  ;;  %9211 = vmatprep.subr.bf16.mxu1 %v14150_v59  ;;  %v14160_v11 = vld [vmem:[#allocation26_spill] sm:$0xff]  ;;  %v14161_v59 = vld [vmem:[#allocation27_spill] sm:$0xff] }
 0xb34   : > { %9181 = vmatpush3.bf16.msra.mxu0 %v14151_v36  ;;  %9213 = vmatpush3.bf16.msra.mxu1 %v14152_v12  ;;  %v14162_v36 = vld [vmem:[#allocation28_spill] sm:$0xff] }
 0xb35   : > { %9183 = vmatprep.subr.bf16.mxu0 %v14153_v44  ;;  %9215 = vmatprep.subr.bf16.mxu1 %v14154_v45 }
 0xb38   : > { %9185 = vmatpush3.bf16.msra.mxu0 %v14155_v14  ;;  %9217 = vmatpush3.bf16.msra.mxu1 %v14156_v10 }
 0xb39   : > { %9187 = vmatprep.subr.bf16.mxu0 %v14157_v20  ;;  %9219 = vmatprep.subr.bf16.mxu1 %v14158_v8 }
 0xb3c   : > { %9189 = vmatpush3.bf16.msra.mxu0 %v14159_v27  ;;  %9221 = vmatpush3.bf16.msra.mxu1 %v14160_v11  ;;  %v14167_v11 = vld [vmem:[#allocation114_spill] sm:$0xff] }
 0xb3d   : > { %9223 = vmatprep.subr.bf16.mxu0 %v14161_v59  ;;  %9255 = vmatprep.subr.bf16.mxu1 %v14162_v36  ;;  %v14169_v59 = vld [vmem:[#allocation115_spill] sm:$0xff] }
 0xbd2   : > { %v3741_v12 = vpop.f32.mrb[20].mxu0  ;;  %v3812_v44 = vpop.f32.mrb[20].mxu1 }
 0xbd3   : > { %v3959_v45 = vadd.f32 %v3741_v12, %v12513_v43  ;;  %v3961_v14 = vadd.f32 %v3812_v44, %v12516_v57  ;;  %v3743_v26 = vpop.f32.mrb[21].mxu0  ;;  %v3814_v10 = vpop.f32.mrb[21].mxu1  ;;  %v14172_v57 = vld [vmem:[#allocation29_spill] sm:$0xff]  ;;  %v14173_v43 = vld [vmem:[#allocation30_spill] sm:$0xff]  ;;  %v14178_v44 = vld [vmem:[#allocation35_spill] sm:$0xff] }
 0xbd4   : > { %v3960_v20 = vadd.f32 %v3743_v26, %v14163_v13  ;;  %v3962_v8 = vadd.f32 %v3814_v10, %v14164_v55  ;;  %v14174_v55 = vld [vmem:[#allocation31_spill] sm:$0xff]  ;;  %v14175_v13 = vld [vmem:[#allocation32_spill] sm:$0xff]  ;;  %v14176_v26 = vld [vmem:[#allocation33_spill] sm:$0xff] }
 0xbd5   : > { %v12689_v36 = vadd.f32 %v3959_v45, %v14169_v59  ;;  %v12692_v29 = vadd.f32 %v3961_v14, %v14170_v40  ;;  %v14177_v12 = vld [vmem:[#allocation34_spill] sm:$0xff]  ;;  %v14179_v45 = vld [vmem:[#allocation36_spill] sm:$0xff]  ;;  %v14180_v14 = vld [vmem:[#allocation37_spill] sm:$0xff] }
 0xbd6   : > { %v12683_v27 = vadd.f32 %v3960_v20, %v14165_v0  ;;  %v12686_v58 = vadd.f32 %v3962_v8, %v14167_v11  ;;  %v14181_v10 = vld [vmem:[#allocation38_spill] sm:$0xff]  ;;  %v14182_v20 = vld [vmem:[#allocation39_spill] sm:$0xff]  ;;  %v14183_v8 = vld [vmem:[#allocation40_spill] sm:$0xff] }
 0xbd7   : > { %14171 = vst [vmem:[#allocation101_spill] sm:$0xff] %v12692_v29  ;;  %v14199_v40 = vld [vmem:[#allocation98_spill] sm:$0xff]  ;;  %v14200_v11 = vld [vmem:[#allocation55_spill] sm:$0xff]  ;;  %v14203_v0 = vld [vmem:[#allocation96_spill] sm:$0xff] }
 0xbd8   : > { %14166 = vst [vmem:[#allocation99_spill] sm:$0xff] %v12683_v27  ;;  %14168 = vst [vmem:[#allocation100_spill] sm:$0xff] %v12686_v58  ;;  %4052 = vmatprep.mubr.f32.mxu0 %v12683_v27  ;;  %4122 = vmatprep.mubr.f32.mxu1 %v12686_v58  ;;  %v14204_v58 = vld [vmem:[#allocation118_spill] sm:$0xff] }
 0xbd9   : > { %4053 = vmatmul.mubr.f32.vlgmr.msra.gmra.mrb[24].mxu0 %v12689_v36  ;;  %4123 = vmatmul.mubr.f32.vlgmr.msra.gmra.mrb[24].mxu1 %v12692_v29 }
 0xbda   : > { %9225 = vmatpush3.bf16.msra.mxu0 %v14172_v57  ;;  %9257 = vmatpush3.bf16.msra.mxu1 %v14173_v43  ;;  %v14184_v43 = vld [vmem:[#allocation41_spill] sm:$0xff] }
 0xbdb   : > { %9227 = vmatprep.subr.bf16.mxu0 %v14174_v55  ;;  %9259 = vmatprep.subr.bf16.mxu1 %v14175_v13  ;;  %v14185_v55 = vld [vmem:[#allocation42_spill] sm:$0xff]  ;;  %v14186_v13 = vld [vmem:[#allocation43_spill] sm:$0xff]  ;;  %v14196_v57 = vld [vmem:[#allocation53_spill] sm:$0xff] }
 0xbde   : > { %9229 = vmatpush3.bf16.msra.mxu0 %v14176_v26  ;;  %9261 = vmatpush3.bf16.msra.mxu1 %v14177_v12  ;;  %v14187_v26 = vld [vmem:[#allocation44_spill] sm:$0xff]  ;;  %v14188_v12 = vld [vmem:[#allocation45_spill] sm:$0xff] }
 0xbdf   : > { %9231 = vmatprep.subr.bf16.mxu0 %v14178_v44  ;;  %9263 = vmatprep.subr.bf16.mxu1 %v14179_v45  ;;  %v14189_v44 = vld [vmem:[#allocation46_spill] sm:$0xff]  ;;  %v14190_v45 = vld [vmem:[#allocation47_spill] sm:$0xff] }
 0xbe2   : > { %9233 = vmatpush3.bf16.msra.mxu0 %v14180_v14  ;;  %9265 = vmatpush3.bf16.msra.mxu1 %v14181_v10  ;;  %v14191_v14 = vld [vmem:[#allocation48_spill] sm:$0xff]  ;;  %v14192_v10 = vld [vmem:[#allocation49_spill] sm:$0xff] }
 0xbe3   : > { %9235 = vmatprep.subr.bf16.mxu0 %v14182_v20  ;;  %9267 = vmatprep.subr.bf16.mxu1 %v14183_v8  ;;  %v14193_v20 = vld [vmem:[#allocation50_spill] sm:$0xff]  ;;  %v14194_v8 = vld [vmem:[#allocation51_spill] sm:$0xff] }
 0xbe6   : > { %9237 = vmatpush3.bf16.msra.mxu0 %v14184_v43  ;;  %9269 = vmatpush3.bf16.msra.mxu1 %v14185_v55  ;;  %v14195_v43 = vld [vmem:[#allocation52_spill] sm:$0xff] }
 0xbe7   : > { %9239 = vmatprep.subr.bf16.mxu0 %v14186_v13  ;;  %9271 = vmatprep.subr.bf16.mxu1 %v14187_v26  ;;  %v14197_v26 = vld [vmem:[#allocation54_spill] sm:$0xff] }
 0xbea   : > { %9241 = vmatpush3.bf16.msra.mxu0 %v14188_v12  ;;  %9273 = vmatpush3.bf16.msra.mxu1 %v14189_v44  ;;  %v14198_v12 = vld [vmem:[#allocation97_spill] sm:$0xff] }
 0xbeb   : > { %9243 = vmatprep.subr.bf16.mxu0 %v14190_v45  ;;  %9275 = vmatprep.subr.bf16.mxu1 %v14191_v14 }
 0xbee   : > { %9245 = vmatpush3.bf16.msra.mxu0 %v14192_v10  ;;  %9277 = vmatpush3.bf16.msra.mxu1 %v14193_v20  ;;  %v14201_v10 = vld [vmem:[#allocation56_spill] sm:$0xff]  ;;  %v14202_v20 = vld [vmem:[#allocation95_spill] sm:$0xff] }
 0xbef   : > { %9247 = vmatprep.subr.bf16.mxu0 %v14194_v8  ;;  %9279 = vmatprep.subr.bf16.mxu1 %v14195_v43 }
 0xbf2   : > { %v3883_v55 = vpop.f32.mrb[22].mxu0  ;;  %v3954_v13 = vpop.f32.mrb[22].mxu1  ;;  %9249 = vmatpush3.bf16.msra.mxu0 %v14196_v57  ;;  %9281 = vmatpush3.bf16.msra.mxu1 %v14197_v26  ;;  %v14206_v57 = vld [vmem:[#allocation119_spill] sm:$0xff]  ;;  %v14208_v26 = vld [vmem:[#allocation57_spill] sm:$0xff] }
 0xbf3   : > { %v3963_v44 = vadd.f32 %v3883_v55, %v14198_v12  ;;  %v3965_v45 = vadd.f32 %v3954_v13, %v14199_v40  ;;  %v3885_v59 = vpop.f32.mrb[23].mxu0  ;;  %v3956_v14 = vpop.f32.mrb[23].mxu1  ;;  %9251 = vmatprep.subr.bf16.mxu0 %v14200_v11  ;;  %9283 = vmatprep.subr.bf16.mxu1 %v14201_v10  ;;  %v14209_v55 = vld [vmem:[#allocation58_spill] sm:$0xff]  ;;  %v14210_v40 = vld [vmem:[#allocation117_spill] sm:$0xff]  ;;  %v14212_v12 = vld [vmem:[#allocation120_spill] sm:$0xff] }
 0xbf4   : > { %v3964_v8 = vadd.f32 %v3885_v59, %v14202_v20  ;;  %v3966_v43 = vadd.f32 %v3956_v14, %v14203_v0  ;;  %v14214_v10 = vld [vmem:[#allocation59_spill] sm:$0xff]  ;;  %v14215_v59 = vld [vmem:[#allocation60_spill] sm:$0xff]  ;;  %v14216_v0 = vld [vmem:[#allocation61_spill] sm:$0xff] }
 0xbf5   : > { %v12739_v13 = vadd.f32 %v3963_v44, %v14210_v40  ;;  %v12742_v11 = vadd.f32 %v3965_v45, %v14212_v12  ;;  %v14218_v44 = vld [vmem:[#allocation63_spill] sm:$0xff]  ;;  %v14219_v45 = vld [vmem:[#allocation64_spill] sm:$0xff]  ;;  %v14220_v14 = vld [vmem:[#allocation65_spill] sm:$0xff] }
 0xbf6   : > { %v12731_v27 = vadd.f32 %v3964_v8, %v14204_v58  ;;  %v12734_v29 = vadd.f32 %v3966_v43, %v14206_v57  ;;  %9253 = vmatpush3.bf16.msra.mxu0 %v14208_v26  ;;  %9285 = vmatpush3.bf16.msra.mxu1 %v14209_v55  ;;  %v14217_v43 = vld [vmem:[#allocation62_spill] sm:$0xff]  ;;  %v14222_v8 = vld [vmem:[#allocation67_spill] sm:$0xff] }
 0xbf7   : > { %14211 = vst [vmem:[#allocation104_spill] sm:$0xff] %v12739_v13  ;;  %14213 = vst [vmem:[#allocation105_spill] sm:$0xff] %v12742_v11  ;;  %9287 = vmatprep.subr.bf16.mxu0 %v14214_v10  ;;  %9319 = vmatprep.subr.bf16.mxu1 %v14215_v59  ;;  %v14221_v20 = vld [vmem:[#allocation66_spill] sm:$0xff]  ;;  %v14223_v59 = vld [vmem:[#allocation68_spill] sm:$0xff] }
 0xbf8   : > { %14205 = vst [vmem:[#allocation102_spill] sm:$0xff] %v12731_v27  ;;  %14207 = vst [vmem:[#allocation103_spill] sm:$0xff] %v12734_v29  ;;  %4192 = vmatprep.mubr.f32.mxu0 %v12731_v27  ;;  %4262 = vmatprep.mubr.f32.mxu1 %v12734_v29  ;;  %v14224_v10 = vld [vmem:[#allocation69_spill] sm:$0xff]  ;;  %v14229_v12 = vld [vmem:[#allocation74_spill] sm:$0xff] }
 0xbf9   : > { %4193 = vmatmul.mubr.f32.vlgmr.msra.gmra.mrb[26].mxu0 %v12739_v13  ;;  %4263 = vmatmul.mubr.f32.vlgmr.msra.gmra.mrb[26].mxu1 %v12742_v11  ;;  %v14230_v40 = vld [vmem:[#allocation75_spill] sm:$0xff] }
 0xbfa   : > { %9289 = vmatpush1.bf16.msra.mxu0 %v14216_v0  ;;  %9321 = vmatpush1.bf16.msra.mxu1 %v14217_v43  ;;  %v14225_v0 = vld [vmem:[#allocation70_spill] sm:$0xff]  ;;  %v14226_v43 = vld [vmem:[#allocation71_spill] sm:$0xff] }
 0xbfb   : > { %9291 = vmatprep.subr.bf16.mxu0 %v14218_v44  ;;  %9323 = vmatprep.subr.bf16.mxu1 %v14219_v45  ;;  %v14227_v44 = vld [vmem:[#allocation72_spill] sm:$0xff]  ;;  %v14228_v45 = vld [vmem:[#allocation73_spill] sm:$0xff] }
 0xbfc   : > { %4333 = vmatprep.mubr.f32.mxu0 %v13943_v39  ;;  %4404 = vmatprep.mubr.f32.mxu1 %v13943_v39 }
 0xbfe   : > { %9293 = vmatpush1.bf16.msra.mxu0 %v14220_v14  ;;  %9325 = vmatpush1.bf16.msra.mxu1 %v14221_v20  ;;  %v14231_v14 = vld [vmem:[#allocation76_spill] sm:$0xff]  ;;  %v14232_v20 = vld [vmem:[#allocation77_spill] sm:$0xff] }
 0xbff   : > { %9295 = vmatprep.subr.bf16.mxu0 %v14222_v8  ;;  %9327 = vmatprep.subr.bf16.mxu1 %v14223_v59  ;;  %v14233_v8 = vld [vmem:[#allocation78_spill] sm:$0xff]  ;;  %v14234_v59 = vld [vmem:[#allocation79_spill] sm:$0xff] }
 0xc02   : > { %9297 = vmatpush1.bf16.msra.mxu0 %v14224_v10  ;;  %9329 = vmatpush1.bf16.msra.mxu1 %v14225_v0  ;;  %v14235_v10 = vld [vmem:[#allocation80_spill] sm:$0xff]  ;;  %v14236_v0 = vld [vmem:[#allocation81_spill] sm:$0xff] }
 0xc03   : > { %9299 = vmatprep.subr.bf16.mxu0 %v14226_v43  ;;  %9331 = vmatprep.subr.bf16.mxu1 %v14227_v44  ;;  %v14237_v43 = vld [vmem:[#allocation82_spill] sm:$0xff]  ;;  %v14238_v44 = vld [vmem:[#allocation83_spill] sm:$0xff] }
 0xc06   : > { %9301 = vmatpush1.bf16.msra.mxu0 %v14228_v45  ;;  %9333 = vmatpush1.bf16.msra.mxu1 %v14229_v12  ;;  %v14239_v45 = vld [vmem:[#allocation84_spill] sm:$0xff]  ;;  %v14240_v12 = vld [vmem:[#allocation85_spill] sm:$0xff] }
 0xc07   : > { %9303 = vmatprep.subr.bf16.mxu0 %v14230_v40  ;;  %9335 = vmatprep.subr.bf16.mxu1 %v14231_v14  ;;  %v14241_v40 = vld [vmem:[#allocation86_spill] sm:$0xff]  ;;  %v14242_v14 = vld [vmem:[#allocation87_spill] sm:$0xff] }
 0xc0a   : > { %9305 = vmatpush1.bf16.msra.mxu0 %v14232_v20  ;;  %9337 = vmatpush1.bf16.msra.mxu1 %v14233_v8  ;;  %v14243_v20 = vld [vmem:[#allocation88_spill] sm:$0xff]  ;;  %v14244_v8 = vld [vmem:[#allocation89_spill] sm:$0xff] }
 0xc0b   : > { %9307 = vmatprep.subr.bf16.mxu0 %v14234_v59  ;;  %9339 = vmatprep.subr.bf16.mxu1 %v14235_v10  ;;  %v14245_v59 = vld [vmem:[#allocation90_spill] sm:$0xff]  ;;  %v14246_v10 = vld [vmem:[#allocation91_spill] sm:$0xff] }
 0xc0e   : > { %9309 = vmatpush1.bf16.msra.mxu0 %v14236_v0  ;;  %9341 = vmatpush1.bf16.msra.mxu1 %v14237_v43  ;;  %v14247_v0 = vld [vmem:[#allocation92_spill] sm:$0xff] }
 0xc0f   : > { %9311 = vmatprep.subr.bf16.mxu0 %v14238_v44  ;;  %9343 = vmatprep.subr.bf16.mxu1 %v14239_v45 }
 0xc12   : > { %9313 = vmatpush1.bf16.msra.mxu0 %v14240_v12  ;;  %9345 = vmatpush1.bf16.msra.mxu1 %v14241_v40  ;;  %v7134_v12 = vld [vmem:[%s13563_s1 + $0x21] ss:$0 sm:$0xff] }
 0xc13   : > { %9315 = vmatprep.subr.bf16.mxu0 %v14242_v14  ;;  %9347 = vmatprep.subr.bf16.mxu1 %v14243_v20 }
 0xc16   : > { %9317 = vmatpush1.bf16.msra.mxu0 %v14244_v8  ;;  %9349 = vmatpush1.bf16.msra.mxu1 %v14245_v59 }
 0xc17   : > { %9351 = vmatprep.subr.bf16.mxu0 %v14246_v10  ;;  %9383 = vmatprep.subr.bf16.mxu1 %v14247_v0 }
 0xcac   : > { %v7692_v43 = vpop.f32.mrb[24].mxu0  ;;  %v7727_v44 = vpop.f32.mrb[24].mxu1 }
 0xcad   : > { %v7693_v45 = vpop.f32.mrb[25].mxu0  ;;  %v7728_v40 = vpop.f32.mrb[25].mxu1 }
 0xcae   : > { %v7694_v55 = vadd.f32 %v7693_v45, %v7692_v43  ;;  %v7729_v14 = vadd.f32 %v7728_v40, %v7727_v44  ;;  %v14253_v40 = vld [vmem:[#allocation13_spill] sm:$0xff]  ;;  %v14258_v43 = vld [vmem:[#allocation18_spill] sm:$0xff]  ;;  %v14259_v44 = vld [vmem:[#allocation19_spill] sm:$0xff] }
 0xcaf   : > { %v14260_v45 = vld [vmem:[#allocation20_spill] sm:$0xff] }
 0xcb0   : > { %v4055_v26 = vadd.f32 %v7694_v55, %v7134_v12  ;;  %v14252_v55 = vld [vmem:[#allocation12_spill] sm:$0xff]  ;;  %v14255_v12 = vld [vmem:[#allocation15_spill] sm:$0xff] }
 0xcb2   : > { %v4125_v20 = vadd.f32 %v7729_v14, %v4055_v26  ;;  %v14261_v14 = vld [vmem:[#allocation21_spill] sm:$0xff] }
 0xccc   : > { %v7762_v57 = vpop.f32.mrb[26].mxu0  ;;  %v7797_v8 = vpop.f32.mrb[26].mxu1 }
 0xccd   : > { %v7763_v58 = vpop.f32.mrb[27].mxu0  ;;  %v7798_v59 = vpop.f32.mrb[27].mxu1 }
 0xcce   : > { %v7764_v29 = vadd.f32 %v7763_v58, %v7762_v57  ;;  %v7799_v10 = vadd.f32 %v7798_v59, %v7797_v8  ;;  %v14250_v57 = vld [vmem:[#allocation10_spill] sm:$0xff]  ;;  %v14256_v59 = vld [vmem:[#allocation16_spill] sm:$0xff]  ;;  %v14263_v8 = vld [vmem:[#allocation23_spill] sm:$0xff] }
 0xcd0   : > { %v4195_v27 = vadd.f32 %v7764_v29, %v4125_v20  ;;  %v12796_v29 = vld [vmem:[%s13563_s1 + $0x1d] ss:$0 sm:$0xff]  ;;  %v14262_v20 = vld [vmem:[#allocation22_spill] sm:$0xff] }
 0xcd2   : > { %v4265_v0 = vadd.f32 %v7799_v10, %v4195_v27  ;;  %v14249_v27 = vld [vmem:[#allocation9_spill] sm:$0xff]  ;;  %v14251_v10 = vld [vmem:[#allocation11_spill] sm:$0xff] }
 0xcd4   : > { %10531 = vtanh.f32 %v4265_v0  ;;  %v14257_v0 = vld [vmem:[#allocation17_spill] sm:$0xff] }
 0xcde   : > { %v10532_v11 = vpop.eup %10531 }
 0xcdf   : > { %4334 = vmatmul.mubr.f32.vlgmr.msra.gmra.mrb[28].mxu0 %v10532_v11  ;;  %4405 = vmatmul.mubr.f32.vlgmr.msra.gmra.mrb[28].mxu1 %v10532_v11  ;;  %v4569_v13 = vmul.f32 %v10532_v11, %v10532_v11 }
 0xce0   : > { %9353 = vmatpush1.bf16.msra.mxu0 %v14031_v48  ;;  %9385 = vmatpush1.bf16.msra.mxu1 %v14032_v51 }
 0xce1   : > { %9355 = vmatprep.subr.bf16.mxu0 %v14033_v52  ;;  %9387 = vmatprep.subr.bf16.mxu1 %v14034_v3  ;;  %v4570_v26 = vsub.f32 1.0, %v4569_v13  ;;  %v14254_v13 = vld [vmem:[#allocation14_spill] sm:$0xff] }
 0xce2   : > { %4475 = vmatprep.mubr.f32.mxu0 %v13943_v39  ;;  %4546 = vmatprep.mubr.f32.mxu1 %v13943_v39 }
 0xce3   : > { %v4571_v58 = vmul.f32 %v12796_v29, %v4570_v26  ;;  %v14264_v26 = vld [vmem:[#allocation24_spill] sm:$0xff] }
 0xce4   : > { %9357 = vmatpush1.bf16.msra.mxu0 %v14035_v61  ;;  %9389 = vmatpush1.bf16.msra.mxu1 %v12043_v9 }
 0xce5   : > { %4572 = vadd.xlane.f32.xlu1 %v4571_v58  ;;  %9359 = vmatprep.subr.bf16.mxu0 %v14036_v30  ;;  %v14265_v58 = vld [vmem:[#allocation25_spill] sm:$0xff] }
 0xce6   : > { %9391 = vmatprep.subr.bf16.mxu1 %v14037_v18 }
 0xce8   : > { %9361 = vmatpush1.bf16.msra.mxu0 %v14038_v4  ;;  %9393 = vmatpush1.bf16.msra.mxu1 %v14039_v15 }
 0xce9   : > { %9363 = vmatprep.subr.bf16.mxu0 %v14040_v21  ;;  %9395 = vmatprep.subr.bf16.mxu1 %v14041_v22 }
 0xcec   : > { %9365 = vmatpush1.bf16.msra.mxu0 %v14042_v2  ;;  %9397 = vmatpush1.bf16.msra.mxu1 %v14043_v63 }
 0xced   : > { %9367 = vmatprep.subr.bf16.mxu0 %v14044_v60  ;;  %9399 = vmatprep.subr.bf16.mxu1 %v14045_v62 }
 0xcf0   : > { %9369 = vmatpush1.bf16.msra.mxu0 %v14046_v5  ;;  %9401 = vmatpush1.bf16.msra.mxu1 %v14047_v47 }
 0xcf1   : > { %9371 = vmatprep.subr.bf16.mxu0 %v14048_v38  ;;  %9403 = vmatprep.subr.bf16.mxu1 %v14049_v53 }
 0xcf4   : > { %9373 = vmatpush1.bf16.msra.mxu0 %v12193_v31  ;;  %9405 = vmatpush1.bf16.msra.mxu1 %v14050_v1 }
 0xcf5   : > { %9375 = vmatprep.subr.bf16.mxu0 %v12205_v6  ;;  %9407 = vmatprep.subr.bf16.mxu1 %v12207_v16 }
 0xcf8   : > { %9377 = vmatpush1.bf16.msra.mxu0 %v12229_v46  ;;  %9409 = vmatpush1.bf16.msra.mxu1 %v12231_v35 }
 0xcf9   : > { %9379 = vmatprep.subr.bf16.mxu0 %v12238_v54  ;;  %9411 = vmatprep.subr.bf16.mxu1 %v12240_v17 }
 0xcfc   : > { %9381 = vmatpush1.bf16.msra.mxu0 %v12253_v7  ;;  %9413 = vmatpush1.bf16.msra.mxu1 %v12255_v56 }
 0xcfd   : > { %9415 = vmatprep.subr.bf16.mxu0 %v11093_v19  ;;  %9447 = vmatprep.subr.bf16.mxu1 %v11106_v24 }
 0xcff   : > { %4476 = vmatmul.mubr.f32.vlgmr.msra.gmra.mrb[30].mxu0 %v10532_v11  ;;  %4547 = vmatmul.mubr.f32.vlgmr.msra.gmra.mrb[30].mxu1 %v10532_v11  ;;  %v14248_v11 = vld [vmem:[#allocation8_spill] sm:$0xff] }
 0xd00   : > { %9417 = vmatpush3.bf16.msra.mxu0 %v11104_v23  ;;  %9449 = vmatpush3.bf16.msra.mxu1 %v11118_v28 }
 0xd01   : > { %9419 = vmatprep.subr.bf16.mxu0 %v11131_v32  ;;  %9451 = vmatprep.subr.bf16.mxu1 %v11145_v37 }
 0xd04   : > { %9421 = vmatpush3.bf16.msra.mxu0 %v11133_v33  ;;  %9453 = vmatpush3.bf16.msra.mxu1 %v11157_v41 }
 0xd05   : > { %9423 = vmatprep.subr.bf16.mxu0 %v11159_v42  ;;  %9455 = vmatprep.subr.bf16.mxu1 %v11183_v50 }
 0xd08   : > { %9425 = vmatpush3.bf16.msra.mxu0 %v11181_v49  ;;  %9457 = vmatpush3.bf16.msra.mxu1 %v14140_v25 }
 0xd09   : > { %9427 = vmatprep.subr.bf16.mxu0 %v14141_v34  ;;  %9459 = vmatprep.subr.bf16.mxu1 %v14248_v11  ;;  %v14277_v11 = vld [vmem:[#allocation116_spill] sm:$0xff] }
 0xd0c   : > { %9429 = vmatpush3.bf16.msra.mxu0 %v14249_v27  ;;  %9461 = vmatpush3.bf16.msra.mxu1 %v14250_v57  ;;  %v14272_v57 = vld [vmem:[#allocation113_spill] sm:$0xff] }
 0xd0d   : > { %9431 = vmatprep.subr.bf16.mxu0 %v14251_v10  ;;  %9463 = vmatprep.subr.bf16.mxu1 %v14252_v55  ;;  %v14270_v55 = vld [vmem:[#allocation99_spill] sm:$0xff]  ;;  %v14271_v10 = vld [vmem:[#allocation100_spill] sm:$0xff] }
 0xd10   : > { %9433 = vmatpush3.bf16.msra.mxu0 %v14253_v40  ;;  %9465 = vmatpush3.bf16.msra.mxu1 %v14254_v13  ;;  %v14269_v13 = vld [vmem:[#allocation101_spill] sm:$0xff] }
 0xd11   : > { %9435 = vmatprep.subr.bf16.mxu0 %v14255_v12  ;;  %9467 = vmatprep.subr.bf16.mxu1 %v14256_v59  ;;  %v14266_v12 = vld [vmem:[#allocation26_spill] sm:$0xff]  ;;  %v14267_v59 = vld [vmem:[#allocation27_spill] sm:$0xff] }
 0xd14   : > { %9437 = vmatpush3.bf16.msra.mxu0 %v14257_v0  ;;  %9469 = vmatpush3.bf16.msra.mxu1 %v14258_v43  ;;  %v14268_v0 = vld [vmem:[#allocation28_spill] sm:$0xff] }
 0xd15   : > { %9439 = vmatprep.subr.bf16.mxu0 %v14259_v44  ;;  %9471 = vmatprep.subr.bf16.mxu1 %v14260_v45 }
 0xd18   : > { %9441 = vmatpush3.bf16.msra.mxu0 %v14261_v14  ;;  %9473 = vmatpush3.bf16.msra.mxu1 %v14262_v20 }
 0xd19   : > { %9443 = vmatprep.subr.bf16.mxu0 %v14263_v8  ;;  %9475 = vmatprep.subr.bf16.mxu1 %v14264_v26 }
 0xd1c   : > { %9445 = vmatpush3.bf16.msra.mxu0 %v14265_v58  ;;  %9477 = vmatpush3.bf16.msra.mxu1 %v14266_v12  ;;  %v14274_v12 = vld [vmem:[#allocation114_spill] sm:$0xff] }
 0xd1d   : > { %9479 = vmatprep.subr.bf16.mxu0 %v14267_v59  ;;  %9511 = vmatprep.subr.bf16.mxu1 %v14268_v0  ;;  %v14276_v59 = vld [vmem:[#allocation115_spill] sm:$0xff] }
 0xdb2   : > { %v4335_v43 = vpop.f32.mrb[28].mxu0  ;;  %v4406_v44 = vpop.f32.mrb[28].mxu1 }
 0xdb3   : > { %v4553_v45 = vadd.f32 %v4335_v43, %v12689_v36  ;;  %v4555_v14 = vadd.f32 %v4406_v44, %v14269_v13  ;;  %v4337_v40 = vpop.f32.mrb[29].mxu0  ;;  %v4408_v20 = vpop.f32.mrb[29].mxu1  ;;  %v14279_v36 = vld [vmem:[#allocation29_spill] sm:$0xff]  ;;  %v14284_v43 = vld [vmem:[#allocation34_spill] sm:$0xff]  ;;  %v14285_v44 = vld [vmem:[#allocation35_spill] sm:$0xff] }
 0xdb4   : > { %v4554_v8 = vadd.f32 %v4337_v40, %v14270_v55  ;;  %v4556_v26 = vadd.f32 %v4408_v20, %v14271_v10  ;;  %v14280_v10 = vld [vmem:[#allocation30_spill] sm:$0xff]  ;;  %v14281_v55 = vld [vmem:[#allocation31_spill] sm:$0xff]  ;;  %v14282_v40 = vld [vmem:[#allocation32_spill] sm:$0xff] }
 0xdb5   : > { %v12870_v0 = vadd.f32 %v4553_v45, %v14276_v59  ;;  %v12873_v34 = vadd.f32 %v4555_v14, %v14277_v11  ;;  %v14283_v13 = vld [vmem:[#allocation33_spill] sm:$0xff]  ;;  %v14286_v45 = vld [vmem:[#allocation36_spill] sm:$0xff]  ;;  %v14288_v20 = vld [vmem:[#allocation38_spill] sm:$0xff] }
 0xdb6   : > { %v12864_v58 = vadd.f32 %v4554_v8, %v14272_v57  ;;  %v12867_v27 = vadd.f32 %v4556_v26, %v14274_v12  ;;  %v14287_v14 = vld [vmem:[#allocation37_spill] sm:$0xff]  ;;  %v14289_v8 = vld [vmem:[#allocation39_spill] sm:$0xff]  ;;  %v14290_v26 = vld [vmem:[#allocation40_spill] sm:$0xff] }
 0xdb7   : > { %14278 = vst [vmem:[#allocation108_spill] sm:$0xff] %v12873_v34  ;;  %v14306_v11 = vld [vmem:[#allocation105_spill] sm:$0xff]  ;;  %v14307_v12 = vld [vmem:[#allocation55_spill] sm:$0xff] }
 0xdb8   : > { %14273 = vst [vmem:[#allocation106_spill] sm:$0xff] %v12864_v58  ;;  %14275 = vst [vmem:[#allocation107_spill] sm:$0xff] %v12867_v27  ;;  %4646 = vmatprep.mubr.f32.mxu0 %v12864_v58  ;;  %4716 = vmatprep.mubr.f32.mxu1 %v12867_v27  ;;  %v14310_v57 = vld [vmem:[#allocation103_spill] sm:$0xff]  ;;  %v14311_v27 = vld [vmem:[#allocation118_spill] sm:$0xff] }
 0xdb9   : > { %4647 = vmatmul.mubr.f32.vlgmr.msra.gmra.mrb[32].mxu0 %v12870_v0  ;;  %4717 = vmatmul.mubr.f32.vlgmr.msra.gmra.mrb[32].mxu1 %v12873_v34 }
 0xdba   : > { %9481 = vmatpush3.bf16.msra.mxu0 %v14279_v36  ;;  %9513 = vmatpush3.bf16.msra.mxu1 %v14280_v10  ;;  %v14291_v10 = vld [vmem:[#allocation41_spill] sm:$0xff] }
 0xdbb   : > { %9483 = vmatprep.subr.bf16.mxu0 %v14281_v55  ;;  %9515 = vmatprep.subr.bf16.mxu1 %v14282_v40  ;;  %v14292_v55 = vld [vmem:[#allocation42_spill] sm:$0xff]  ;;  %v14293_v40 = vld [vmem:[#allocation43_spill] sm:$0xff]  ;;  %v14303_v36 = vld [vmem:[#allocation53_spill] sm:$0xff] }
 0xdbe   : > { %9485 = vmatpush3.bf16.msra.mxu0 %v14283_v13  ;;  %9517 = vmatpush3.bf16.msra.mxu1 %v14284_v43  ;;  %v14294_v13 = vld [vmem:[#allocation44_spill] sm:$0xff]  ;;  %v14295_v43 = vld [vmem:[#allocation45_spill] sm:$0xff] }
 0xdbf   : > { %9487 = vmatprep.subr.bf16.mxu0 %v14285_v44  ;;  %9519 = vmatprep.subr.bf16.mxu1 %v14286_v45  ;;  %v14296_v44 = vld [vmem:[#allocation46_spill] sm:$0xff]  ;;  %v14297_v45 = vld [vmem:[#allocation47_spill] sm:$0xff] }
 0xdc2   : > { %9489 = vmatpush3.bf16.msra.mxu0 %v14287_v14  ;;  %9521 = vmatpush3.bf16.msra.mxu1 %v14288_v20  ;;  %v14298_v14 = vld [vmem:[#allocation48_spill] sm:$0xff]  ;;  %v14299_v20 = vld [vmem:[#allocation49_spill] sm:$0xff] }
 0xdc3   : > { %9491 = vmatprep.subr.bf16.mxu0 %v14289_v8  ;;  %9523 = vmatprep.subr.bf16.mxu1 %v14290_v26  ;;  %v14300_v8 = vld [vmem:[#allocation50_spill] sm:$0xff]  ;;  %v14301_v26 = vld [vmem:[#allocation51_spill] sm:$0xff] }
 0xdc6   : > { %9493 = vmatpush3.bf16.msra.mxu0 %v14291_v10  ;;  %9525 = vmatpush3.bf16.msra.mxu1 %v14292_v55  ;;  %v14302_v10 = vld [vmem:[#allocation52_spill] sm:$0xff] }
 0xdc7   : > { %9495 = vmatprep.subr.bf16.mxu0 %v14293_v40  ;;  %9527 = vmatprep.subr.bf16.mxu1 %v14294_v13  ;;  %v14304_v13 = vld [vmem:[#allocation54_spill] sm:$0xff] }
 0xdca   : > { %9497 = vmatpush3.bf16.msra.mxu0 %v14295_v43  ;;  %9529 = vmatpush3.bf16.msra.mxu1 %v14296_v44  ;;  %v14305_v43 = vld [vmem:[#allocation104_spill] sm:$0xff] }
 0xdcb   : > { %9499 = vmatprep.subr.bf16.mxu0 %v14297_v45  ;;  %9531 = vmatprep.subr.bf16.mxu1 %v14298_v14 }
 0xdce   : > { %9501 = vmatpush3.bf16.msra.mxu0 %v14299_v20  ;;  %9533 = vmatpush3.bf16.msra.mxu1 %v14300_v8  ;;  %v14308_v20 = vld [vmem:[#allocation56_spill] sm:$0xff]  ;;  %v14309_v8 = vld [vmem:[#allocation102_spill] sm:$0xff] }
 0xdcf   : > { %9503 = vmatprep.subr.bf16.mxu0 %v14301_v26  ;;  %9535 = vmatprep.subr.bf16.mxu1 %v14302_v10 }
 0xdd2   : > { %v4477_v55 = vpop.f32.mrb[30].mxu0  ;;  %v4548_v40 = vpop.f32.mrb[30].mxu1  ;;  %9505 = vmatpush3.bf16.msra.mxu0 %v14303_v36  ;;  %9537 = vmatpush3.bf16.msra.mxu1 %v14304_v13  ;;  %v14313_v36 = vld [vmem:[#allocation119_spill] sm:$0xff]  ;;  %v14315_v13 = vld [vmem:[#allocation57_spill] sm:$0xff] }
 0xdd3   : > { %v4557_v44 = vadd.f32 %v4477_v55, %v14305_v43  ;;  %v4559_v45 = vadd.f32 %v4548_v40, %v14306_v11  ;;  %v4479_v59 = vpop.f32.mrb[31].mxu0  ;;  %v4550_v14 = vpop.f32.mrb[31].mxu1  ;;  %9507 = vmatprep.subr.bf16.mxu0 %v14307_v12  ;;  %9539 = vmatprep.subr.bf16.mxu1 %v14308_v20  ;;  %v14316_v55 = vld [vmem:[#allocation58_spill] sm:$0xff]  ;;  %v14317_v11 = vld [vmem:[#allocation117_spill] sm:$0xff]  ;;  %v14319_v43 = vld [vmem:[#allocation120_spill] sm:$0xff] }
 0xdd4   : > { %v4558_v26 = vadd.f32 %v4479_v59, %v14309_v8  ;;  %v4560_v10 = vadd.f32 %v4550_v14, %v14310_v57  ;;  %v14321_v20 = vld [vmem:[#allocation59_spill] sm:$0xff]  ;;  %v14322_v59 = vld [vmem:[#allocation60_spill] sm:$0xff]  ;;  %v14323_v57 = vld [vmem:[#allocation61_spill] sm:$0xff] }
 0xdd5   : > { %v12920_v40 = vadd.f32 %v4557_v44, %v14317_v11  ;;  %v12923_v12 = vadd.f32 %v4559_v45, %v14319_v43  ;;  %v14325_v44 = vld [vmem:[#allocation63_spill] sm:$0xff]  ;;  %v14326_v45 = vld [vmem:[#allocation64_spill] sm:$0xff]  ;;  %v14327_v14 = vld [vmem:[#allocation65_spill] sm:$0xff] }
 0xdd6   : > { %v12912_v58 = vadd.f32 %v4558_v26, %v14311_v27  ;;  %v12915_v34 = vadd.f32 %v4560_v10, %v14313_v36  ;;  %9509 = vmatpush3.bf16.msra.mxu0 %v14315_v13  ;;  %9541 = vmatpush3.bf16.msra.mxu1 %v14316_v55  ;;  %v14324_v10 = vld [vmem:[#allocation62_spill] sm:$0xff]  ;;  %v14329_v26 = vld [vmem:[#allocation67_spill] sm:$0xff] }
 0xdd7   : > { %14318 = vst [vmem:[#allocation111_spill] sm:$0xff] %v12920_v40  ;;  %14320 = vst [vmem:[#allocation112_spill] sm:$0xff] %v12923_v12  ;;  %9543 = vmatprep.subr.bf16.mxu0 %v14321_v20  ;;  %9575 = vmatprep.subr.bf16.mxu1 %v14322_v59  ;;  %v14328_v8 = vld [vmem:[#allocation66_spill] sm:$0xff]  ;;  %v14330_v59 = vld [vmem:[#allocation68_spill] sm:$0xff] }
 0xdd8   : > { %14312 = vst [vmem:[#allocation109_spill] sm:$0xff] %v12912_v58  ;;  %14314 = vst [vmem:[#allocation110_spill] sm:$0xff] %v12915_v34  ;;  %4786 = vmatprep.mubr.f32.mxu0 %v12912_v58  ;;  %4856 = vmatprep.mubr.f32.mxu1 %v12915_v34  ;;  %v14331_v20 = vld [vmem:[#allocation69_spill] sm:$0xff]  ;;  %v14336_v43 = vld [vmem:[#allocation74_spill] sm:$0xff] }
 0xdd9   : > { %4787 = vmatmul.mubr.f32.vlgmr.msra.gmra.mrb[34].mxu0 %v12920_v40  ;;  %4857 = vmatmul.mubr.f32.vlgmr.msra.gmra.mrb[34].mxu1 %v12923_v12  ;;  %v14337_v11 = vld [vmem:[#allocation75_spill] sm:$0xff] }
 0xdda   : > { %9545 = vmatpush1.bf16.msra.mxu0 %v14323_v57  ;;  %9577 = vmatpush1.bf16.msra.mxu1 %v14324_v10  ;;  %v14332_v57 = vld [vmem:[#allocation70_spill] sm:$0xff]  ;;  %v14333_v10 = vld [vmem:[#allocation71_spill] sm:$0xff] }
 0xddb   : > { %9547 = vmatprep.subr.bf16.mxu0 %v14325_v44  ;;  %9579 = vmatprep.subr.bf16.mxu1 %v14326_v45  ;;  %v14334_v44 = vld [vmem:[#allocation72_spill] sm:$0xff]  ;;  %v14335_v45 = vld [vmem:[#allocation73_spill] sm:$0xff] }
 0xddc   : > { %4927 = vmatprep.mubr.f32.mxu0 %v13943_v39  ;;  %4998 = vmatprep.mubr.f32.mxu1 %v13943_v39 }
 0xdde   : > { %9549 = vmatpush1.bf16.msra.mxu0 %v14327_v14  ;;  %9581 = vmatpush1.bf16.msra.mxu1 %v14328_v8  ;;  %v14338_v14 = vld [vmem:[#allocation76_spill] sm:$0xff]  ;;  %v14339_v8 = vld [vmem:[#allocation77_spill] sm:$0xff] }
 0xddf   : > { %9551 = vmatprep.subr.bf16.mxu0 %v14329_v26  ;;  %9583 = vmatprep.subr.bf16.mxu1 %v14330_v59  ;;  %v14340_v26 = vld [vmem:[#allocation78_spill] sm:$0xff]  ;;  %v14341_v59 = vld [vmem:[#allocation79_spill] sm:$0xff] }
 0xde2   : > { %9553 = vmatpush1.bf16.msra.mxu0 %v14331_v20  ;;  %9585 = vmatpush1.bf16.msra.mxu1 %v14332_v57  ;;  %v14342_v20 = vld [vmem:[#allocation80_spill] sm:$0xff]  ;;  %v14343_v57 = vld [vmem:[#allocation81_spill] sm:$0xff] }
 0xde3   : > { %9555 = vmatprep.subr.bf16.mxu0 %v14333_v10  ;;  %9587 = vmatprep.subr.bf16.mxu1 %v14334_v44  ;;  %v14344_v10 = vld [vmem:[#allocation82_spill] sm:$0xff]  ;;  %v14345_v44 = vld [vmem:[#allocation83_spill] sm:$0xff] }
 0xde6   : > { %9557 = vmatpush1.bf16.msra.mxu0 %v14335_v45  ;;  %9589 = vmatpush1.bf16.msra.mxu1 %v14336_v43  ;;  %v14346_v45 = vld [vmem:[#allocation84_spill] sm:$0xff]  ;;  %v14347_v43 = vld [vmem:[#allocation85_spill] sm:$0xff] }
 0xde7   : > { %9559 = vmatprep.subr.bf16.mxu0 %v14337_v11  ;;  %9591 = vmatprep.subr.bf16.mxu1 %v14338_v14  ;;  %v14348_v11 = vld [vmem:[#allocation86_spill] sm:$0xff]  ;;  %v14349_v14 = vld [vmem:[#allocation87_spill] sm:$0xff] }
 0xdea   : > { %9561 = vmatpush1.bf16.msra.mxu0 %v14339_v8  ;;  %9593 = vmatpush1.bf16.msra.mxu1 %v14340_v26  ;;  %v14350_v8 = vld [vmem:[#allocation88_spill] sm:$0xff]  ;;  %v14351_v26 = vld [vmem:[#allocation89_spill] sm:$0xff] }
 0xdeb   : > { %9563 = vmatprep.subr.bf16.mxu0 %v14341_v59  ;;  %9595 = vmatprep.subr.bf16.mxu1 %v14342_v20  ;;  %v14352_v59 = vld [vmem:[#allocation90_spill] sm:$0xff]  ;;  %v14353_v20 = vld [vmem:[#allocation91_spill] sm:$0xff] }
 0xdee   : > { %9565 = vmatpush1.bf16.msra.mxu0 %v14343_v57  ;;  %9597 = vmatpush1.bf16.msra.mxu1 %v14344_v10  ;;  %v14354_v57 = vld [vmem:[#allocation92_spill] sm:$0xff] }
 0xdef   : > { %9567 = vmatprep.subr.bf16.mxu0 %v14345_v44  ;;  %9599 = vmatprep.subr.bf16.mxu1 %v14346_v45 }
 0xdf2   : > { %9569 = vmatpush1.bf16.msra.mxu0 %v14347_v43  ;;  %9601 = vmatpush1.bf16.msra.mxu1 %v14348_v11  ;;  %v7135_v43 = vld [vmem:[%s13563_s1 + $0x22] ss:$0 sm:$0xff] }
 0xdf3   : > { %9571 = vmatprep.subr.bf16.mxu0 %v14349_v14  ;;  %9603 = vmatprep.subr.bf16.mxu1 %v14350_v8 }
 0xdf6   : > { %9573 = vmatpush1.bf16.msra.mxu0 %v14351_v26  ;;  %9605 = vmatpush1.bf16.msra.mxu1 %v14352_v59 }
 0xdf7   : > { %9607 = vmatprep.subr.bf16.mxu0 %v14353_v20  ;;  %9639 = vmatprep.subr.bf16.mxu1 %v14354_v57 }
 0xe8c   : > { %v7832_v10 = vpop.f32.mrb[32].mxu0  ;;  %v7867_v44 = vpop.f32.mrb[32].mxu1 }
 0xe8d   : > { %v7833_v45 = vpop.f32.mrb[33].mxu0  ;;  %v7868_v11 = vpop.f32.mrb[33].mxu1 }
 0xe8e   : > { %v7834_v55 = vadd.f32 %v7833_v45, %v7832_v10  ;;  %v7869_v14 = vadd.f32 %v7868_v11, %v7867_v44  ;;  %v14361_v11 = vld [vmem:[#allocation13_spill] sm:$0xff]  ;;  %v14366_v10 = vld [vmem:[#allocation18_spill] sm:$0xff]  ;;  %v14367_v44 = vld [vmem:[#allocation19_spill] sm:$0xff] }
 0xe8f   : > { %v14368_v45 = vld [vmem:[#allocation20_spill] sm:$0xff] }
 0xe90   : > { %v4649_v13 = vadd.f32 %v7834_v55, %v7135_v43  ;;  %v14360_v55 = vld [vmem:[#allocation12_spill] sm:$0xff]  ;;  %v14363_v43 = vld [vmem:[#allocation15_spill] sm:$0xff] }
 0xe92   : > { %v4719_v8 = vadd.f32 %v7869_v14, %v4649_v13  ;;  %v14369_v14 = vld [vmem:[#allocation21_spill] sm:$0xff] }
 0xeac   : > { %v7902_v36 = vpop.f32.mrb[34].mxu0  ;;  %v7937_v26 = vpop.f32.mrb[34].mxu1 }
 0xead   : > { %v7903_v27 = vpop.f32.mrb[35].mxu0  ;;  %v7938_v59 = vpop.f32.mrb[35].mxu1 }
 0xeae   : > { %v7904_v34 = vadd.f32 %v7903_v27, %v7902_v36  ;;  %v7939_v20 = vadd.f32 %v7938_v59, %v7937_v26  ;;  %v14355_v27 = vld [vmem:[#allocation7_spill] sm:$0xff]  ;;  %v14358_v36 = vld [vmem:[#allocation10_spill] sm:$0xff]  ;;  %v14364_v59 = vld [vmem:[#allocation16_spill] sm:$0xff] }
 0xeaf   : > { %v14371_v26 = vld [vmem:[#allocation23_spill] sm:$0xff] }
 0xeb0   : > { %v4789_v58 = vadd.f32 %v7904_v34, %v4719_v8  ;;  %v14370_v8 = vld [vmem:[#allocation22_spill] sm:$0xff] }
 0xeb2   : > { %v4859_v57 = vadd.f32 %v7939_v20, %v4789_v58  ;;  %v14357_v58 = vld [vmem:[#allocation9_spill] sm:$0xff]  ;;  %v14359_v20 = vld [vmem:[#allocation11_spill] sm:$0xff] }
 0xeb4   : > { %10533 = vtanh.f32 %v4859_v57  ;;  %v14365_v57 = vld [vmem:[#allocation17_spill] sm:$0xff] }
 0xebe   : > { %v10534_v12 = vpop.eup %10533 }
 0xebf   : > { %4928 = vmatmul.mubr.f32.vlgmr.msra.gmra.mrb[36].mxu0 %v10534_v12  ;;  %4999 = vmatmul.mubr.f32.vlgmr.msra.gmra.mrb[36].mxu1 %v10534_v12  ;;  %v5163_v40 = vmul.f32 %v10534_v12, %v10534_v12 }
 0xec0   : > { %9609 = vmatpush1.bf16.msra.mxu0 %v14031_v48  ;;  %9641 = vmatpush1.bf16.msra.mxu1 %v14032_v51 }
 0xec1   : > { %9611 = vmatprep.subr.bf16.mxu0 %v14033_v52  ;;  %9643 = vmatprep.subr.bf16.mxu1 %v14034_v3  ;;  %v5164_v13 = vsub.f32 1.0, %v5163_v40  ;;  %v14362_v40 = vld [vmem:[#allocation14_spill] sm:$0xff] }
 0xec2   : > { %5069 = vmatprep.mubr.f32.mxu0 %v13943_v39  ;;  %5140 = vmatprep.mubr.f32.mxu1 %v13943_v39 }
 0xec3   : > { %v5165_v34 = vmul.f32 %v12796_v29, %v5164_v13  ;;  %v14372_v13 = vld [vmem:[#allocation24_spill] sm:$0xff] }
 0xec4   : > { %9613 = vmatpush1.bf16.msra.mxu0 %v14035_v61  ;;  %9645 = vmatpush1.bf16.msra.mxu1 %v12043_v9 }
 0xec5   : > { %5166 = vadd.xlane.f32.xlu0 %v5165_v34  ;;  %9615 = vmatprep.subr.bf16.mxu0 %v14036_v30  ;;  %v14373_v34 = vld [vmem:[#allocation25_spill] sm:$0xff] }
 0xec6   : > { %9647 = vmatprep.subr.bf16.mxu1 %v14037_v18 }
 0xec8   : > { %9617 = vmatpush1.bf16.msra.mxu0 %v14038_v4  ;;  %9649 = vmatpush1.bf16.msra.mxu1 %v14039_v15 }
 0xec9   : > { %9619 = vmatprep.subr.bf16.mxu0 %v14040_v21  ;;  %9651 = vmatprep.subr.bf16.mxu1 %v14041_v22 }
 0xecc   : > { %9621 = vmatpush1.bf16.msra.mxu0 %v14042_v2  ;;  %9653 = vmatpush1.bf16.msra.mxu1 %v14043_v63 }
 0xecd   : > { %9623 = vmatprep.subr.bf16.mxu0 %v14044_v60  ;;  %9655 = vmatprep.subr.bf16.mxu1 %v14045_v62 }
 0xed0   : > { %9625 = vmatpush1.bf16.msra.mxu0 %v14046_v5  ;;  %9657 = vmatpush1.bf16.msra.mxu1 %v14047_v47 }
 0xed1   : > { %9627 = vmatprep.subr.bf16.mxu0 %v14048_v38  ;;  %9659 = vmatprep.subr.bf16.mxu1 %v14049_v53 }
 0xed4   : > { %9629 = vmatpush1.bf16.msra.mxu0 %v12193_v31  ;;  %9661 = vmatpush1.bf16.msra.mxu1 %v14050_v1 }
 0xed5   : > { %9631 = vmatprep.subr.bf16.mxu0 %v12205_v6  ;;  %9663 = vmatprep.subr.bf16.mxu1 %v12207_v16 }
 0xed8   : > { %9633 = vmatpush1.bf16.msra.mxu0 %v12229_v46  ;;  %9665 = vmatpush1.bf16.msra.mxu1 %v12231_v35 }
 0xed9   : > { %9635 = vmatprep.subr.bf16.mxu0 %v12238_v54  ;;  %9667 = vmatprep.subr.bf16.mxu1 %v12240_v17 }
 0xedc   : > { %9637 = vmatpush1.bf16.msra.mxu0 %v12253_v7  ;;  %9669 = vmatpush1.bf16.msra.mxu1 %v12255_v56 }
 0xedd   : > { %9671 = vmatprep.subr.bf16.mxu0 %v11093_v19  ;;  %9703 = vmatprep.subr.bf16.mxu1 %v11106_v24 }
 0xedf   : > { %5070 = vmatmul.mubr.f32.vlgmr.msra.gmra.mrb[38].mxu0 %v10534_v12  ;;  %5141 = vmatmul.mubr.f32.vlgmr.msra.gmra.mrb[38].mxu1 %v10534_v12  ;;  %v14356_v12 = vld [vmem:[#allocation8_spill] sm:$0xff] }
 0xee0   : > { %9673 = vmatpush3.bf16.msra.mxu0 %v11104_v23  ;;  %9705 = vmatpush3.bf16.msra.mxu1 %v11118_v28 }
 0xee1   : > { %9675 = vmatprep.subr.bf16.mxu0 %v11131_v32  ;;  %9707 = vmatprep.subr.bf16.mxu1 %v11145_v37 }
 0xee4   : > { %9677 = vmatpush3.bf16.msra.mxu0 %v11133_v33  ;;  %9709 = vmatpush3.bf16.msra.mxu1 %v11157_v41 }
 0xee5   : > { %9679 = vmatprep.subr.bf16.mxu0 %v11159_v42  ;;  %9711 = vmatprep.subr.bf16.mxu1 %v11183_v50 }
 0xee8   : > { %9681 = vmatpush3.bf16.msra.mxu0 %v11181_v49  ;;  %9713 = vmatpush3.bf16.msra.mxu1 %v14140_v25 }
 0xee9   : > { %9683 = vmatprep.subr.bf16.mxu0 %v14355_v27  ;;  %9715 = vmatprep.subr.bf16.mxu1 %v14356_v12  ;;  %v14385_v12 = vld [vmem:[#allocation116_spill] sm:$0xff] }
 0xeec   : > { %9685 = vmatpush3.bf16.msra.mxu0 %v14357_v58  ;;  %9717 = vmatpush3.bf16.msra.mxu1 %v14358_v36  ;;  %v14380_v36 = vld [vmem:[#allocation113_spill] sm:$0xff] }
 0xeed   : > { %9687 = vmatprep.subr.bf16.mxu0 %v14359_v20  ;;  %9719 = vmatprep.subr.bf16.mxu1 %v14360_v55  ;;  %v14378_v55 = vld [vmem:[#allocation106_spill] sm:$0xff]  ;;  %v14379_v20 = vld [vmem:[#allocation107_spill] sm:$0xff] }
 0xef0   : > { %9689 = vmatpush3.bf16.msra.mxu0 %v14361_v11  ;;  %9721 = vmatpush3.bf16.msra.mxu1 %v14362_v40  ;;  %v14377_v40 = vld [vmem:[#allocation108_spill] sm:$0xff] }
 0xef1   : > { %9691 = vmatprep.subr.bf16.mxu0 %v14363_v43  ;;  %9723 = vmatprep.subr.bf16.mxu1 %v14364_v59  ;;  %v14374_v43 = vld [vmem:[#allocation26_spill] sm:$0xff]  ;;  %v14375_v59 = vld [vmem:[#allocation27_spill] sm:$0xff] }
 0xef4   : > { %9693 = vmatpush3.bf16.msra.mxu0 %v14365_v57  ;;  %9725 = vmatpush3.bf16.msra.mxu1 %v14366_v10  ;;  %v14376_v57 = vld [vmem:[#allocation28_spill] sm:$0xff] }
 0xef5   : > { %9695 = vmatprep.subr.bf16.mxu0 %v14367_v44  ;;  %9727 = vmatprep.subr.bf16.mxu1 %v14368_v45 }
 0xef8   : > { %9697 = vmatpush3.bf16.msra.mxu0 %v14369_v14  ;;  %9729 = vmatpush3.bf16.msra.mxu1 %v14370_v8 }
 0xef9   : > { %9699 = vmatprep.subr.bf16.mxu0 %v14371_v26  ;;  %9731 = vmatprep.subr.bf16.mxu1 %v14372_v13 }
 0xefc   : > { %9701 = vmatpush3.bf16.msra.mxu0 %v14373_v34  ;;  %9733 = vmatpush3.bf16.msra.mxu1 %v14374_v43  ;;  %v14382_v43 = vld [vmem:[#allocation114_spill] sm:$0xff] }
 0xefd   : > { %9735 = vmatprep.subr.bf16.mxu0 %v14375_v59  ;;  %9767 = vmatprep.subr.bf16.mxu1 %v14376_v57  ;;  %v14384_v59 = vld [vmem:[#allocation115_spill] sm:$0xff] }
 0xf92   : > { %v4929_v10 = vpop.f32.mrb[36].mxu0  ;;  %v5000_v44 = vpop.f32.mrb[36].mxu1 }
 0xf93   : > { %v5147_v45 = vadd.f32 %v4929_v10, %v12870_v0  ;;  %v5149_v14 = vadd.f32 %v5000_v44, %v14377_v40  ;;  %v4931_v11 = vpop.f32.mrb[37].mxu0  ;;  %v5002_v8 = vpop.f32.mrb[37].mxu1  ;;  %v14387_v0 = vld [vmem:[#allocation29_spill] sm:$0xff]  ;;  %v14392_v10 = vld [vmem:[#allocation34_spill] sm:$0xff]  ;;  %v14393_v44 = vld [vmem:[#allocation35_spill] sm:$0xff] }
 0xf94   : > { %v5148_v26 = vadd.f32 %v4931_v11, %v14378_v55  ;;  %v5150_v13 = vadd.f32 %v5002_v8, %v14379_v20  ;;  %v14388_v20 = vld [vmem:[#allocation30_spill] sm:$0xff]  ;;  %v14389_v55 = vld [vmem:[#allocation31_spill] sm:$0xff]  ;;  %v14390_v11 = vld [vmem:[#allocation32_spill] sm:$0xff] }
 0xf95   : > { %v13046_v57 = vadd.f32 %v5147_v45, %v14384_v59  ;;  %v13049_v27 = vadd.f32 %v5149_v14, %v14385_v12  ;;  %v14391_v40 = vld [vmem:[#allocation33_spill] sm:$0xff]  ;;  %v14394_v45 = vld [vmem:[#allocation36_spill] sm:$0xff]  ;;  %v14396_v8 = vld [vmem:[#allocation38_spill] sm:$0xff] }
 0xf96   : > { %v13040_v34 = vadd.f32 %v5148_v26, %v14380_v36  ;;  %v13043_v58 = vadd.f32 %v5150_v13, %v14382_v43  ;;  %v14395_v14 = vld [vmem:[#allocation37_spill] sm:$0xff]  ;;  %v14397_v26 = vld [vmem:[#allocation39_spill] sm:$0xff]  ;;  %v14398_v13 = vld [vmem:[#allocation40_spill] sm:$0xff] }
 0xf97   : > { %14386 = vst [vmem:[#allocation122_spill] sm:$0xff] %v13049_v27  ;;  %v14414_v12 = vld [vmem:[#allocation112_spill] sm:$0xff]  ;;  %v14415_v43 = vld [vmem:[#allocation55_spill] sm:$0xff]  ;;  %v14418_v36 = vld [vmem:[#allocation110_spill] sm:$0xff] }
 0xf98   : > { %14381 = vst [vmem:[#allocation123_spill] sm:$0xff] %v13040_v34  ;;  %14383 = vst [vmem:[#allocation121_spill] sm:$0xff] %v13043_v58  ;;  %5240 = vmatprep.mubr.f32.mxu0 %v13040_v34  ;;  %5310 = vmatprep.mubr.f32.mxu1 %v13043_v58  ;;  %v14419_v58 = vld [vmem:[#allocation118_spill] sm:$0xff] }
 0xf99   : > { %5241 = vmatmul.mubr.f32.vlgmr.msra.gmra.mrb[40].mxu0 %v13046_v57  ;;  %5311 = vmatmul.mubr.f32.vlgmr.msra.gmra.mrb[40].mxu1 %v13049_v27 }
 0xf9a   : > { %9737 = vmatpush3.bf16.msra.mxu0 %v14387_v0  ;;  %9769 = vmatpush3.bf16.msra.mxu1 %v14388_v20  ;;  %v14399_v20 = vld [vmem:[#allocation41_spill] sm:$0xff] }
 0xf9b   : > { %9739 = vmatprep.subr.bf16.mxu0 %v14389_v55  ;;  %9771 = vmatprep.subr.bf16.mxu1 %v14390_v11  ;;  %v14400_v55 = vld [vmem:[#allocation42_spill] sm:$0xff]  ;;  %v14401_v11 = vld [vmem:[#allocation43_spill] sm:$0xff]  ;;  %v14411_v0 = vld [vmem:[#allocation53_spill] sm:$0xff] }
 0xf9e   : > { %9741 = vmatpush3.bf16.msra.mxu0 %v14391_v40  ;;  %9773 = vmatpush3.bf16.msra.mxu1 %v14392_v10  ;;  %v14402_v40 = vld [vmem:[#allocation44_spill] sm:$0xff]  ;;  %v14403_v10 = vld [vmem:[#allocation45_spill] sm:$0xff] }
 0xf9f   : > { %9743 = vmatprep.subr.bf16.mxu0 %v14393_v44  ;;  %9775 = vmatprep.subr.bf16.mxu1 %v14394_v45  ;;  %v14404_v44 = vld [vmem:[#allocation46_spill] sm:$0xff]  ;;  %v14405_v45 = vld [vmem:[#allocation47_spill] sm:$0xff] }
 0xfa2   : > { %9745 = vmatpush3.bf16.msra.mxu0 %v14395_v14  ;;  %9777 = vmatpush3.bf16.msra.mxu1 %v14396_v8  ;;  %v14406_v14 = vld [vmem:[#allocation48_spill] sm:$0xff]  ;;  %v14407_v8 = vld [vmem:[#allocation49_spill] sm:$0xff] }
 0xfa3   : > { %9747 = vmatprep.subr.bf16.mxu0 %v14397_v26  ;;  %9779 = vmatprep.subr.bf16.mxu1 %v14398_v13  ;;  %v14408_v26 = vld [vmem:[#allocation50_spill] sm:$0xff]  ;;  %v14409_v13 = vld [vmem:[#allocation51_spill] sm:$0xff] }
 0xfa6   : > { %9749 = vmatpush3.bf16.msra.mxu0 %v14399_v20  ;;  %9781 = vmatpush3.bf16.msra.mxu1 %v14400_v55  ;;  %v14410_v20 = vld [vmem:[#allocation52_spill] sm:$0xff] }
 0xfa7   : > { %9751 = vmatprep.subr.bf16.mxu0 %v14401_v11  ;;  %9783 = vmatprep.subr.bf16.mxu1 %v14402_v40  ;;  %v14412_v40 = vld [vmem:[#allocation54_spill] sm:$0xff] }
 0xfaa   : > { %9753 = vmatpush3.bf16.msra.mxu0 %v14403_v10  ;;  %9785 = vmatpush3.bf16.msra.mxu1 %v14404_v44  ;;  %v14413_v10 = vld [vmem:[#allocation111_spill] sm:$0xff] }
 0xfab   : > { %9755 = vmatprep.subr.bf16.mxu0 %v14405_v45  ;;  %9787 = vmatprep.subr.bf16.mxu1 %v14406_v14 }
 0xfae   : > { %9757 = vmatpush3.bf16.msra.mxu0 %v14407_v8  ;;  %9789 = vmatpush3.bf16.msra.mxu1 %v14408_v26  ;;  %v14416_v8 = vld [vmem:[#allocation56_spill] sm:$0xff]  ;;  %v14417_v26 = vld [vmem:[#allocation109_spill] sm:$0xff] }
 0xfaf   : > { %9759 = vmatprep.subr.bf16.mxu0 %v14409_v13  ;;  %9791 = vmatprep.subr.bf16.mxu1 %v14410_v20 }
 0xfb2   : > { %v5071_v55 = vpop.f32.mrb[38].mxu0  ;;  %v5142_v11 = vpop.f32.mrb[38].mxu1  ;;  %9761 = vmatpush3.bf16.msra.mxu0 %v14411_v0  ;;  %9793 = vmatpush3.bf16.msra.mxu1 %v14412_v40  ;;  %v14421_v0 = vld [vmem:[#allocation119_spill] sm:$0xff]  ;;  %v14423_v40 = vld [vmem:[#allocation57_spill] sm:$0xff] }
 0xfb3   : > { %v5151_v44 = vadd.f32 %v5071_v55, %v14413_v10  ;;  %v5153_v45 = vadd.f32 %v5142_v11, %v14414_v12  ;;  %v5073_v59 = vpop.f32.mrb[39].mxu0  ;;  %v5144_v14 = vpop.f32.mrb[39].mxu1  ;;  %9763 = vmatprep.subr.bf16.mxu0 %v14415_v43  ;;  %9795 = vmatprep.subr.bf16.mxu1 %v14416_v8  ;;  %v14424_v55 = vld [vmem:[#allocation58_spill] sm:$0xff]  ;;  %v14425_v12 = vld [vmem:[#allocation117_spill] sm:$0xff]  ;;  %v14427_v10 = vld [vmem:[#allocation120_spill] sm:$0xff] }
 0xfb4   : > { %v5152_v13 = vadd.f32 %v5073_v59, %v14417_v26  ;;  %v5154_v20 = vadd.f32 %v5144_v14, %v14418_v36  ;;  %v14429_v8 = vld [vmem:[#allocation59_spill] sm:$0xff]  ;;  %v14430_v59 = vld [vmem:[#allocation60_spill] sm:$0xff]  ;;  %v14431_v36 = vld [vmem:[#allocation61_spill] sm:$0xff] }
 0xfb5   : > { %v13096_v11 = vadd.f32 %v5151_v44, %v14425_v12  ;;  %v13099_v43 = vadd.f32 %v5153_v45, %v14427_v10  ;;  %v14433_v44 = vld [vmem:[#allocation63_spill] sm:$0xff]  ;;  %v14434_v45 = vld [vmem:[#allocation64_spill] sm:$0xff]  ;;  %v14435_v14 = vld [vmem:[#allocation65_spill] sm:$0xff] }
 0xfb6   : > { %v13088_v34 = vadd.f32 %v5152_v13, %v14419_v58  ;;  %v13091_v27 = vadd.f32 %v5154_v20, %v14421_v0  ;;  %9765 = vmatpush3.bf16.msra.mxu0 %v14423_v40  ;;  %9797 = vmatpush3.bf16.msra.mxu1 %v14424_v55  ;;  %v14432_v20 = vld [vmem:[#allocation62_spill] sm:$0xff]  ;;  %v14437_v13 = vld [vmem:[#allocation67_spill] sm:$0xff] }
 0xfb7   : > { %14426 = vst [vmem:[#allocation94_spill] sm:$0xff] %v13096_v11  ;;  %14428 = vst [vmem:[#allocation97_spill] sm:$0xff] %v13099_v43  ;;  %9799 = vmatprep.subr.bf16.mxu0 %v14429_v8  ;;  %9831 = vmatprep.subr.bf16.mxu1 %v14430_v59  ;;  %v14436_v26 = vld [vmem:[#allocation66_spill] sm:$0xff]  ;;  %v14438_v59 = vld [vmem:[#allocation68_spill] sm:$0xff] }
 0xfb8   : > { %14420 = vst [vmem:[#allocation6_spill] sm:$0xff] %v13088_v34  ;;  %14422 = vst [vmem:[#allocation93_spill] sm:$0xff] %v13091_v27  ;;  %5380 = vmatprep.mubr.f32.mxu0 %v13088_v34  ;;  %5450 = vmatprep.mubr.f32.mxu1 %v13091_v27  ;;  %v14439_v8 = vld [vmem:[#allocation69_spill] sm:$0xff]  ;;  %v14444_v10 = vld [vmem:[#allocation74_spill] sm:$0xff] }
 0xfb9   : > { %5381 = vmatmul.mubr.f32.vlgmr.msra.gmra.mrb[42].mxu0 %v13096_v11  ;;  %5451 = vmatmul.mubr.f32.vlgmr.msra.gmra.mrb[42].mxu1 %v13099_v43  ;;  %v14445_v12 = vld [vmem:[#allocation75_spill] sm:$0xff] }
 0xfba   : > { %9801 = vmatpush1.bf16.msra.mxu0 %v14431_v36  ;;  %9833 = vmatpush1.bf16.msra.mxu1 %v14432_v20  ;;  %v14440_v36 = vld [vmem:[#allocation70_spill] sm:$0xff]  ;;  %v14441_v20 = vld [vmem:[#allocation71_spill] sm:$0xff] }
 0xfbb   : > { %9803 = vmatprep.subr.bf16.mxu0 %v14433_v44  ;;  %9835 = vmatprep.subr.bf16.mxu1 %v14434_v45  ;;  %v14442_v44 = vld [vmem:[#allocation72_spill] sm:$0xff]  ;;  %v14443_v45 = vld [vmem:[#allocation73_spill] sm:$0xff] }
 0xfbc   : > { %5521 = vmatprep.mubr.f32.mxu0 %v13943_v39  ;;  %5592 = vmatprep.mubr.f32.mxu1 %v13943_v39 }
 0xfbe   : > { %9805 = vmatpush1.bf16.msra.mxu0 %v14435_v14  ;;  %9837 = vmatpush1.bf16.msra.mxu1 %v14436_v26  ;;  %v14446_v14 = vld [vmem:[#allocation76_spill] sm:$0xff]  ;;  %v14447_v26 = vld [vmem:[#allocation77_spill] sm:$0xff] }
 0xfbf   : > { %9807 = vmatprep.subr.bf16.mxu0 %v14437_v13  ;;  %9839 = vmatprep.subr.bf16.mxu1 %v14438_v59  ;;  %v14448_v13 = vld [vmem:[#allocation78_spill] sm:$0xff]  ;;  %v14449_v59 = vld [vmem:[#allocation79_spill] sm:$0xff] }
 0xfc2   : > { %9809 = vmatpush1.bf16.msra.mxu0 %v14439_v8  ;;  %9841 = vmatpush1.bf16.msra.mxu1 %v14440_v36  ;;  %v14450_v8 = vld [vmem:[#allocation80_spill] sm:$0xff]  ;;  %v14451_v36 = vld [vmem:[#allocation81_spill] sm:$0xff] }
 0xfc3   : > { %9811 = vmatprep.subr.bf16.mxu0 %v14441_v20  ;;  %9843 = vmatprep.subr.bf16.mxu1 %v14442_v44  ;;  %v14452_v20 = vld [vmem:[#allocation82_spill] sm:$0xff]  ;;  %v14453_v44 = vld [vmem:[#allocation83_spill] sm:$0xff] }
 0xfc6   : > { %9813 = vmatpush1.bf16.msra.mxu0 %v14443_v45  ;;  %9845 = vmatpush1.bf16.msra.mxu1 %v14444_v10  ;;  %v14454_v45 = vld [vmem:[#allocation84_spill] sm:$0xff]  ;;  %v14455_v10 = vld [vmem:[#allocation85_spill] sm:$0xff] }
 0xfc7   : > { %9815 = vmatprep.subr.bf16.mxu0 %v14445_v12  ;;  %9847 = vmatprep.subr.bf16.mxu1 %v14446_v14  ;;  %v14456_v12 = vld [vmem:[#allocation86_spill] sm:$0xff]  ;;  %v14457_v14 = vld [vmem:[#allocation87_spill] sm:$0xff] }
 0xfca   : > { %9817 = vmatpush1.bf16.msra.mxu0 %v14447_v26  ;;  %9849 = vmatpush1.bf16.msra.mxu1 %v14448_v13  ;;  %v14458_v26 = vld [vmem:[#allocation88_spill] sm:$0xff]  ;;  %v14459_v13 = vld [vmem:[#allocation89_spill] sm:$0xff] }
 0xfcb   : > { %9819 = vmatprep.subr.bf16.mxu0 %v14449_v59  ;;  %9851 = vmatprep.subr.bf16.mxu1 %v14450_v8  ;;  %v14460_v59 = vld [vmem:[#allocation90_spill] sm:$0xff]  ;;  %v14461_v8 = vld [vmem:[#allocation91_spill] sm:$0xff] }
 0xfce   : > { %9821 = vmatpush1.bf16.msra.mxu0 %v14451_v36  ;;  %9853 = vmatpush1.bf16.msra.mxu1 %v14452_v20  ;;  %v14462_v36 = vld [vmem:[#allocation92_spill] sm:$0xff] }
 0xfcf   : > { %9823 = vmatprep.subr.bf16.mxu0 %v14453_v44  ;;  %9855 = vmatprep.subr.bf16.mxu1 %v14454_v45 }
 0xfd2   : > { %9825 = vmatpush1.bf16.msra.mxu0 %v14455_v10  ;;  %9857 = vmatpush1.bf16.msra.mxu1 %v14456_v12  ;;  %v7136_v10 = vld [vmem:[%s13563_s1 + $0x23] ss:$0 sm:$0xff] }
 0xfd3   : > { %9827 = vmatprep.subr.bf16.mxu0 %v14457_v14  ;;  %9859 = vmatprep.subr.bf16.mxu1 %v14458_v26 }
 0xfd6   : > { %9829 = vmatpush1.bf16.msra.mxu0 %v14459_v13  ;;  %9861 = vmatpush1.bf16.msra.mxu1 %v14460_v59 }
 0xfd7   : > { %9863 = vmatprep.subr.bf16.mxu0 %v14461_v8  ;;  %9895 = vmatprep.subr.bf16.mxu1 %v14462_v36 }
0x106c   : > { %v7972_v20 = vpop.f32.mrb[40].mxu0  ;;  %v8007_v44 = vpop.f32.mrb[40].mxu1 }
0x106d   : > { %v7973_v45 = vpop.f32.mrb[41].mxu0  ;;  %v8008_v12 = vpop.f32.mrb[41].mxu1 }
0x106e   : > { %v7974_v55 = vadd.f32 %v7973_v45, %v7972_v20  ;;  %v8009_v14 = vadd.f32 %v8008_v12, %v8007_v44  ;;  %v14470_v12 = vld [vmem:[#allocation14_spill] sm:$0xff]  ;;  %v14475_v20 = vld [vmem:[#allocation19_spill] sm:$0xff]  ;;  %v14476_v44 = vld [vmem:[#allocation20_spill] sm:$0xff] }
0x106f   : > { %v14477_v45 = vld [vmem:[#allocation21_spill] sm:$0xff] }
0x1070   : > { %v5243_v40 = vadd.f32 %v7974_v55, %v7136_v10  ;;  %v14469_v55 = vld [vmem:[#allocation13_spill] sm:$0xff]  ;;  %v14472_v10 = vld [vmem:[#allocation16_spill] sm:$0xff] }
0x1072   : > { %v5313_v26 = vadd.f32 %v8009_v14, %v5243_v40  ;;  %v14478_v14 = vld [vmem:[#allocation22_spill] sm:$0xff] }
0x108c   : > { %v8042_v0 = vpop.f32.mrb[42].mxu0  ;;  %v8077_v13 = vpop.f32.mrb[42].mxu1 }
0x108d   : > { %v8043_v58 = vpop.f32.mrb[43].mxu0  ;;  %v8078_v59 = vpop.f32.mrb[43].mxu1 }
0x108e   : > { %v8044_v27 = vadd.f32 %v8043_v58, %v8042_v0  ;;  %v8079_v8 = vadd.f32 %v8078_v59, %v8077_v13  ;;  %v14464_v58 = vld [vmem:[#allocation8_spill] sm:$0xff]  ;;  %v14467_v0 = vld [vmem:[#allocation11_spill] sm:$0xff]  ;;  %v14473_v59 = vld [vmem:[#allocation17_spill] sm:$0xff] }
0x108f   : > { %v14480_v13 = vld [vmem:[#allocation24_spill] sm:$0xff] }
0x1090   : > { %v5383_v34 = vadd.f32 %v8044_v27, %v5313_v26  ;;  %v14479_v26 = vld [vmem:[#allocation23_spill] sm:$0xff] }
0x1092   : > { %v5453_v36 = vadd.f32 %v8079_v8, %v5383_v34  ;;  %v14466_v34 = vld [vmem:[#allocation10_spill] sm:$0xff]  ;;  %v14468_v8 = vld [vmem:[#allocation12_spill] sm:$0xff] }
0x1094   : > { %10535 = vtanh.f32 %v5453_v36  ;;  %v14474_v36 = vld [vmem:[#allocation18_spill] sm:$0xff] }
0x109e   : > { %v10536_v43 = vpop.eup %10535 }
0x109f   : > { %5522 = vmatmul.mubr.f32.vlgmr.msra.gmra.mrb[44].mxu0 %v10536_v43  ;;  %5593 = vmatmul.mubr.f32.vlgmr.msra.gmra.mrb[44].mxu1 %v10536_v43  ;;  %v5757_v11 = vmul.f32 %v10536_v43, %v10536_v43 }
0x10a0   : > { %9865 = vmatpush1.bf16.msra.mxu0 %v14031_v48  ;;  %9897 = vmatpush1.bf16.msra.mxu1 %v14032_v51 }
0x10a1   : > { %9867 = vmatprep.subr.bf16.mxu0 %v14033_v52  ;;  %9899 = vmatprep.subr.bf16.mxu1 %v14034_v3  ;;  %v5758_v40 = vsub.f32 1.0, %v5757_v11  ;;  %v14471_v11 = vld [vmem:[#allocation15_spill] sm:$0xff] }
0x10a2   : > { %5663 = vmatprep.mubr.f32.mxu0 %v13943_v39  ;;  %5734 = vmatprep.mubr.f32.mxu1 %v13943_v39 }
0x10a3   : > { %v5759_v27 = vmul.f32 %v12796_v29, %v5758_v40  ;;  %v14463_v29 = vld [vmem:[#allocation7_spill] sm:$0xff]  ;;  %v14481_v40 = vld [vmem:[#allocation25_spill] sm:$0xff] }
0x10a4   : > { %9869 = vmatpush1.bf16.msra.mxu0 %v14035_v61  ;;  %9901 = vmatpush1.bf16.msra.mxu1 %v12043_v9 }
0x10a5   : > { %5760 = vadd.xlane.f32.xlu1 %v5759_v27  ;;  %9871 = vmatprep.subr.bf16.mxu0 %v14036_v30  ;;  %v14482_v27 = vld [vmem:[#allocation26_spill] sm:$0xff] }
0x10a6   : > { %9903 = vmatprep.subr.bf16.mxu1 %v14037_v18 }
0x10a8   : > { %9873 = vmatpush1.bf16.msra.mxu0 %v14038_v4  ;;  %9905 = vmatpush1.bf16.msra.mxu1 %v14039_v15 }
0x10a9   : > { %9875 = vmatprep.subr.bf16.mxu0 %v14040_v21  ;;  %9907 = vmatprep.subr.bf16.mxu1 %v14041_v22 }
0x10ac   : > { %9877 = vmatpush1.bf16.msra.mxu0 %v14042_v2  ;;  %9909 = vmatpush1.bf16.msra.mxu1 %v14043_v63 }
0x10ad   : > { %9879 = vmatprep.subr.bf16.mxu0 %v14044_v60  ;;  %9911 = vmatprep.subr.bf16.mxu1 %v14045_v62 }
0x10b0   : > { %9881 = vmatpush1.bf16.msra.mxu0 %v14046_v5  ;;  %9913 = vmatpush1.bf16.msra.mxu1 %v14047_v47 }
0x10b1   : > { %9883 = vmatprep.subr.bf16.mxu0 %v14048_v38  ;;  %9915 = vmatprep.subr.bf16.mxu1 %v14049_v53 }
0x10b4   : > { %9885 = vmatpush1.bf16.msra.mxu0 %v12193_v31  ;;  %9917 = vmatpush1.bf16.msra.mxu1 %v14050_v1 }
0x10b5   : > { %9887 = vmatprep.subr.bf16.mxu0 %v12205_v6  ;;  %9919 = vmatprep.subr.bf16.mxu1 %v12207_v16 }
0x10b8   : > { %9889 = vmatpush1.bf16.msra.mxu0 %v12229_v46  ;;  %9921 = vmatpush1.bf16.msra.mxu1 %v12231_v35 }
0x10b9   : > { %9891 = vmatprep.subr.bf16.mxu0 %v12238_v54  ;;  %9923 = vmatprep.subr.bf16.mxu1 %v12240_v17 }
0x10bc   : > { %9893 = vmatpush1.bf16.msra.mxu0 %v12253_v7  ;;  %9925 = vmatpush1.bf16.msra.mxu1 %v12255_v56 }
0x10bd   : > { %9927 = vmatprep.subr.bf16.mxu0 %v11093_v19  ;;  %9959 = vmatprep.subr.bf16.mxu1 %v11106_v24 }
0x10bf   : > { %5664 = vmatmul.mubr.f32.vlgmr.msra.gmra.mrb[46].mxu0 %v10536_v43  ;;  %5735 = vmatmul.mubr.f32.vlgmr.msra.gmra.mrb[46].mxu1 %v10536_v43  ;;  %v14465_v43 = vld [vmem:[#allocation9_spill] sm:$0xff] }
0x10c0   : > { %9929 = vmatpush3.bf16.msra.mxu0 %v11104_v23  ;;  %9961 = vmatpush3.bf16.msra.mxu1 %v11118_v28 }
0x10c1   : > { %9931 = vmatprep.subr.bf16.mxu0 %v11131_v32  ;;  %9963 = vmatprep.subr.bf16.mxu1 %v11145_v37 }
0x10c4   : > { %9933 = vmatpush3.bf16.msra.mxu0 %v11133_v33  ;;  %9965 = vmatpush3.bf16.msra.mxu1 %v11157_v41 }
0x10c5   : > { %9935 = vmatprep.subr.bf16.mxu0 %v11159_v42  ;;  %9967 = vmatprep.subr.bf16.mxu1 %v11183_v50 }
0x10c8   : > { %9937 = vmatpush3.bf16.msra.mxu0 %v11181_v49  ;;  %9969 = vmatpush3.bf16.msra.mxu1 %v14140_v25 }
0x10c9   : > { %9939 = vmatprep.subr.bf16.mxu0 %v14463_v29  ;;  %9971 = vmatprep.subr.bf16.mxu1 %v14464_v58 }
0x10cc   : > { %9941 = vmatpush3.bf16.msra.mxu0 %v14465_v43  ;;  %9973 = vmatpush3.bf16.msra.mxu1 %v14466_v34  ;;  %v14493_v43 = vld [vmem:[#allocation116_spill] sm:$0xff] }
0x10cd   : > { %9943 = vmatprep.subr.bf16.mxu0 %v14467_v0  ;;  %9975 = vmatprep.subr.bf16.mxu1 %v14468_v8  ;;  %v14487_v8 = vld [vmem:[#allocation121_spill] sm:$0xff] }
0x10ce   : > { %v14488_v0 = vld [vmem:[#allocation113_spill] sm:$0xff] }
0x10d0   : > { %9945 = vmatpush3.bf16.msra.mxu0 %v14469_v55  ;;  %9977 = vmatpush3.bf16.msra.mxu1 %v14470_v12  ;;  %v14486_v55 = vld [vmem:[#allocation123_spill] sm:$0xff] }
0x10d1   : > { %9947 = vmatprep.subr.bf16.mxu0 %v14471_v11  ;;  %9979 = vmatprep.subr.bf16.mxu1 %v14472_v10  ;;  %v14483_v10 = vld [vmem:[#allocation27_spill] sm:$0xff]  ;;  %v14485_v11 = vld [vmem:[#allocation122_spill] sm:$0xff] }
0x10d4   : > { %9949 = vmatpush3.bf16.msra.mxu0 %v14473_v59  ;;  %9981 = vmatpush3.bf16.msra.mxu1 %v14474_v36  ;;  %v14484_v59 = vld [vmem:[#allocation28_spill] sm:$0xff] }
0x10d5   : > { %9951 = vmatprep.subr.bf16.mxu0 %v14475_v20  ;;  %9983 = vmatprep.subr.bf16.mxu1 %v14476_v44 }
0x10d8   : > { %9953 = vmatpush3.bf16.msra.mxu0 %v14477_v45  ;;  %9985 = vmatpush3.bf16.msra.mxu1 %v14478_v14 }
0x10d9   : > { %9955 = vmatprep.subr.bf16.mxu0 %v14479_v26  ;;  %9987 = vmatprep.subr.bf16.mxu1 %v14480_v13 }
0x10dc   : > { %9957 = vmatpush3.bf16.msra.mxu0 %v14481_v40  ;;  %9989 = vmatpush3.bf16.msra.mxu1 %v14482_v27  ;;  %v14490_v27 = vld [vmem:[#allocation114_spill] sm:$0xff] }
0x10dd   : > { %9991 = vmatprep.subr.bf16.mxu0 %v14483_v10  ;;  %10023 = vmatprep.subr.bf16.mxu1 %v14484_v59  ;;  %v14492_v10 = vld [vmem:[#allocation115_spill] sm:$0xff] }
0x1172   : > { %v5523_v36 = vpop.f32.mrb[44].mxu0  ;;  %v5594_v20 = vpop.f32.mrb[44].mxu1 }
0x1173   : > { %v5741_v44 = vadd.f32 %v5523_v36, %v13046_v57  ;;  %v5743_v45 = vadd.f32 %v5594_v20, %v14485_v11  ;;  %v5525_v12 = vpop.f32.mrb[45].mxu0  ;;  %v5596_v14 = vpop.f32.mrb[45].mxu1  ;;  %v14495_v57 = vld [vmem:[#allocation29_spill] sm:$0xff]  ;;  %v14500_v36 = vld [vmem:[#allocation34_spill] sm:$0xff]  ;;  %v14501_v20 = vld [vmem:[#allocation35_spill] sm:$0xff] }
0x1174   : > { %v5742_v26 = vadd.f32 %v5525_v12, %v14486_v55  ;;  %v5744_v13 = vadd.f32 %v5596_v14, %v14487_v8  ;;  %v14496_v8 = vld [vmem:[#allocation30_spill] sm:$0xff]  ;;  %v14497_v55 = vld [vmem:[#allocation31_spill] sm:$0xff]  ;;  %v14498_v12 = vld [vmem:[#allocation32_spill] sm:$0xff] }
0x1175   : > { %v13222_v59 = vadd.f32 %v5741_v44, %v14492_v10  ;;  %v13225_v58 = vadd.f32 %v5743_v45, %v14493_v43  ;;  %v14499_v11 = vld [vmem:[#allocation33_spill] sm:$0xff]  ;;  %v14502_v44 = vld [vmem:[#allocation36_spill] sm:$0xff]  ;;  %v14504_v14 = vld [vmem:[#allocation38_spill] sm:$0xff] }
0x1176   : > { %v13216_v40 = vadd.f32 %v5742_v26, %v14488_v0  ;;  %v13219_v34 = vadd.f32 %v5744_v13, %v14490_v27  ;;  %v14503_v45 = vld [vmem:[#allocation37_spill] sm:$0xff]  ;;  %v14505_v26 = vld [vmem:[#allocation39_spill] sm:$0xff]  ;;  %v14506_v13 = vld [vmem:[#allocation40_spill] sm:$0xff] }
0x1177   : > { %14494 = vst [vmem:[#allocation96_spill] sm:$0xff] %v13225_v58  ;;  %v14522_v43 = vld [vmem:[#allocation97_spill] sm:$0xff]  ;;  %v14523_v27 = vld [vmem:[#allocation55_spill] sm:$0xff] }
0x1178   : > { %14489 = vst [vmem:[#allocation98_spill] sm:$0xff] %v13216_v40  ;;  %14491 = vst [vmem:[#allocation95_spill] sm:$0xff] %v13219_v34  ;;  %5834 = vmatprep.mubr.f32.mxu0 %v13216_v40  ;;  %5904 = vmatprep.mubr.f32.mxu1 %v13219_v34  ;;  %v14526_v0 = vld [vmem:[#allocation93_spill] sm:$0xff]  ;;  %v14527_v34 = vld [vmem:[#allocation118_spill] sm:$0xff] }
0x1179   : > { %5835 = vmatmul.mubr.f32.vlgmr.msra.gmra.mrb[48].mxu0 %v13222_v59  ;;  %5905 = vmatmul.mubr.f32.vlgmr.msra.gmra.mrb[48].mxu1 %v13225_v58 }
0x117a   : > { %9993 = vmatpush3.bf16.msra.mxu0 %v14495_v57  ;;  %10025 = vmatpush3.bf16.msra.mxu1 %v14496_v8  ;;  %v14507_v8 = vld [vmem:[#allocation41_spill] sm:$0xff] }
0x117b   : > { %9995 = vmatprep.subr.bf16.mxu0 %v14497_v55  ;;  %10027 = vmatprep.subr.bf16.mxu1 %v14498_v12  ;;  %v14508_v55 = vld [vmem:[#allocation42_spill] sm:$0xff]  ;;  %v14509_v12 = vld [vmem:[#allocation43_spill] sm:$0xff]  ;;  %v14519_v57 = vld [vmem:[#allocation53_spill] sm:$0xff] }
0x117e   : > { %9997 = vmatpush3.bf16.msra.mxu0 %v14499_v11  ;;  %10029 = vmatpush3.bf16.msra.mxu1 %v14500_v36  ;;  %v14510_v11 = vld [vmem:[#allocation44_spill] sm:$0xff]  ;;  %v14511_v36 = vld [vmem:[#allocation45_spill] sm:$0xff] }
0x117f   : > { %9999 = vmatprep.subr.bf16.mxu0 %v14501_v20  ;;  %10031 = vmatprep.subr.bf16.mxu1 %v14502_v44  ;;  %v14512_v20 = vld [vmem:[#allocation46_spill] sm:$0xff]  ;;  %v14513_v44 = vld [vmem:[#allocation47_spill] sm:$0xff] }
0x1182   : > { %10001 = vmatpush3.bf16.msra.mxu0 %v14503_v45  ;;  %10033 = vmatpush3.bf16.msra.mxu1 %v14504_v14  ;;  %v14514_v45 = vld [vmem:[#allocation48_spill] sm:$0xff]  ;;  %v14515_v14 = vld [vmem:[#allocation49_spill] sm:$0xff] }
0x1183   : > { %10003 = vmatprep.subr.bf16.mxu0 %v14505_v26  ;;  %10035 = vmatprep.subr.bf16.mxu1 %v14506_v13  ;;  %v14516_v26 = vld [vmem:[#allocation50_spill] sm:$0xff]  ;;  %v14517_v13 = vld [vmem:[#allocation51_spill] sm:$0xff] }
0x1186   : > { %10005 = vmatpush3.bf16.msra.mxu0 %v14507_v8  ;;  %10037 = vmatpush3.bf16.msra.mxu1 %v14508_v55  ;;  %v14518_v8 = vld [vmem:[#allocation52_spill] sm:$0xff] }
0x1187   : > { %10007 = vmatprep.subr.bf16.mxu0 %v14509_v12  ;;  %10039 = vmatprep.subr.bf16.mxu1 %v14510_v11  ;;  %v14520_v11 = vld [vmem:[#allocation54_spill] sm:$0xff] }
0x118a   : > { %10009 = vmatpush3.bf16.msra.mxu0 %v14511_v36  ;;  %10041 = vmatpush3.bf16.msra.mxu1 %v14512_v20  ;;  %v14521_v36 = vld [vmem:[#allocation94_spill] sm:$0xff] }
0x118b   : > { %10011 = vmatprep.subr.bf16.mxu0 %v14513_v44  ;;  %10043 = vmatprep.subr.bf16.mxu1 %v14514_v45 }
0x118e   : > { %10013 = vmatpush3.bf16.msra.mxu0 %v14515_v14  ;;  %10045 = vmatpush3.bf16.msra.mxu1 %v14516_v26  ;;  %v14524_v14 = vld [vmem:[#allocation56_spill] sm:$0xff]  ;;  %v14525_v26 = vld [vmem:[#allocation6_spill] sm:$0xff] }
0x118f   : > { %10015 = vmatprep.subr.bf16.mxu0 %v14517_v13  ;;  %10047 = vmatprep.subr.bf16.mxu1 %v14518_v8 }
0x1192   : > { %v5665_v55 = vpop.f32.mrb[46].mxu0  ;;  %v5736_v12 = vpop.f32.mrb[46].mxu1  ;;  %10017 = vmatpush3.bf16.msra.mxu0 %v14519_v57  ;;  %10049 = vmatpush3.bf16.msra.mxu1 %v14520_v11  ;;  %v14529_v57 = vld [vmem:[#allocation119_spill] sm:$0xff]  ;;  %v14531_v11 = vld [vmem:[#allocation57_spill] sm:$0xff] }
0x1193   : > { %v5745_v20 = vadd.f32 %v5665_v55, %v14521_v36  ;;  %v5747_v44 = vadd.f32 %v5736_v12, %v14522_v43  ;;  %v5667_v10 = vpop.f32.mrb[47].mxu0  ;;  %v5738_v45 = vpop.f32.mrb[47].mxu1  ;;  %10019 = vmatprep.subr.bf16.mxu0 %v14523_v27  ;;  %10051 = vmatprep.subr.bf16.mxu1 %v14524_v14  ;;  %v14532_v55 = vld [vmem:[#allocation58_spill] sm:$0xff]  ;;  %v14533_v43 = vld [vmem:[#allocation117_spill] sm:$0xff]  ;;  %v14535_v36 = vld [vmem:[#allocation120_spill] sm:$0xff] }
0x1194   : > { %v5746_v13 = vadd.f32 %v5667_v10, %v14525_v26  ;;  %v5748_v8 = vadd.f32 %v5738_v45, %v14526_v0  ;;  %v14537_v14 = vld [vmem:[#allocation59_spill] sm:$0xff]  ;;  %v14538_v10 = vld [vmem:[#allocation60_spill] sm:$0xff]  ;;  %v14539_v0 = vld [vmem:[#allocation61_spill] sm:$0xff] }
0x1195   : > { %v13272_v12 = vadd.f32 %v5745_v20, %v14533_v43  ;;  %v13275_v27 = vadd.f32 %v5747_v44, %v14535_v36  ;;  %v14541_v20 = vld [vmem:[#allocation63_spill] sm:$0xff]  ;;  %v14542_v44 = vld [vmem:[#allocation64_spill] sm:$0xff]  ;;  %v14543_v45 = vld [vmem:[#allocation65_spill] sm:$0xff] }
0x1196   : > { %v13264_v40 = vadd.f32 %v5746_v13, %v14527_v34  ;;  %v13267_v58 = vadd.f32 %v5748_v8, %v14529_v57  ;;  %10021 = vmatpush3.bf16.msra.mxu0 %v14531_v11  ;;  %10053 = vmatpush3.bf16.msra.mxu1 %v14532_v55  ;;  %v14540_v8 = vld [vmem:[#allocation62_spill] sm:$0xff]  ;;  %v14545_v13 = vld [vmem:[#allocation67_spill] sm:$0xff] }
0x1197   : > { %14534 = vst [vmem:[#allocation100_spill] sm:$0xff] %v13272_v12  ;;  %14536 = vst [vmem:[#allocation104_spill] sm:$0xff] %v13275_v27  ;;  %10055 = vmatprep.subr.bf16.mxu0 %v14537_v14  ;;  %10087 = vmatprep.subr.bf16.mxu1 %v14538_v10  ;;  %v14544_v26 = vld [vmem:[#allocation66_spill] sm:$0xff]  ;;  %v14546_v10 = vld [vmem:[#allocation68_spill] sm:$0xff] }
0x1198   : > { %14528 = vst [vmem:[#allocation101_spill] sm:$0xff] %v13264_v40  ;;  %14530 = vst [vmem:[#allocation99_spill] sm:$0xff] %v13267_v58  ;;  %5974 = vmatprep.mubr.f32.mxu0 %v13264_v40  ;;  %6044 = vmatprep.mubr.f32.mxu1 %v13267_v58  ;;  %v14547_v14 = vld [vmem:[#allocation69_spill] sm:$0xff]  ;;  %v14552_v36 = vld [vmem:[#allocation74_spill] sm:$0xff] }
0x1199   : > { %5975 = vmatmul.mubr.f32.vlgmr.msra.gmra.mrb[50].mxu0 %v13272_v12  ;;  %6045 = vmatmul.mubr.f32.vlgmr.msra.gmra.mrb[50].mxu1 %v13275_v27  ;;  %v14553_v43 = vld [vmem:[#allocation75_spill] sm:$0xff] }
0x119a   : > { %10057 = vmatpush1.bf16.msra.mxu0 %v14539_v0  ;;  %10089 = vmatpush1.bf16.msra.mxu1 %v14540_v8  ;;  %v14548_v0 = vld [vmem:[#allocation70_spill] sm:$0xff]  ;;  %v14549_v8 = vld [vmem:[#allocation71_spill] sm:$0xff] }
0x119b   : > { %10059 = vmatprep.subr.bf16.mxu0 %v14541_v20  ;;  %10091 = vmatprep.subr.bf16.mxu1 %v14542_v44  ;;  %v14550_v20 = vld [vmem:[#allocation72_spill] sm:$0xff]  ;;  %v14551_v44 = vld [vmem:[#allocation73_spill] sm:$0xff] }
0x119c   : > { %6115 = vmatprep.mubr.f32.mxu0 %v13943_v39  ;;  %6186 = vmatprep.mubr.f32.mxu1 %v13943_v39 }
0x119e   : > { %10061 = vmatpush1.bf16.msra.mxu0 %v14543_v45  ;;  %10093 = vmatpush1.bf16.msra.mxu1 %v14544_v26  ;;  %v14554_v45 = vld [vmem:[#allocation76_spill] sm:$0xff]  ;;  %v14555_v26 = vld [vmem:[#allocation77_spill] sm:$0xff] }
0x119f   : > { %10063 = vmatprep.subr.bf16.mxu0 %v14545_v13  ;;  %10095 = vmatprep.subr.bf16.mxu1 %v14546_v10  ;;  %v14556_v13 = vld [vmem:[#allocation78_spill] sm:$0xff]  ;;  %v14557_v10 = vld [vmem:[#allocation79_spill] sm:$0xff] }
0x11a2   : > { %10065 = vmatpush1.bf16.msra.mxu0 %v14547_v14  ;;  %10097 = vmatpush1.bf16.msra.mxu1 %v14548_v0  ;;  %v14558_v14 = vld [vmem:[#allocation80_spill] sm:$0xff]  ;;  %v14559_v0 = vld [vmem:[#allocation81_spill] sm:$0xff] }
0x11a3   : > { %10067 = vmatprep.subr.bf16.mxu0 %v14549_v8  ;;  %10099 = vmatprep.subr.bf16.mxu1 %v14550_v20  ;;  %v14560_v8 = vld [vmem:[#allocation82_spill] sm:$0xff]  ;;  %v14561_v20 = vld [vmem:[#allocation83_spill] sm:$0xff] }
0x11a6   : > { %10069 = vmatpush1.bf16.msra.mxu0 %v14551_v44  ;;  %10101 = vmatpush1.bf16.msra.mxu1 %v14552_v36  ;;  %v14562_v44 = vld [vmem:[#allocation84_spill] sm:$0xff]  ;;  %v14563_v36 = vld [vmem:[#allocation85_spill] sm:$0xff] }
0x11a7   : > { %10071 = vmatprep.subr.bf16.mxu0 %v14553_v43  ;;  %10103 = vmatprep.subr.bf16.mxu1 %v14554_v45  ;;  %v14564_v43 = vld [vmem:[#allocation86_spill] sm:$0xff]  ;;  %v14565_v45 = vld [vmem:[#allocation87_spill] sm:$0xff] }
0x11aa   : > { %10073 = vmatpush1.bf16.msra.mxu0 %v14555_v26  ;;  %10105 = vmatpush1.bf16.msra.mxu1 %v14556_v13  ;;  %v14566_v26 = vld [vmem:[#allocation88_spill] sm:$0xff]  ;;  %v14567_v13 = vld [vmem:[#allocation89_spill] sm:$0xff] }
0x11ab   : > { %10075 = vmatprep.subr.bf16.mxu0 %v14557_v10  ;;  %10107 = vmatprep.subr.bf16.mxu1 %v14558_v14  ;;  %v14568_v10 = vld [vmem:[#allocation90_spill] sm:$0xff]  ;;  %v14569_v14 = vld [vmem:[#allocation91_spill] sm:$0xff] }
0x11ae   : > { %10077 = vmatpush1.bf16.msra.mxu0 %v14559_v0  ;;  %10109 = vmatpush1.bf16.msra.mxu1 %v14560_v8  ;;  %v14570_v0 = vld [vmem:[#allocation92_spill] sm:$0xff] }
0x11af   : > { %10079 = vmatprep.subr.bf16.mxu0 %v14561_v20  ;;  %10111 = vmatprep.subr.bf16.mxu1 %v14562_v44 }
0x11b2   : > { %10081 = vmatpush1.bf16.msra.mxu0 %v14563_v36  ;;  %10113 = vmatpush1.bf16.msra.mxu1 %v14564_v43  ;;  %v7137_v36 = vld [vmem:[%s13563_s1 + $0x24] ss:$0 sm:$0xff] }
0x11b3   : > { %10083 = vmatprep.subr.bf16.mxu0 %v14565_v45  ;;  %10115 = vmatprep.subr.bf16.mxu1 %v14566_v26 }
0x11b6   : > { %10085 = vmatpush1.bf16.msra.mxu0 %v14567_v13  ;;  %10117 = vmatpush1.bf16.msra.mxu1 %v14568_v10 }
0x11b7   : > { %10119 = vmatprep.subr.bf16.mxu0 %v14569_v14  ;;  %10151 = vmatprep.subr.bf16.mxu1 %v14570_v0 }
0x124c   : > { %v8112_v8 = vpop.f32.mrb[48].mxu0  ;;  %v8147_v20 = vpop.f32.mrb[48].mxu1 }
0x124d   : > { %v8113_v44 = vpop.f32.mrb[49].mxu0  ;;  %v8148_v43 = vpop.f32.mrb[49].mxu1 }
0x124e   : > { %v8114_v55 = vadd.f32 %v8113_v44, %v8112_v8  ;;  %v8149_v45 = vadd.f32 %v8148_v43, %v8147_v20  ;;  %v14589_v43 = vld [vmem:[#allocation26_spill] sm:$0xff]  ;;  %v14592_v20 = vld [vmem:[#allocation96_spill] sm:$0xff] }
0x1250   : > { %v5837_v11 = vadd.f32 %v8114_v55, %v7137_v36  ;;  %v14588_v55 = vld [vmem:[#allocation25_spill] sm:$0xff]  ;;  %v14591_v36 = vld [vmem:[#allocation28_spill] sm:$0xff] }
0x1252   : > { %v5907_v26 = vadd.f32 %v8149_v45, %v5837_v11 }
0x126c   : > { %v8182_v57 = vpop.f32.mrb[50].mxu0  ;;  %v8217_v13 = vpop.f32.mrb[50].mxu1 }
0x126d   : > { %v8183_v34 = vpop.f32.mrb[51].mxu0  ;;  %v8218_v10 = vpop.f32.mrb[51].mxu1 }
0x126e   : > { %v8184_v58 = vadd.f32 %v8183_v34, %v8182_v57  ;;  %v8219_v14 = vadd.f32 %v8218_v10, %v8217_v13  ;;  %v14586_v57 = vld [vmem:[#allocation23_spill] sm:$0xff]  ;;  %v14593_v13 = vld [vmem:[#allocation98_spill] sm:$0xff] }
0x1270   : > { %v5977_v40 = vadd.f32 %v8184_v58, %v5907_v26  ;;  %v13329_v58 = vld [vmem:[%s13563_s1 + $0x1d] ss:$0 sm:$0xff] }
0x1272   : > { %v6047_v0 = vadd.f32 %v8219_v14, %v5977_v40  ;;  %v14584_v40 = vld [vmem:[#allocation21_spill] sm:$0xff]  ;;  %v14587_v14 = vld [vmem:[#allocation24_spill] sm:$0xff] }
0x1274   : > { %10537 = vtanh.f32 %v6047_v0 }
0x127e   : > { %v10538_v27 = vpop.eup %10537 }
0x127f   : > { %6116 = vmatmul.mubr.f32.vlgmr.msra.gmra.mrb[52].mxu0 %v10538_v27  ;;  %6187 = vmatmul.mubr.f32.vlgmr.msra.gmra.mrb[52].mxu1 %v10538_v27  ;;  %v6351_v12 = vmul.f32 %v10538_v27, %v10538_v27 }
0x1280   : > { %10121 = vmatpush1.bf16.msra.mxu0 %v14031_v48  ;;  %10153 = vmatpush1.bf16.msra.mxu1 %v14032_v51 }
0x1281   : > { %10123 = vmatprep.subr.bf16.mxu0 %v14033_v52  ;;  %10155 = vmatprep.subr.bf16.mxu1 %v14034_v3  ;;  %v6352_v11 = vsub.f32 1.0, %v6351_v12  ;;  %v14590_v12 = vld [vmem:[#allocation27_spill] sm:$0xff] }
0x1282   : > { %6257 = vmatprep.mubr.f32.mxu0 %v13943_v39  ;;  %6328 = vmatprep.mubr.f32.mxu1 %v13943_v39 }
0x1283   : > { %v6353_v34 = vmul.f32 %v13329_v58, %v6352_v11 }
0x1284   : > { %10125 = vmatpush1.bf16.msra.mxu0 %v14035_v61  ;;  %10157 = vmatpush1.bf16.msra.mxu1 %v12043_v9 }
0x1285   : > { %6354 = vadd.xlane.f32.xlu0 %v6353_v34  ;;  %10127 = vmatprep.subr.bf16.mxu0 %v14036_v30  ;;  %v14594_v34 = vld [vmem:[#allocation95_spill] sm:$0xff] }
0x1286   : > { %10159 = vmatprep.subr.bf16.mxu1 %v14037_v18 }
0x1288   : > { %10129 = vmatpush1.bf16.msra.mxu0 %v14038_v4  ;;  %10161 = vmatpush1.bf16.msra.mxu1 %v14039_v15 }
0x1289   : > { %10131 = vmatprep.subr.bf16.mxu0 %v14040_v21  ;;  %10163 = vmatprep.subr.bf16.mxu1 %v14041_v22 }
0x128c   : > { %10133 = vmatpush1.bf16.msra.mxu0 %v14042_v2  ;;  %10165 = vmatpush1.bf16.msra.mxu1 %v14043_v63 }
0x128d   : > { %10135 = vmatprep.subr.bf16.mxu0 %v14044_v60  ;;  %10167 = vmatprep.subr.bf16.mxu1 %v14045_v62 }
0x1290   : > { %10137 = vmatpush1.bf16.msra.mxu0 %v14046_v5  ;;  %10169 = vmatpush1.bf16.msra.mxu1 %v14047_v47 }
0x1291   : > { %10139 = vmatprep.subr.bf16.mxu0 %v14048_v38  ;;  %10171 = vmatprep.subr.bf16.mxu1 %v14049_v53 }
0x1294   : > { %10141 = vmatpush1.bf16.msra.mxu0 %v12193_v31  ;;  %10173 = vmatpush1.bf16.msra.mxu1 %v14050_v1 }
0x1295   : > { %10143 = vmatprep.subr.bf16.mxu0 %v12205_v6  ;;  %10175 = vmatprep.subr.bf16.mxu1 %v12207_v16 }
0x1298   : > { %10145 = vmatpush1.bf16.msra.mxu0 %v12229_v46  ;;  %10177 = vmatpush1.bf16.msra.mxu1 %v12231_v35 }
0x1299   : > { %10147 = vmatprep.subr.bf16.mxu0 %v12238_v54  ;;  %10179 = vmatprep.subr.bf16.mxu1 %v12240_v17 }
0x129c   : > { %10149 = vmatpush1.bf16.msra.mxu0 %v12253_v7  ;;  %10181 = vmatpush1.bf16.msra.mxu1 %v12255_v56 }
0x129d   : > { %10183 = vmatprep.subr.bf16.mxu0 %v11093_v19  ;;  %10215 = vmatprep.subr.bf16.mxu1 %v11106_v24  ;;  %v14571_v19 = vld [vmem:[#allocation8_spill] sm:$0xff]  ;;  %v14573_v24 = vld [vmem:[#allocation10_spill] sm:$0xff] }
0x129f   : > { %6258 = vmatmul.mubr.f32.vlgmr.msra.gmra.mrb[54].mxu0 %v10538_v27  ;;  %6329 = vmatmul.mubr.f32.vlgmr.msra.gmra.mrb[54].mxu1 %v10538_v27  ;;  %v14585_v27 = vld [vmem:[#allocation22_spill] sm:$0xff] }
0x12a0   : > { %10185 = vmatpush3.bf16.msra.mxu0 %v11104_v23  ;;  %10217 = vmatpush3.bf16.msra.mxu1 %v11118_v28  ;;  %v14572_v23 = vld [vmem:[#allocation9_spill] sm:$0xff]  ;;  %v14574_v28 = vld [vmem:[#allocation11_spill] sm:$0xff] }
0x12a1   : > { %10187 = vmatprep.subr.bf16.mxu0 %v11131_v32  ;;  %10219 = vmatprep.subr.bf16.mxu1 %v11145_v37  ;;  %v14575_v32 = vld [vmem:[#allocation12_spill] sm:$0xff]  ;;  %v14577_v37 = vld [vmem:[#allocation14_spill] sm:$0xff] }
0x12a4   : > { %10189 = vmatpush3.bf16.msra.mxu0 %v11133_v33  ;;  %10221 = vmatpush3.bf16.msra.mxu1 %v11157_v41  ;;  %v14576_v33 = vld [vmem:[#allocation13_spill] sm:$0xff]  ;;  %v14578_v41 = vld [vmem:[#allocation15_spill] sm:$0xff] }
0x12a5   : > { %10191 = vmatprep.subr.bf16.mxu0 %v11159_v42  ;;  %10223 = vmatprep.subr.bf16.mxu1 %v11183_v50  ;;  %v14579_v42 = vld [vmem:[#allocation16_spill] sm:$0xff]  ;;  %v14581_v50 = vld [vmem:[#allocation18_spill] sm:$0xff] }
0x12a8   : > { %10193 = vmatpush3.bf16.msra.mxu0 %v11181_v49  ;;  %10225 = vmatpush3.bf16.msra.mxu1 %v14140_v25  ;;  %v14580_v49 = vld [vmem:[#allocation17_spill] sm:$0xff]  ;;  %v14582_v25 = vld [vmem:[#allocation19_spill] sm:$0xff] }
0x12a9   : > { %10195 = vmatprep.subr.bf16.mxu0 %v14463_v29  ;;  %10227 = vmatprep.subr.bf16.mxu1 %v14571_v19  ;;  %v14583_v29 = vld [vmem:[#allocation20_spill] sm:$0xff] }
0x12ac   : > { %10197 = vmatpush3.bf16.msra.mxu0 %v14572_v23  ;;  %10229 = vmatpush3.bf16.msra.mxu1 %v14573_v24  ;;  %v14595_v23 = vld [vmem:[#allocation113_spill] sm:$0xff] }
0x12ad   : > { %10199 = vmatprep.subr.bf16.mxu0 %v14574_v28  ;;  %10231 = vmatprep.subr.bf16.mxu1 %v14575_v32  ;;  %v14596_v28 = vld [vmem:[#allocation114_spill] sm:$0xff] }
0x12b0   : > { %10201 = vmatpush3.bf16.msra.mxu0 %v14576_v33  ;;  %10233 = vmatpush3.bf16.msra.mxu1 %v14577_v37  ;;  %v14597_v33 = vld [vmem:[#allocation115_spill] sm:$0xff] }
0x12b1   : > { %10203 = vmatprep.subr.bf16.mxu0 %v14578_v41  ;;  %10235 = vmatprep.subr.bf16.mxu1 %v14579_v42  ;;  %v14598_v41 = vld [vmem:[#allocation116_spill] sm:$0xff] }
0x12b4   : > { %10205 = vmatpush3.bf16.msra.mxu0 %v14580_v49  ;;  %10237 = vmatpush3.bf16.msra.mxu1 %v14581_v50  ;;  %v14600_v49 = vld [vmem:[#allocation30_spill] sm:$0xff]  ;;  %v14601_v50 = vld [vmem:[#allocation31_spill] sm:$0xff] }
0x12b5   : > { %10207 = vmatprep.subr.bf16.mxu0 %v14582_v25  ;;  %10239 = vmatprep.subr.bf16.mxu1 %v14583_v29  ;;  %v14602_v25 = vld [vmem:[#allocation32_spill] sm:$0xff]  ;;  %v14603_v29 = vld [vmem:[#allocation33_spill] sm:$0xff] }
0x12b8   : > { %10209 = vmatpush3.bf16.msra.mxu0 %v14584_v40  ;;  %10241 = vmatpush3.bf16.msra.mxu1 %v14585_v27  ;;  %v14604_v40 = vld [vmem:[#allocation34_spill] sm:$0xff]  ;;  %v14605_v27 = vld [vmem:[#allocation35_spill] sm:$0xff] }
0x12b9   : > { %10211 = vmatprep.subr.bf16.mxu0 %v14586_v57  ;;  %10243 = vmatprep.subr.bf16.mxu1 %v14587_v14  ;;  %v14606_v57 = vld [vmem:[#allocation36_spill] sm:$0xff]  ;;  %v14607_v14 = vld [vmem:[#allocation37_spill] sm:$0xff] }
0x12bc   : > { %10213 = vmatpush3.bf16.msra.mxu0 %v14588_v55  ;;  %10245 = vmatpush3.bf16.msra.mxu1 %v14589_v43  ;;  %v14608_v55 = vld [vmem:[#allocation38_spill] sm:$0xff]  ;;  %v14609_v43 = vld [vmem:[#allocation39_spill] sm:$0xff] }
0x12bd   : > { %10247 = vmatprep.subr.bf16.mxu0 %v14590_v12  ;;  %10279 = vmatprep.subr.bf16.mxu1 %v14591_v36  ;;  %v14610_v12 = vld [vmem:[#allocation40_spill] sm:$0xff]  ;;  %v14611_v36 = vld [vmem:[#allocation41_spill] sm:$0xff] }
0x1352   : > { %v6117_v10 = vpop.f32.mrb[52].mxu0  ;;  %v6188_v0 = vpop.f32.mrb[52].mxu1 }
0x1353   : > { %v6335_v8 = vadd.f32 %v6117_v10, %v13222_v59  ;;  %v6337_v44 = vadd.f32 %v6188_v0, %v14592_v20  ;;  %v6119_v45 = vpop.f32.mrb[53].mxu0  ;;  %v6190_v26 = vpop.f32.mrb[53].mxu1  ;;  %v14599_v59 = vld [vmem:[#allocation29_spill] sm:$0xff]  ;;  %v14612_v10 = vld [vmem:[#allocation42_spill] sm:$0xff]  ;;  %v14613_v0 = vld [vmem:[#allocation43_spill] sm:$0xff] }
0x1354   : > { %v6336_v11 = vadd.f32 %v6119_v45, %v14593_v13  ;;  %v6338_v19 = vadd.f32 %v6190_v26, %v14594_v34  ;;  %v14615_v20 = vld [vmem:[#allocation45_spill] sm:$0xff]  ;;  %v14617_v45 = vld [vmem:[#allocation47_spill] sm:$0xff]  ;;  %v14618_v26 = vld [vmem:[#allocation48_spill] sm:$0xff] }
0x1355   : > { %v13403_v37 = vadd.f32 %v6335_v8, %v14597_v33  ;;  %v13406_v42 = vadd.f32 %v6337_v44, %v14598_v41  ;;  %v14614_v8 = vld [vmem:[#allocation44_spill] sm:$0xff]  ;;  %v14616_v44 = vld [vmem:[#allocation46_spill] sm:$0xff]  ;;  %v14619_v13 = vld [vmem:[#allocation49_spill] sm:$0xff] }
0x1356   : > { %v13397_v24 = vadd.f32 %v6336_v11, %v14595_v23  ;;  %v13400_v32 = vadd.f32 %v6338_v19, %v14596_v28  ;;  %v14620_v11 = vld [vmem:[#allocation50_spill] sm:$0xff]  ;;  %v14621_v34 = vld [vmem:[#allocation51_spill] sm:$0xff]  ;;  %v14622_v19 = vld [vmem:[#allocation52_spill] sm:$0xff] }
0x1358   : > { %6428 = vmatprep.mubr.f32.mxu0 %v13397_v24  ;;  %6498 = vmatprep.mubr.f32.mxu1 %v13400_v32 }
0x1359   : > { %6429 = vmatmul.mubr.f32.vlgmr.msra.gmra.mrb[56].mxu0 %v13403_v37  ;;  %6499 = vmatmul.mubr.f32.vlgmr.msra.gmra.mrb[56].mxu1 %v13406_v42 }
0x135a   : > { %10249 = vmatpush3.bf16.msra.mxu0 %v14599_v59  ;;  %10281 = vmatpush3.bf16.msra.mxu1 %v14600_v49 }
0x135b   : > { %10251 = vmatprep.subr.bf16.mxu0 %v14601_v50  ;;  %10283 = vmatprep.subr.bf16.mxu1 %v14602_v25  ;;  %v14623_v50 = vld [vmem:[#allocation53_spill] sm:$0xff]  ;;  %v14624_v25 = vld [vmem:[#allocation54_spill] sm:$0xff] }
0x135e   : > { %10253 = vmatpush3.bf16.msra.mxu0 %v14603_v29  ;;  %10285 = vmatpush3.bf16.msra.mxu1 %v14604_v40  ;;  %v14625_v29 = vld [vmem:[#allocation100_spill] sm:$0xff] }
0x135f   : > { %10255 = vmatprep.subr.bf16.mxu0 %v14605_v27  ;;  %10287 = vmatprep.subr.bf16.mxu1 %v14606_v57  ;;  %v14626_v27 = vld [vmem:[#allocation104_spill] sm:$0xff] }
0x1362   : > { %10257 = vmatpush3.bf16.msra.mxu0 %v14607_v14  ;;  %10289 = vmatpush3.bf16.msra.mxu1 %v14608_v55 }
0x1363   : > { %10259 = vmatprep.subr.bf16.mxu0 %v14609_v43  ;;  %10291 = vmatprep.subr.bf16.mxu1 %v14610_v12  ;;  %v14627_v43 = vld [vmem:[#allocation55_spill] sm:$0xff]  ;;  %v14628_v12 = vld [vmem:[#allocation56_spill] sm:$0xff] }
0x1366   : > { %10261 = vmatpush3.bf16.msra.mxu0 %v14611_v36  ;;  %10293 = vmatpush3.bf16.msra.mxu1 %v14612_v10  ;;  %v14629_v36 = vld [vmem:[#allocation101_spill] sm:$0xff] }
0x1367   : > { %10263 = vmatprep.subr.bf16.mxu0 %v14613_v0  ;;  %10295 = vmatprep.subr.bf16.mxu1 %v14614_v8  ;;  %v14630_v0 = vld [vmem:[#allocation99_spill] sm:$0xff] }
0x136a   : > { %10265 = vmatpush3.bf16.msra.mxu0 %v14615_v20  ;;  %10297 = vmatpush3.bf16.msra.mxu1 %v14616_v44  ;;  %v14631_v20 = vld [vmem:[#allocation118_spill] sm:$0xff] }
0x136b   : > { %10267 = vmatprep.subr.bf16.mxu0 %v14617_v45  ;;  %10299 = vmatprep.subr.bf16.mxu1 %v14618_v26  ;;  %v14632_v45 = vld [vmem:[#allocation119_spill] sm:$0xff] }
0x136e   : > { %10269 = vmatpush3.bf16.msra.mxu0 %v14619_v13  ;;  %10301 = vmatpush3.bf16.msra.mxu1 %v14620_v11  ;;  %v14633_v13 = vld [vmem:[#allocation57_spill] sm:$0xff]  ;;  %v14634_v11 = vld [vmem:[#allocation58_spill] sm:$0xff] }
0x136f   : > { %10271 = vmatprep.subr.bf16.mxu0 %v14621_v34  ;;  %10303 = vmatprep.subr.bf16.mxu1 %v14622_v19  ;;  %v14635_v34 = vld [vmem:[#allocation117_spill] sm:$0xff] }
0x1372   : > { %v6259_v59 = vpop.f32.mrb[54].mxu0  ;;  %v6330_v49 = vpop.f32.mrb[54].mxu1  ;;  %10273 = vmatpush3.bf16.msra.mxu0 %v14623_v50  ;;  %10305 = vmatpush3.bf16.msra.mxu1 %v14624_v25  ;;  %v14637_v50 = vld [vmem:[#allocation59_spill] sm:$0xff]  ;;  %v14638_v25 = vld [vmem:[#allocation60_spill] sm:$0xff] }
0x1373   : > { %v6339_v40 = vadd.f32 %v6259_v59, %v14625_v29  ;;  %v6341_v57 = vadd.f32 %v6330_v49, %v14626_v27  ;;  %v6261_v14 = vpop.f32.mrb[55].mxu0  ;;  %v6332_v55 = vpop.f32.mrb[55].mxu1  ;;  %10275 = vmatprep.subr.bf16.mxu0 %v14627_v43  ;;  %10307 = vmatprep.subr.bf16.mxu1 %v14628_v12  ;;  %v14636_v59 = vld [vmem:[#allocation120_spill] sm:$0xff]  ;;  %v14639_v29 = vld [vmem:[#allocation61_spill] sm:$0xff]  ;;  %v14640_v27 = vld [vmem:[#allocation62_spill] sm:$0xff] }
0x1374   : > { %v6340_v10 = vadd.f32 %v6261_v14, %v14629_v36  ;;  %v6342_v8 = vadd.f32 %v6332_v55, %v14630_v0  ;;  %v14643_v14 = vld [vmem:[#allocation65_spill] sm:$0xff]  ;;  %v14644_v55 = vld [vmem:[#allocation66_spill] sm:$0xff]  ;;  %v14645_v43 = vld [vmem:[#allocation67_spill] sm:$0xff] }
0x1375   : > { %v13453_v19 = vadd.f32 %v6339_v40, %v14635_v34  ;;  %v13456_v49 = vadd.f32 %v6341_v57, %v14636_v59  ;;  %v14641_v40 = vld [vmem:[#allocation63_spill] sm:$0xff]  ;;  %v14642_v57 = vld [vmem:[#allocation64_spill] sm:$0xff]  ;;  %v14647_v36 = vld [vmem:[#allocation69_spill] sm:$0xff] }
0x1376   : > { %v13445_v44 = vadd.f32 %v6340_v10, %v14631_v20  ;;  %v13448_v26 = vadd.f32 %v6342_v8, %v14632_v45  ;;  %10277 = vmatpush3.bf16.msra.mxu0 %v14633_v13  ;;  %10309 = vmatpush3.bf16.msra.mxu1 %v14634_v11  ;;  %v14646_v12 = vld [vmem:[#allocation68_spill] sm:$0xff]  ;;  %v14648_v10 = vld [vmem:[#allocation70_spill] sm:$0xff]  ;;  %v14649_v0 = vld [vmem:[#allocation71_spill] sm:$0xff] }
0x1377   : > { %10311 = vmatprep.subr.bf16.mxu0 %v14637_v50  ;;  %10343 = vmatprep.subr.bf16.mxu1 %v14638_v25  ;;  %v14650_v8 = vld [vmem:[#allocation72_spill] sm:$0xff]  ;;  %v14651_v13 = vld [vmem:[#allocation73_spill] sm:$0xff]  ;;  %v14652_v11 = vld [vmem:[#allocation74_spill] sm:$0xff] }
0x1378   : > { %6568 = vmatprep.mubr.f32.mxu0 %v13445_v44  ;;  %6638 = vmatprep.mubr.f32.mxu1 %v13448_v26  ;;  %v14653_v50 = vld [vmem:[#allocation75_spill] sm:$0xff]  ;;  %v14654_v25 = vld [vmem:[#allocation76_spill] sm:$0xff] }
0x1379   : > { %6569 = vmatmul.mubr.f32.vlgmr.msra.gmra.mrb[58].mxu0 %v13453_v19  ;;  %6639 = vmatmul.mubr.f32.vlgmr.msra.gmra.mrb[58].mxu1 %v13456_v49 }
0x137a   : > { %10313 = vmatpush1.bf16.msra.mxu0 %v14639_v29  ;;  %10345 = vmatpush1.bf16.msra.mxu1 %v14640_v27  ;;  %v14655_v29 = vld [vmem:[#allocation77_spill] sm:$0xff]  ;;  %v14656_v27 = vld [vmem:[#allocation78_spill] sm:$0xff] }
0x137b   : > { %10315 = vmatprep.subr.bf16.mxu0 %v14641_v40  ;;  %10347 = vmatprep.subr.bf16.mxu1 %v14642_v57  ;;  %v14657_v40 = vld [vmem:[#allocation79_spill] sm:$0xff]  ;;  %v14658_v57 = vld [vmem:[#allocation80_spill] sm:$0xff] }
0x137c   : > { %6709 = vmatprep.mubr.f32.mxu0 %v13943_v39  ;;  %6780 = vmatprep.mubr.f32.mxu1 %v13943_v39 }
0x137e   : > { %10317 = vmatpush1.bf16.msra.mxu0 %v14643_v14  ;;  %10349 = vmatpush1.bf16.msra.mxu1 %v14644_v55  ;;  %v14659_v14 = vld [vmem:[#allocation81_spill] sm:$0xff]  ;;  %v14660_v55 = vld [vmem:[#allocation82_spill] sm:$0xff] }
0x137f   : > { %10319 = vmatprep.subr.bf16.mxu0 %v14645_v43  ;;  %10351 = vmatprep.subr.bf16.mxu1 %v14646_v12  ;;  %v14661_v43 = vld [vmem:[#allocation83_spill] sm:$0xff]  ;;  %v14662_v12 = vld [vmem:[#allocation84_spill] sm:$0xff] }
0x1382   : > { %10321 = vmatpush1.bf16.msra.mxu0 %v14647_v36  ;;  %10353 = vmatpush1.bf16.msra.mxu1 %v14648_v10  ;;  %v14663_v36 = vld [vmem:[#allocation85_spill] sm:$0xff]  ;;  %v14664_v10 = vld [vmem:[#allocation86_spill] sm:$0xff] }
0x1383   : > { %10323 = vmatprep.subr.bf16.mxu0 %v14649_v0  ;;  %10355 = vmatprep.subr.bf16.mxu1 %v14650_v8  ;;  %v14665_v0 = vld [vmem:[#allocation87_spill] sm:$0xff]  ;;  %v14666_v8 = vld [vmem:[#allocation88_spill] sm:$0xff] }
0x1386   : > { %10325 = vmatpush1.bf16.msra.mxu0 %v14651_v13  ;;  %10357 = vmatpush1.bf16.msra.mxu1 %v14652_v11  ;;  %v14667_v13 = vld [vmem:[#allocation89_spill] sm:$0xff]  ;;  %v14668_v11 = vld [vmem:[#allocation90_spill] sm:$0xff] }
0x1387   : > { %10327 = vmatprep.subr.bf16.mxu0 %v14653_v50  ;;  %10359 = vmatprep.subr.bf16.mxu1 %v14654_v25  ;;  %v14669_v50 = vld [vmem:[#allocation91_spill] sm:$0xff]  ;;  %v14670_v25 = vld [vmem:[#allocation92_spill] sm:$0xff] }
0x138a   : > { %10329 = vmatpush1.bf16.msra.mxu0 %v14655_v29  ;;  %10361 = vmatpush1.bf16.msra.mxu1 %v14656_v27 }
0x138b   : > { %10331 = vmatprep.subr.bf16.mxu0 %v14657_v40  ;;  %10363 = vmatprep.subr.bf16.mxu1 %v14658_v57  ;;  %v7138_v40 = vld [vmem:[%s13563_s1 + $0x25] ss:$0 sm:$0xff] }
0x138e   : > { %10333 = vmatpush1.bf16.msra.mxu0 %v14659_v14  ;;  %10365 = vmatpush1.bf16.msra.mxu1 %v14660_v55 }
0x138f   : > { %10335 = vmatprep.subr.bf16.mxu0 %v14661_v43  ;;  %10367 = vmatprep.subr.bf16.mxu1 %v14662_v12 }
0x1392   : > { %10337 = vmatpush1.bf16.msra.mxu0 %v14663_v36  ;;  %10369 = vmatpush1.bf16.msra.mxu1 %v14664_v10 }
0x1393   : > { %10339 = vmatprep.subr.bf16.mxu0 %v14665_v0  ;;  %10371 = vmatprep.subr.bf16.mxu1 %v14666_v8 }
0x1396   : > { %10341 = vmatpush1.bf16.msra.mxu0 %v14667_v13  ;;  %10373 = vmatpush1.bf16.msra.mxu1 %v14668_v11 }
0x1397   : > { %10375 = vmatprep.subr.bf16.mxu0 %v14669_v50  ;;  %10407 = vmatprep.subr.bf16.mxu1 %v14670_v25 }
0x142c   : > { %v8252_v29 = vpop.f32.mrb[56].mxu0  ;;  %v8287_v27 = vpop.f32.mrb[56].mxu1 }
0x142d   : > { %v8253_v57 = vpop.f32.mrb[57].mxu0  ;;  %v8288_v14 = vpop.f32.mrb[57].mxu1 }
0x142e   : > { %v8254_v55 = vadd.f32 %v8253_v57, %v8252_v29  ;;  %v8289_v43 = vadd.f32 %v8288_v14, %v8287_v27 }
0x1430   : > { %v6431_v12 = vadd.f32 %v8254_v55, %v7138_v40 }
0x1432   : > { %v6501_v36 = vadd.f32 %v8289_v43, %v6431_v12 }
0x144c   : > { %v8322_v10 = vpop.f32.mrb[58].mxu0  ;;  %v8357_v0 = vpop.f32.mrb[58].mxu1 }
0x144d   : > { %v8323_v8 = vpop.f32.mrb[59].mxu0  ;;  %v8358_v13 = vpop.f32.mrb[59].mxu1 }
0x144e   : > { %v8324_v11 = vadd.f32 %v8323_v8, %v8322_v10  ;;  %v8359_v50 = vadd.f32 %v8358_v13, %v8357_v0 }
0x1450   : > { %v6571_v45 = vadd.f32 %v8324_v11, %v6501_v36 }
0x1452   : > { %v6641_v25 = vadd.f32 %v8359_v50, %v6571_v45 }
0x1454   : > { %10539 = vtanh.f32 %v6641_v25 }
0x145e   : > { %v10540_v20 = vpop.eup %10539 }
0x145f   : > { %6710 = vmatmul.mubr.f32.vlgmr.msra.gmra.mrb[60].mxu0 %v10540_v20  ;;  %6781 = vmatmul.mubr.f32.vlgmr.msra.gmra.mrb[60].mxu1 %v10540_v20  ;;  %v6945_v59 = vmul.f32 %v10540_v20, %v10540_v20 }
0x1460   : > { %10377 = vmatpush1.bf16.msra.mxu0 %v14031_v48  ;;  %10409 = vmatpush1.bf16.msra.mxu1 %v14032_v51  ;;  %v2791_v48 = vpop.xlane.xlu0 %2790 }
0x1461   : > { %10379 = vmatprep.subr.bf16.mxu0 %v14033_v52  ;;  %10411 = vmatprep.subr.bf16.mxu1 %v14034_v3  ;;  %v6946_v29 = vsub.f32 1.0, %v6945_v59  ;;  %v14673_v59 = vld [vmem:[#allocation119_spill] sm:$0xff] }
0x1462   : > { %6851 = vmatprep.mubr.f32.mxu0 %v13943_v39  ;;  %6922 = vmatprep.mubr.f32.mxu1 %v13943_v39 }
0x1463   : > { %v6947_v45 = vmul.f32 %v13329_v58, %v6946_v29 }
0x1464   : > { %10381 = vmatpush1.bf16.msra.mxu0 %v14035_v61  ;;  %10413 = vmatpush1.bf16.msra.mxu1 %v12043_v9  ;;  %v3385_v39 = vpop.xlane.xlu0 %3384  ;;  %v3979_v9 = vpop.xlane.xlu1 %3978 }
0x1465   : > { %6948 = vadd.xlane.f32.xlu1 %v6947_v45  ;;  %10383 = vmatprep.subr.bf16.mxu0 %v14036_v30 }
0x1466   : > { %10415 = vmatprep.subr.bf16.mxu1 %v14037_v18 }
0x1468   : > { %10385 = vmatpush1.bf16.msra.mxu0 %v14038_v4  ;;  %10417 = vmatpush1.bf16.msra.mxu1 %v14039_v15  ;;  %v5167_v51 = vpop.xlane.xlu0 %5166 }
0x1469   : > { %10387 = vmatprep.subr.bf16.mxu0 %v14040_v21  ;;  %10419 = vmatprep.subr.bf16.mxu1 %v14041_v22 }
0x146c   : > { %10389 = vmatpush1.bf16.msra.mxu0 %v14042_v2  ;;  %10421 = vmatpush1.bf16.msra.mxu1 %v14043_v63  ;;  %v6355_v3 = vpop.xlane.xlu0 %6354 }
0x146d   : > { %10391 = vmatprep.subr.bf16.mxu0 %v14044_v60  ;;  %10423 = vmatprep.subr.bf16.mxu1 %v14045_v62 }
0x1470   : > { %10393 = vmatpush1.bf16.msra.mxu0 %v14046_v5  ;;  %10425 = vmatpush1.bf16.msra.mxu1 %v14047_v47 }
0x1471   : > { %10395 = vmatprep.subr.bf16.mxu0 %v14048_v38  ;;  %10427 = vmatprep.subr.bf16.mxu1 %v14049_v53 }
0x1474   : > { %10397 = vmatpush1.bf16.msra.mxu0 %v12193_v31  ;;  %10429 = vmatpush1.bf16.msra.mxu1 %v14050_v1  ;;  %v4573_v31 = vpop.xlane.xlu1 %4572 }
0x1475   : > { %10399 = vmatprep.subr.bf16.mxu0 %v12205_v6  ;;  %10431 = vmatprep.subr.bf16.mxu1 %v12207_v16  ;;  %v2792_v6 = vsub.f32 0.0, %v2791_v48 }
0x1477   : > { %v3386_v16 = vsub.f32 %v2792_v6, %v3385_v39 }
0x1478   : > { %10401 = vmatpush1.bf16.msra.mxu0 %v12229_v46  ;;  %10433 = vmatpush1.bf16.msra.mxu1 %v12231_v35  ;;  %v5761_v52 = vpop.xlane.xlu1 %5760 }
0x1479   : > { %10403 = vmatprep.subr.bf16.mxu0 %v12238_v54  ;;  %10435 = vmatprep.subr.bf16.mxu1 %v12240_v17  ;;  %v3980_v46 = vsub.f32 %v3386_v16, %v3979_v9 }
0x147b   : > { %v4574_v35 = vsub.f32 %v3980_v46, %v4573_v31 }
0x147c   : > { %10405 = vmatpush1.bf16.msra.mxu0 %v12253_v7  ;;  %10437 = vmatpush1.bf16.msra.mxu1 %v12255_v56 }
0x147d   : > { %v5168_v54 = vsub.f32 %v4574_v35, %v5167_v51 }
0x147f   : > { %6852 = vmatmul.mubr.f32.vlgmr.msra.gmra.mrb[62].mxu0 %v10540_v20  ;;  %6923 = vmatmul.mubr.f32.vlgmr.msra.gmra.mrb[62].mxu1 %v10540_v20  ;;  %v5762_v17 = vsub.f32 %v5168_v54, %v5761_v52 }
0x1481   : > { %v6356_v61 = vsub.f32 %v5762_v17, %v6355_v3 }
0x14f2   : > { %v6949_v7 = vpop.xlane.xlu1 %6948 }
0x14f3   : > { %v6950_v56 = vsub.f32 %v6356_v61, %v6949_v7 }
0x14f5   : > { %6960 = vst.msk [vmem:[%s10657_s29 + $0x40] sm:$0xff] %vm6959_vm5, %v6950_v56 }
0x1532   : > { %v6711_v30 = vpop.f32.mrb[60].mxu0  ;;  %v6782_v18 = vpop.f32.mrb[60].mxu1 }
0x1533   : > { %v6929_v4 = vadd.f32 %v6711_v30, %v13403_v37  ;;  %v6931_v15 = vadd.f32 %v6782_v18, %v13406_v42  ;;  %v6713_v21 = vpop.f32.mrb[61].mxu0  ;;  %v6784_v22 = vpop.f32.mrb[61].mxu1  ;;  %v14671_v37 = vld [vmem:[#allocation120_spill] sm:$0xff]  ;;  %v14672_v42 = vld [vmem:[#allocation118_spill] sm:$0xff] }
0x1534   : > { %v6930_v2 = vadd.f32 %v6713_v21, %v13397_v24  ;;  %v6932_v63 = vadd.f32 %v6784_v22, %v13400_v32 }
0x1535   : > { %v6937_v60 = vadd.f32 %v6929_v4, %v14597_v33  ;;  %v6939_v62 = vadd.f32 %v6931_v15, %v14598_v41 }
0x1536   : > { %v6938_v5 = vadd.f32 %v6930_v2, %v14595_v23  ;;  %v6940_v47 = vadd.f32 %v6932_v63, %v14596_v28 }
0x1537   : > { %6951 = vst [vmem:[%s10657_s29] sm:$0xff] %v6937_v60  ;;  %6953 = vst [vmem:[%s10657_s29 + $0x10] sm:$0xff] %v6939_v62 }
0x1538   : > { %6952 = vst [vmem:[%s10657_s29 + $0x8] sm:$0xff] %v6938_v5  ;;  %6954 = vst [vmem:[%s10657_s29 + $0x18] sm:$0xff] %v6940_v47 }
0x1552   : > { %v6853_v38 = vpop.f32.mrb[62].mxu0  ;;  %v6924_v53 = vpop.f32.mrb[62].mxu1 }
0x1553   : > { %v6933_v1 = vadd.f32 %v6853_v38, %v13453_v19  ;;  %v6935_v58 = vadd.f32 %v6924_v53, %v13456_v49  ;;  %v6855_v24 = vpop.f32.mrb[63].mxu0  ;;  %v6926_v32 = vpop.f32.mrb[63].mxu1 }
0x1554   : > { %v6934_v23 = vadd.f32 %v6855_v24, %v13445_v44  ;;  %v6936_v28 = vadd.f32 %v6926_v32, %v13448_v26 }
0x1555   : > { %v6941_v33 = vadd.f32 %v6933_v1, %v14635_v34  ;;  %v6943_v41 = vadd.f32 %v6935_v58, %v14671_v37 }
0x1556   : > { %v6942_v20 = vadd.f32 %v6934_v23, %v14672_v42  ;;  %v6944_v27 = vadd.f32 %v6936_v28, %v14673_v59 }
0x1557   : > { %6955 = vst [vmem:[%s10657_s29 + $0x20] sm:$0xff] %v6941_v33  ;;  %6957 = vst [vmem:[%s10657_s29 + $0x30] sm:$0xff] %v6943_v41 }
0x1558   : > { %6956 = vst [vmem:[%s10657_s29 + $0x28] sm:$0xff] %v6942_v20  ;;  %6958 = vst [vmem:[%s10657_s29 + $0x38] sm:$0xff] %v6944_v27 }
0x1559 PF: > { %s18_s27 = sadd.s32 1, %s10549_s27  }
0x155a   : > { %p15_p6 = scmp.ge.s32.totalorder %s18_s27, 4  }
0x155c   :  { %17 = sbr.rel (!%p15_p6) target bundleno = 1 (0x1), region = 87 }

</bundles_post_ra>
